<compile_context>
chip_gen: v6e
topology: v6e:2x2x1
jax: 0.10.0
libtpu: 0.0.40
codegen_flags: <defaults>
</compile_context>

<pallas_src>
import functools

import jax
import jax.numpy as jnp
from jax import lax
from jax.experimental import pallas as pl
from jax.experimental.pallas import tpu as pltpu


def _round_up(x, m):
    return (x + m - 1) // m * m


# ----------------------------------------------------------------------------
# Pallas kernel: full forward (LSTM stack + final linear) for one batch tile.
# ----------------------------------------------------------------------------
def _sennet_kernel(num_layers, Hp, seq_len, unroll,
                   x_ref,        # (seq, bt, E)      matmul dtype
                   w_ih0_ref,    # (E, 4Hp)          matmul dtype
                   w_hh0_ref,    # (Hp, 4Hp)         matmul dtype
                   b0_ref,       # (1, 4Hp)          f32
                   w_ih_r_ref,   # (Lr, Hp, 4Hp)     matmul dtype
                   w_hh_r_ref,   # (Lr, Hp, 4Hp)     matmul dtype
                   b_r_ref,      # (Lr, 1, 4Hp)      f32
                   w_out_ref,    # (2Hp, out_pad)    matmul dtype
                   b_out_ref,    # (1, out_pad)      f32
                   out_ref,      # (bt, out_pad)     f32
                   h_buf,        # (seq*bt, Hp)      matmul dtype  scratch
                   g_buf):       # (seq*bt, 4Hp)     f32           scratch
    bt = x_ref.shape[1]
    md = w_hh0_ref.dtype     # matmul dtype (bf16 or f32)

    def project_inputs(src2d, w_ih_ref, b_ref):
        # Hoisted input projection: one big MXU matmul over all seq*bt rows,
        # bias folded in here so no per-step broadcast is emitted.
        g_buf[...] = (jnp.dot(src2d, w_ih_ref[...],
                              preferred_element_type=jnp.float32)
                      + b_ref[...])

    def run_recurrence(w_hh_ref, is_last):
        zeros = jnp.zeros((bt, Hp), jnp.float32)

        def step(t, carry):
            if is_last:
                h, c, h_first = carry
            else:
                h, c = carry
            row = pl.multiple_of(t * bt, bt)
            # Only the recurrent matmul is on the serial critical path.
            gates = (g_buf[pl.ds(row, bt), :]
                     + jnp.dot(h.astype(md), w_hh_ref[...],
                               preferred_element_type=jnp.float32))
            # Gate blocks are padded to Hp=multiple-of-128 lanes -> full-vreg
            # sigmoid/tanh/fma chain (PyTorch gate order: i, f, g, o).
            i = jax.nn.sigmoid(gates[:, 0:Hp])
            f = jax.nn.sigmoid(gates[:, Hp:2 * Hp])
            g = jnp.tanh(gates[:, 2 * Hp:3 * Hp])
            o = jax.nn.sigmoid(gates[:, 3 * Hp:4 * Hp])
            c = f * c + i * g
            h = o * jnp.tanh(c)
            if is_last:
                # Final layer only needs h_0 and h_{T-1}: skip VMEM stores.
                h_first = jnp.where(t == 0, h, h_first)
                return h, c, h_first
            h_buf[pl.ds(row, bt), :] = h.astype(h_buf.dtype)
            return h, c

        init = (zeros, zeros, zeros) if is_last else (zeros, zeros)
        carry = lax.fori_loop(0, seq_len, step, init, unroll=unroll)
        if is_last:
            h_last, _, h_first = carry
            return h_first, h_last
        return None

    # Layer 0 input projection (embeddings -> gate pre-activations).
    x2d = x_ref[...].reshape(seq_len * bt, x_ref.shape[2])
    project_inputs(x2d, w_ih0_ref, b0_ref)

    h_first = h_last = None
    for l in range(num_layers):
        is_last = l == num_layers - 1
        w_hh_ref = w_hh0_ref if l == 0 else w_hh_r_ref.at[l - 1]
        if is_last:
            h_first, h_last = run_recurrence(w_hh_ref, True)
        else:
            run_recurrence(w_hh_ref, False)
            # Project this layer's outputs through the next layer's W_ih.
            project_inputs(h_buf[...], w_ih_r_ref.at[l], b_r_ref.at[l])

    # h2o(cat([h_0, h_{T-1}], dim=1)) == h_0 @ W[:Hp] + h_{T-1} @ W[Hp:] + b
    out = (jnp.dot(h_first.astype(md), w_out_ref[0:Hp, :],
                   preferred_element_type=jnp.float32)
           + jnp.dot(h_last.astype(md), w_out_ref[Hp:2 * Hp, :],
                     preferred_element_type=jnp.float32)
           + b_out_ref[...])
    out_ref[...] = out.astype(out_ref.dtype)   # lane-dense (out_pad = k*128)


# ----------------------------------------------------------------------------
# Wrapper: padding / layout / dtype prep + pallas_call
# ----------------------------------------------------------------------------
def sennet_forward(token_ids, params, *, num_layers, num_hiddens,
                   matmul_dtype=jnp.bfloat16):
    H = num_hiddens
    Hp = _round_up(H, 128)                       # lane-aligned gate blocks
    out_size = params["b_out"].shape[-1]
    out_pad = _round_up(out_size, 128)           # lane-dense output store
    md = matmul_dtype

    # TODO(synk): embedding lookup (data-dependent gather) kept in plain JAX.
    emb = jnp.take(params["embedding"], token_ids, axis=0)   # (B, seq, E)
    x = jnp.transpose(emb, (1, 0, 2))                        # (seq, B, E)
    seq, B, E = x.shape

    # Pad batch to >=8 sublane rows; tile at most 128 rows per grid step so
    # the grid can be sharded across TensorCores ("parallel").
    B8 = _round_up(B, 8)
    bt = min(B8, 128)
    B_pad = _round_up(B8, bt)
    x = jnp.pad(x, ((0, 0), (0, B_pad - B), (0, 0))).astype(md)

    def pad_gate_cols(w):
        # (..., 4H) -> (..., 4Hp): each of the i,f,g,o blocks padded to Hp.
        pad_width = [(0, 0)] * (w.ndim - 1) + [(0, Hp - H)]
        parts = [jnp.pad(w[..., k * H:(k + 1) * H], pad_width)
                 for k in range(4)]
        return jnp.concatenate(parts, axis=-1)

    def pad_rows(w, axis):
        pad_width = [(0, 0)] * w.ndim
        pad_width[axis] = (0, Hp - H)
        return jnp.pad(w, pad_width)

    w_ih0 = pad_gate_cols(params["w_ih0"]).astype(md)                 # (E,4Hp)
    w_hh0 = pad_rows(pad_gate_cols(params["w_hh0"]), 0).astype(md)    # (Hp,4Hp)
    b0 = pad_gate_cols(params["b0"]).astype(jnp.float32)              # (1,4Hp)

    Lr = max(num_layers - 1, 1)
    if num_layers > 1:
        w_ih_r = pad_rows(pad_gate_cols(params["w_ih_rest"]), 1).astype(md)
        w_hh_r = pad_rows(pad_gate_cols(params["w_hh_rest"]), 1).astype(md)
        b_r = pad_gate_cols(params["b_rest"]).astype(jnp.float32)
    else:
        w_ih_r = jnp.zeros((Lr, Hp, 4 * Hp), md)
        w_hh_r = jnp.zeros((Lr, Hp, 4 * Hp), md)
        b_r = jnp.zeros((Lr, 1, 4 * Hp), jnp.float32)

    # h2o weight (2H, out) -> (2Hp, out_pad); the two H-row halves are padded
    # independently so they line up with the padded h_0 / h_{T-1} features.
    w_out = params["w_out"]
    w_out_p = jnp.zeros((2 * Hp, out_pad), jnp.float32)
    w_out_p = w_out_p.at[0:H, 0:out_size].set(w_out[0:H])
    w_out_p = w_out_p.at[Hp:Hp + H, 0:out_size].set(w_out[H:2 * H])
    w_out_p = w_out_p.astype(md)
    b_out_p = jnp.pad(params["b_out"],
                      ((0, 0), (0, out_pad - out_size))).astype(jnp.float32)

    unroll = True if seq <= 32 else 8
    kernel = functools.partial(_sennet_kernel, num_layers, Hp, seq, unroll)

    def full(shape):
        return pl.BlockSpec(shape, lambda b: (0,) * len(shape))

    grid = (B_pad // bt,)
    out_padded = pl.pallas_call(
        kernel,
        out_shape=jax.ShapeDtypeStruct((B_pad, out_pad), jnp.float32),
        grid=grid,
        in_specs=[
            pl.BlockSpec((seq, bt, E), lambda b: (0, b, 0)),   # x, batch-tiled
            full((E, 4 * Hp)),
            full((Hp, 4 * Hp)),
            full((1, 4 * Hp)),
            full((Lr, Hp, 4 * Hp)),
            full((Lr, Hp, 4 * Hp)),
            full((Lr, 1, 4 * Hp)),
            full((2 * Hp, out_pad)),
            full((1, out_pad)),
        ],
        out_specs=pl.BlockSpec((bt, out_pad), lambda b: (b, 0)),
        scratch_shapes=[
            pltpu.VMEM((seq * bt, Hp), md),              # layer outputs h_t
            pltpu.VMEM((seq * bt, 4 * Hp), jnp.float32), # hoisted gate pre-acts
        ],
        compiler_params=pltpu.CompilerParams(
            dimension_semantics=("parallel",)),
    )(x, w_ih0, w_hh0, b0, w_ih_r, w_hh_r, b_r, w_out_p, b_out_p)

    return out_padded[:B, :out_size]


# ----------------------------------------------------------------------------
# Pure-JAX reference (matches the PyTorch module, f32 end-to-end)
# ----------------------------------------------------------------------------
def sennet_reference(token_ids, params, *, num_layers, num_hiddens):
    H = num_hiddens
    emb = jnp.take(params["embedding"], token_ids, axis=0)
    x = jnp.transpose(emb, (1, 0, 2))                        # (seq, B, E)

    def lstm_layer(xs, w_ih, w_hh, b):
        _, batch, _ = xs.shape

        def step(carry, x_t):
            h, c = carry
            gates = x_t @ w_ih + h @ w_hh + b
            i = jax.nn.sigmoid(gates[:, 0:H])
            f = jax.nn.sigmoid(gates[:, H:2 * H])
            g = jnp.tanh(gates[:, 2 * H:3 * H])
            o = jax.nn.sigmoid(gates[:, 3 * H:4 * H])
            c = f * c + i * g
            h = o * jnp.tanh(c)
            return (h, c), h

        init = (jnp.zeros((batch, H), jnp.float32),
                jnp.zeros((batch, H), jnp.float32))
        _, hs = lax.scan(step, init, xs)
        return hs

    hs = lstm_layer(x, params["w_ih0"], params["w_hh0"], params["b0"])
    for l in range(num_layers - 1):
        hs = lstm_layer(hs, params["w_ih_rest"][l],
                        params["w_hh_rest"][l], params["b_rest"][l])
    feat = jnp.concatenate([hs[0], hs[-1]], axis=1)
    return feat @ params["w_out"] + params["b_out"]


# ----------------------------------------------------------------------------
# Deterministic parameter init (shapes follow nn.LSTM / nn.Linear)
# ----------------------------------------------------------------------------
def init_params(key, vocab, embed_size, num_hiddens, num_layers, out_size):
    H = num_hiddens
    scale = 1.0 / float(H) ** 0.5
    keys = list(jax.random.split(key, 8 + 6 * num_layers))
    kit = iter(keys)

    def u(shape):
        return jax.random.uniform(next(kit), shape, jnp.float32, -scale, scale)

    params = {}
    params["embedding"] = jax.random.normal(next(kit), (vocab, embed_size),
                                            jnp.float32)
    # layer 0 (input_size = embed_size); weights pre-transposed to (in, 4H)
    params["w_ih0"] = u((embed_size, 4 * H))
    params["w_hh0"] = u((H, 4 * H))
    params["b0"] = u((1, 4 * H)) + u((1, 4 * H))     # b_ih + b_hh combined
    # layers 1..L-1 (input_size = H), stacked
    if num_layers > 1:
        params["w_ih_rest"] = jnp.stack([u((H, 4 * H))
                                         for _ in range(num_layers - 1)])
        params["w_hh_rest"] = jnp.stack([u((H, 4 * H))
                                         for _ in range(num_layers - 1)])
        params["b_rest"] = jnp.stack([u((1, 4 * H)) + u((1, 4 * H))
                                      for _ in range(num_layers - 1)])
    else:
        params["w_ih_rest"] = jnp.zeros((0, H, 4 * H), jnp.float32)
        params["w_hh_rest"] = jnp.zeros((0, H, 4 * H), jnp.float32)
        params["b_rest"] = jnp.zeros((0, 1, 4 * H), jnp.float32)
    # h2o: Linear(2H, out_size); weight pre-transposed to (2H, out_size)
    params["w_out"] = u((2 * H, out_size))
    params["b_out"] = u((1, out_size))
    return params


# ----------------------------------------------------------------------------
if __name__ == "__main__":
    vocab = 16
    embed_size = 32
    num_hiddens = 32
    num_layers = 2
    out_size = 4
    batch = 2
    seq = 8

    key = jax.random.PRNGKey(0)
    k_param, k_tok = jax.random.split(key)
    params = init_params(k_param, vocab, embed_size, num_hiddens,
                         num_layers, out_size)
    token_ids = jax.random.randint(k_tok, (batch, seq), 0, vocab, jnp.int32)

    ref = sennet_reference(token_ids, params,
                           num_layers=num_layers, num_hiddens=num_hiddens)

    # Exact-semantics check (f32 matmul inputs).
    out_f32 = jax.block_until_ready(
        sennet_forward(token_ids, params, num_layers=num_layers,
                       num_hiddens=num_hiddens, matmul_dtype=jnp.float32))
    assert out_f32.shape == (batch, out_size)
    assert jnp.allclose(out_f32, ref, atol=2e-3, rtol=2e-3), (out_f32, ref)

    # Fast path: bf16 matmul inputs, f32 accumulation and f32 gate math.
    out_bf16 = jax.block_until_ready(
        sennet_forward(token_ids, params, num_layers=num_layers,
                       num_hiddens=num_hiddens, matmul_dtype=jnp.bfloat16))
    assert out_bf16.shape == (batch, out_size)
    assert jnp.allclose(out_bf16, ref, atol=5e-2, rtol=5e-2), (out_bf16, ref)

    print("KERNEL_OK")
</pallas_src>

<mosaic_0001>
module attributes {stable_mosaic.version = 11 : i64} {
  func.func @_sennet_kernel(%arg0: i32, %arg1: memref<8x8x32xf32, #tpu.memory_space<vmem>>, %arg2: memref<32x512xf32, #tpu.memory_space<vmem>>, %arg3: memref<128x512xf32, #tpu.memory_space<vmem>>, %arg4: memref<1x512xf32, #tpu.memory_space<vmem>>, %arg5: memref<1x128x512xf32, #tpu.memory_space<vmem>>, %arg6: memref<1x128x512xf32, #tpu.memory_space<vmem>>, %arg7: memref<1x1x512xf32, #tpu.memory_space<vmem>>, %arg8: memref<256x128xf32, #tpu.memory_space<vmem>>, %arg9: memref<1x128xf32, #tpu.memory_space<vmem>>, %arg10: memref<8x128xf32, #tpu.memory_space<vmem>>, %arg11: memref<64x128xf32, #tpu.memory_space<vmem>>, %arg12: memref<64x512xf32, #tpu.memory_space<vmem>>) attributes {dimension_semantics = [#tpu.dimension_semantics<parallel>], iteration_bounds = array<i64: 1>, scalar_prefetch = 0 : i64, scratch_operands = 2 : i64, tpu.core_type = #tpu.core_type<tc>, window_params = [{transform_indices = @transform_0, window_bounds = array<i64: 8, 8, 32>}, {pipeline_mode = #tpu.pipeline_mode<synchronous>, transform_indices = @transform_1, window_bounds = array<i64: 32, 512>}, {pipeline_mode = #tpu.pipeline_mode<synchronous>, transform_indices = @transform_2, window_bounds = array<i64: 128, 512>}, {pipeline_mode = #tpu.pipeline_mode<synchronous>, transform_indices = @transform_3, window_bounds = array<i64: 1, 512>}, {pipeline_mode = #tpu.pipeline_mode<synchronous>, transform_indices = @transform_4, window_bounds = array<i64: 1, 128, 512>}, {pipeline_mode = #tpu.pipeline_mode<synchronous>, transform_indices = @transform_5, window_bounds = array<i64: 1, 128, 512>}, {pipeline_mode = #tpu.pipeline_mode<synchronous>, transform_indices = @transform_6, window_bounds = array<i64: 1, 1, 512>}, {pipeline_mode = #tpu.pipeline_mode<synchronous>, transform_indices = @transform_7, window_bounds = array<i64: 256, 128>}, {pipeline_mode = #tpu.pipeline_mode<synchronous>, transform_indices = @transform_8, window_bounds = array<i64: 1, 128>}, {transform_indices = @transform_9, window_bounds = array<i64: 8, 128>}]} {
    %c0 = arith.constant 0 : index
    %c0_0 = arith.constant 0 : index
    %c0_1 = arith.constant 0 : index
    %0 = vector.load %arg1[%c0, %c0_0, %c0_1] : memref<8x8x32xf32, #tpu.memory_space<vmem>>, vector<8x8x32xf32>
    %1 = vector.shape_cast %0 : vector<8x8x32xf32> to vector<64x32xf32>
    %c0_2 = arith.constant 0 : index
    %c0_3 = arith.constant 0 : index
    %2 = vector.load %arg2[%c0_2, %c0_3] : memref<32x512xf32, #tpu.memory_space<vmem>>, vector<32x512xf32>
    %cst = arith.constant dense<0.000000e+00> : vector<64x512xf32>
    %3 = tpu.matmul %1, %2, %cst {dimension_numbers = #tpu.dot_dimension_numbers<[1], [0], [0], [1], [0, 0, 1, 1], [], []>} : vector<64x32xf32>, vector<32x512xf32>, vector<64x512xf32> -> vector<64x512xf32>
    %c0_4 = arith.constant 0 : index
    %c0_5 = arith.constant 0 : index
    %4 = vector.load %arg4[%c0_4, %c0_5] : memref<1x512xf32, #tpu.memory_space<vmem>>, vector<1x512xf32>
    %5 = vector.broadcast %4 : vector<1x512xf32> to vector<64x512xf32>
    %6 = arith.addf %3, %5 : vector<64x512xf32>
    %c0_6 = arith.constant 0 : index
    %c0_7 = arith.constant 0 : index
    %7 = vector.load %arg12[%c0_6, %c0_7] : memref<64x512xf32, #tpu.memory_space<vmem>>, vector<64x512xf32>
    tpu.vector_store %arg12[%c0_6, %c0_7], %6 {strides = array<i32>} : memref<64x512xf32, #tpu.memory_space<vmem>>, vector<64x512xf32>,
    %cst_8 = arith.constant 0.000000e+00 : f32
    %8 = vector.broadcast %cst_8 : f32 to vector<8x128xf32>
    %c0_i32 = arith.constant 0 : i32
    %c8_i32 = arith.constant 8 : i32
    %9 = arith.muli %c0_i32, %c8_i32 : i32
    %10 = tpu.assume_multiple %9, 8 : i32
    %11 = arith.index_cast %10 : i32 to index
    %c0_9 = arith.constant 0 : index
    %12 = vector.load %arg12[%11, %c0_9] : memref<64x512xf32, #tpu.memory_space<vmem>>, vector<8x512xf32>
    %c0_10 = arith.constant 0 : index
    %c0_11 = arith.constant 0 : index
    %13 = vector.load %arg3[%c0_10, %c0_11] : memref<128x512xf32, #tpu.memory_space<vmem>>, vector<128x512xf32>
    %cst_12 = arith.constant dense<0.000000e+00> : vector<8x512xf32>
    %14 = tpu.matmul %8, %13, %cst_12 {dimension_numbers = #tpu.dot_dimension_numbers<[1], [0], [0], [1], [0, 0, 1, 1], [], []>} : vector<8x128xf32>, vector<128x512xf32>, vector<8x512xf32> -> vector<8x512xf32>
    %15 = arith.addf %12, %14 : vector<8x512xf32>
    %16 = vector.extract_strided_slice %15 {offsets = [0, 0], sizes = [8, 128], strides = [1, 1]} : vector<8x512xf32> to vector<8x128xf32>
    %17 = arith.negf %16 : vector<8x128xf32>
    %18 = math.exp %17 : vector<8x128xf32>
    %cst_13 = arith.constant 1.000000e+00 : f32
    %19 = vector.broadcast %cst_13 : f32 to vector<8x128xf32>
    %20 = arith.addf %19, %18 : vector<8x128xf32>
    %21 = arith.divf %19, %20 : vector<8x128xf32>
    %22 = vector.extract_strided_slice %15 {offsets = [0, 128], sizes = [8, 128], strides = [1, 1]} : vector<8x512xf32> to vector<8x128xf32>
    %23 = arith.negf %22 : vector<8x128xf32>
    %24 = math.exp %23 : vector<8x128xf32>
    %cst_14 = arith.constant 1.000000e+00 : f32
    %25 = vector.broadcast %cst_14 : f32 to vector<8x128xf32>
    %26 = arith.addf %25, %24 : vector<8x128xf32>
    %27 = arith.divf %25, %26 : vector<8x128xf32>
    %28 = vector.extract_strided_slice %15 {offsets = [0, 256], sizes = [8, 128], strides = [1, 1]} : vector<8x512xf32> to vector<8x128xf32>
    %29 = math.tanh %28 : vector<8x128xf32>
    %30 = vector.extract_strided_slice %15 {offsets = [0, 384], sizes = [8, 128], strides = [1, 1]} : vector<8x512xf32> to vector<8x128xf32>
    %31 = arith.negf %30 : vector<8x128xf32>
    %32 = math.exp %31 : vector<8x128xf32>
    %cst_15 = arith.constant 1.000000e+00 : f32
    %33 = vector.broadcast %cst_15 : f32 to vector<8x128xf32>
    %34 = arith.addf %33, %32 : vector<8x128xf32>
    %35 = arith.divf %33, %34 : vector<8x128xf32>
    %36 = arith.mulf %27, %8 : vector<8x128xf32>
    %37 = arith.mulf %21, %29 : vector<8x128xf32>
    %38 = arith.addf %36, %37 : vector<8x128xf32>
    %39 = math.tanh %38 : vector<8x128xf32>
    %40 = arith.mulf %35, %39 : vector<8x128xf32>
    %41 = arith.index_cast %10 : i32 to index
    %c0_16 = arith.constant 0 : index
    %42 = vector.load %arg11[%41, %c0_16] : memref<64x128xf32, #tpu.memory_space<vmem>>, vector<8x128xf32>
    tpu.vector_store %arg11[%41, %c0_16], %40 {strides = array<i32>} : memref<64x128xf32, #tpu.memory_space<vmem>>, vector<8x128xf32>,
    %c1_i32 = arith.constant 1 : i32
    %c8_i32_17 = arith.constant 8 : i32
    %43 = arith.muli %c1_i32, %c8_i32_17 : i32
    %44 = tpu.assume_multiple %43, 8 : i32
    %45 = arith.index_cast %44 : i32 to index
    %c0_18 = arith.constant 0 : index
    %46 = vector.load %arg12[%45, %c0_18] : memref<64x512xf32, #tpu.memory_space<vmem>>, vector<8x512xf32>
    %c0_19 = arith.constant 0 : index
    %c0_20 = arith.constant 0 : index
    %47 = vector.load %arg3[%c0_19, %c0_20] : memref<128x512xf32, #tpu.memory_space<vmem>>, vector<128x512xf32>
    %cst_21 = arith.constant dense<0.000000e+00> : vector<8x512xf32>
    %48 = tpu.matmul %40, %47, %cst_21 {dimension_numbers = #tpu.dot_dimension_numbers<[1], [0], [0], [1], [0, 0, 1, 1], [], []>} : vector<8x128xf32>, vector<128x512xf32>, vector<8x512xf32> -> vector<8x512xf32>
    %49 = arith.addf %46, %48 : vector<8x512xf32>
    %50 = vector.extract_strided_slice %49 {offsets = [0, 0], sizes = [8, 128], strides = [1, 1]} : vector<8x512xf32> to vector<8x128xf32>
    %51 = arith.negf %50 : vector<8x128xf32>
    %52 = math.exp %51 : vector<8x128xf32>
    %cst_22 = arith.constant 1.000000e+00 : f32
    %53 = vector.broadcast %cst_22 : f32 to vector<8x128xf32>
    %54 = arith.addf %53, %52 : vector<8x128xf32>
    %55 = arith.divf %53, %54 : vector<8x128xf32>
    %56 = vector.extract_strided_slice %49 {offsets = [0, 128], sizes = [8, 128], strides = [1, 1]} : vector<8x512xf32> to vector<8x128xf32>
    %57 = arith.negf %56 : vector<8x128xf32>
    %58 = math.exp %57 : vector<8x128xf32>
    %cst_23 = arith.constant 1.000000e+00 : f32
    %59 = vector.broadcast %cst_23 : f32 to vector<8x128xf32>
    %60 = arith.addf %59, %58 : vector<8x128xf32>
    %61 = arith.divf %59, %60 : vector<8x128xf32>
    %62 = vector.extract_strided_slice %49 {offsets = [0, 256], sizes = [8, 128], strides = [1, 1]} : vector<8x512xf32> to vector<8x128xf32>
    %63 = math.tanh %62 : vector<8x128xf32>
    %64 = vector.extract_strided_slice %49 {offsets = [0, 384], sizes = [8, 128], strides = [1, 1]} : vector<8x512xf32> to vector<8x128xf32>
    %65 = arith.negf %64 : vector<8x128xf32>
    %66 = math.exp %65 : vector<8x128xf32>
    %cst_24 = arith.constant 1.000000e+00 : f32
    %67 = vector.broadcast %cst_24 : f32 to vector<8x128xf32>
    %68 = arith.addf %67, %66 : vector<8x128xf32>
    %69 = arith.divf %67, %68 : vector<8x128xf32>
    %70 = arith.mulf %61, %38 : vector<8x128xf32>
    %71 = arith.mulf %55, %63 : vector<8x128xf32>
    %72 = arith.addf %70, %71 : vector<8x128xf32>
    %73 = math.tanh %72 : vector<8x128xf32>
    %74 = arith.mulf %69, %73 : vector<8x128xf32>
    %75 = arith.index_cast %44 : i32 to index
    %c0_25 = arith.constant 0 : index
    %76 = vector.load %arg11[%75, %c0_25] : memref<64x128xf32, #tpu.memory_space<vmem>>, vector<8x128xf32>
    tpu.vector_store %arg11[%75, %c0_25], %74 {strides = array<i32>} : memref<64x128xf32, #tpu.memory_space<vmem>>, vector<8x128xf32>,
    %c2_i32 = arith.constant 2 : i32
    %c8_i32_26 = arith.constant 8 : i32
    %77 = arith.muli %c2_i32, %c8_i32_26 : i32
    %78 = tpu.assume_multiple %77, 8 : i32
    %79 = arith.index_cast %78 : i32 to index
    %c0_27 = arith.constant 0 : index
    %80 = vector.load %arg12[%79, %c0_27] : memref<64x512xf32, #tpu.memory_space<vmem>>, vector<8x512xf32>
    %c0_28 = arith.constant 0 : index
    %c0_29 = arith.constant 0 : index
    %81 = vector.load %arg3[%c0_28, %c0_29] : memref<128x512xf32, #tpu.memory_space<vmem>>, vector<128x512xf32>
    %cst_30 = arith.constant dense<0.000000e+00> : vector<8x512xf32>
    %82 = tpu.matmul %74, %81, %cst_30 {dimension_numbers = #tpu.dot_dimension_numbers<[1], [0], [0], [1], [0, 0, 1, 1], [], []>} : vector<8x128xf32>, vector<128x512xf32>, vector<8x512xf32> -> vector<8x512xf32>
    %83 = arith.addf %80, %82 : vector<8x512xf32>
    %84 = vector.extract_strided_slice %83 {offsets = [0, 0], sizes = [8, 128], strides = [1, 1]} : vector<8x512xf32> to vector<8x128xf32>
    %85 = arith.negf %84 : vector<8x128xf32>
    %86 = math.exp %85 : vector<8x128xf32>
    %cst_31 = arith.constant 1.000000e+00 : f32
    %87 = vector.broadcast %cst_31 : f32 to vector<8x128xf32>
    %88 = arith.addf %87, %86 : vector<8x128xf32>
    %89 = arith.divf %87, %88 : vector<8x128xf32>
    %90 = vector.extract_strided_slice %83 {offsets = [0, 128], sizes = [8, 128], strides = [1, 1]} : vector<8x512xf32> to vector<8x128xf32>
    %91 = arith.negf %90 : vector<8x128xf32>
    %92 = math.exp %91 : vector<8x128xf32>
    %cst_32 = arith.constant 1.000000e+00 : f32
    %93 = vector.broadcast %cst_32 : f32 to vector<8x128xf32>
    %94 = arith.addf %93, %92 : vector<8x128xf32>
    %95 = arith.divf %93, %94 : vector<8x128xf32>
    %96 = vector.extract_strided_slice %83 {offsets = [0, 256], sizes = [8, 128], strides = [1, 1]} : vector<8x512xf32> to vector<8x128xf32>
    %97 = math.tanh %96 : vector<8x128xf32>
    %98 = vector.extract_strided_slice %83 {offsets = [0, 384], sizes = [8, 128], strides = [1, 1]} : vector<8x512xf32> to vector<8x128xf32>
    %99 = arith.negf %98 : vector<8x128xf32>
    %100 = math.exp %99 : vector<8x128xf32>
    %cst_33 = arith.constant 1.000000e+00 : f32
    %101 = vector.broadcast %cst_33 : f32 to vector<8x128xf32>
    %102 = arith.addf %101, %100 : vector<8x128xf32>
    %103 = arith.divf %101, %102 : vector<8x128xf32>
    %104 = arith.mulf %95, %72 : vector<8x128xf32>
    %105 = arith.mulf %89, %97 : vector<8x128xf32>
    %106 = arith.addf %104, %105 : vector<8x128xf32>
    %107 = math.tanh %106 : vector<8x128xf32>
    %108 = arith.mulf %103, %107 : vector<8x128xf32>
    %109 = arith.index_cast %78 : i32 to index
    %c0_34 = arith.constant 0 : index
    %110 = vector.load %arg11[%109, %c0_34] : memref<64x128xf32, #tpu.memory_space<vmem>>, vector<8x128xf32>
    tpu.vector_store %arg11[%109, %c0_34], %108 {strides = array<i32>} : memref<64x128xf32, #tpu.memory_space<vmem>>, vector<8x128xf32>,
    %c3_i32 = arith.constant 3 : i32
    %c8_i32_35 = arith.constant 8 : i32
    %111 = arith.muli %c3_i32, %c8_i32_35 : i32
    %112 = tpu.assume_multiple %111, 8 : i32
    %113 = arith.index_cast %112 : i32 to index
    %c0_36 = arith.constant 0 : index
    %114 = vector.load %arg12[%113, %c0_36] : memref<64x512xf32, #tpu.memory_space<vmem>>, vector<8x512xf32>
    %c0_37 = arith.constant 0 : index
    %c0_38 = arith.constant 0 : index
    %115 = vector.load %arg3[%c0_37, %c0_38] : memref<128x512xf32, #tpu.memory_space<vmem>>, vector<128x512xf32>
    %cst_39 = arith.constant dense<0.000000e+00> : vector<8x512xf32>
    %116 = tpu.matmul %108, %115, %cst_39 {dimension_numbers = #tpu.dot_dimension_numbers<[1], [0], [0], [1], [0, 0, 1, 1], [], []>} : vector<8x128xf32>, vector<128x512xf32>, vector<8x512xf32> -> vector<8x512xf32>
    %117 = arith.addf %114, %116 : vector<8x512xf32>
    %118 = vector.extract_strided_slice %117 {offsets = [0, 0], sizes = [8, 128], strides = [1, 1]} : vector<8x512xf32> to vector<8x128xf32>
    %119 = arith.negf %118 : vector<8x128xf32>
    %120 = math.exp %119 : vector<8x128xf32>
    %cst_40 = arith.constant 1.000000e+00 : f32
    %121 = vector.broadcast %cst_40 : f32 to vector<8x128xf32>
    %122 = arith.addf %121, %120 : vector<8x128xf32>
    %123 = arith.divf %121, %122 : vector<8x128xf32>
    %124 = vector.extract_strided_slice %117 {offsets = [0, 128], sizes = [8, 128], strides = [1, 1]} : vector<8x512xf32> to vector<8x128xf32>
    %125 = arith.negf %124 : vector<8x128xf32>
    %126 = math.exp %125 : vector<8x128xf32>
    %cst_41 = arith.constant 1.000000e+00 : f32
    %127 = vector.broadcast %cst_41 : f32 to vector<8x128xf32>
    %128 = arith.addf %127, %126 : vector<8x128xf32>
    %129 = arith.divf %127, %128 : vector<8x128xf32>
    %130 = vector.extract_strided_slice %117 {offsets = [0, 256], sizes = [8, 128], strides = [1, 1]} : vector<8x512xf32> to vector<8x128xf32>
    %131 = math.tanh %130 : vector<8x128xf32>
    %132 = vector.extract_strided_slice %117 {offsets = [0, 384], sizes = [8, 128], strides = [1, 1]} : vector<8x512xf32> to vector<8x128xf32>
    %133 = arith.negf %132 : vector<8x128xf32>
    %134 = math.exp %133 : vector<8x128xf32>
    %cst_42 = arith.constant 1.000000e+00 : f32
    %135 = vector.broadcast %cst_42 : f32 to vector<8x128xf32>
    %136 = arith.addf %135, %134 : vector<8x128xf32>
    %137 = arith.divf %135, %136 : vector<8x128xf32>
    %138 = arith.mulf %129, %106 : vector<8x128xf32>
    %139 = arith.mulf %123, %131 : vector<8x128xf32>
    %140 = arith.addf %138, %139 : vector<8x128xf32>
    %141 = math.tanh %140 : vector<8x128xf32>
    %142 = arith.mulf %137, %141 : vector<8x128xf32>
    %143 = arith.index_cast %112 : i32 to index
    %c0_43 = arith.constant 0 : index
    %144 = vector.load %arg11[%143, %c0_43] : memref<64x128xf32, #tpu.memory_space<vmem>>, vector<8x128xf32>
    tpu.vector_store %arg11[%143, %c0_43], %142 {strides = array<i32>} : memref<64x128xf32, #tpu.memory_space<vmem>>, vector<8x128xf32>,
    %c4_i32 = arith.constant 4 : i32
    %c8_i32_44 = arith.constant 8 : i32
    %145 = arith.muli %c4_i32, %c8_i32_44 : i32
    %146 = tpu.assume_multiple %145, 8 : i32
    %147 = arith.index_cast %146 : i32 to index
    %c0_45 = arith.constant 0 : index
    %148 = vector.load %arg12[%147, %c0_45] : memref<64x512xf32, #tpu.memory_space<vmem>>, vector<8x512xf32>
    %c0_46 = arith.constant 0 : index
    %c0_47 = arith.constant 0 : index
    %149 = vector.load %arg3[%c0_46, %c0_47] : memref<128x512xf32, #tpu.memory_space<vmem>>, vector<128x512xf32>
    %cst_48 = arith.constant dense<0.000000e+00> : vector<8x512xf32>
    %150 = tpu.matmul %142, %149, %cst_48 {dimension_numbers = #tpu.dot_dimension_numbers<[1], [0], [0], [1], [0, 0, 1, 1], [], []>} : vector<8x128xf32>, vector<128x512xf32>, vector<8x512xf32> -> vector<8x512xf32>
    %151 = arith.addf %148, %150 : vector<8x512xf32>
    %152 = vector.extract_strided_slice %151 {offsets = [0, 0], sizes = [8, 128], strides = [1, 1]} : vector<8x512xf32> to vector<8x128xf32>
    %153 = arith.negf %152 : vector<8x128xf32>
    %154 = math.exp %153 : vector<8x128xf32>
    %cst_49 = arith.constant 1.000000e+00 : f32
    %155 = vector.broadcast %cst_49 : f32 to vector<8x128xf32>
    %156 = arith.addf %155, %154 : vector<8x128xf32>
    %157 = arith.divf %155, %156 : vector<8x128xf32>
    %158 = vector.extract_strided_slice %151 {offsets = [0, 128], sizes = [8, 128], strides = [1, 1]} : vector<8x512xf32> to vector<8x128xf32>
    %159 = arith.negf %158 : vector<8x128xf32>
    %160 = math.exp %159 : vector<8x128xf32>
    %cst_50 = arith.constant 1.000000e+00 : f32
    %161 = vector.broadcast %cst_50 : f32 to vector<8x128xf32>
    %162 = arith.addf %161, %160 : vector<8x128xf32>
    %163 = arith.divf %161, %162 : vector<8x128xf32>
    %164 = vector.extract_strided_slice %151 {offsets = [0, 256], sizes = [8, 128], strides = [1, 1]} : vector<8x512xf32> to vector<8x128xf32>
    %165 = math.tanh %164 : vector<8x128xf32>
    %166 = vector.extract_strided_slice %151 {offsets = [0, 384], sizes = [8, 128], strides = [1, 1]} : vector<8x512xf32> to vector<8x128xf32>
    %167 = arith.negf %166 : vector<8x128xf32>
    %168 = math.exp %167 : vector<8x128xf32>
    %cst_51 = arith.constant 1.000000e+00 : f32
    %169 = vector.broadcast %cst_51 : f32 to vector<8x128xf32>
    %170 = arith.addf %169, %168 : vector<8x128xf32>
    %171 = arith.divf %169, %170 : vector<8x128xf32>
    %172 = arith.mulf %163, %140 : vector<8x128xf32>
    %173 = arith.mulf %157, %165 : vector<8x128xf32>
    %174 = arith.addf %172, %173 : vector<8x128xf32>
    %175 = math.tanh %174 : vector<8x128xf32>
    %176 = arith.mulf %171, %175 : vector<8x128xf32>
    %177 = arith.index_cast %146 : i32 to index
    %c0_52 = arith.constant 0 : index
    %178 = vector.load %arg11[%177, %c0_52] : memref<64x128xf32, #tpu.memory_space<vmem>>, vector<8x128xf32>
    tpu.vector_store %arg11[%177, %c0_52], %176 {strides = array<i32>} : memref<64x128xf32, #tpu.memory_space<vmem>>, vector<8x128xf32>,
    %c5_i32 = arith.constant 5 : i32
    %c8_i32_53 = arith.constant 8 : i32
    %179 = arith.muli %c5_i32, %c8_i32_53 : i32
    %180 = tpu.assume_multiple %179, 8 : i32
    %181 = arith.index_cast %180 : i32 to index
    %c0_54 = arith.constant 0 : index
    %182 = vector.load %arg12[%181, %c0_54] : memref<64x512xf32, #tpu.memory_space<vmem>>, vector<8x512xf32>
    %c0_55 = arith.constant 0 : index
    %c0_56 = arith.constant 0 : index
    %183 = vector.load %arg3[%c0_55, %c0_56] : memref<128x512xf32, #tpu.memory_space<vmem>>, vector<128x512xf32>
    %cst_57 = arith.constant dense<0.000000e+00> : vector<8x512xf32>
    %184 = tpu.matmul %176, %183, %cst_57 {dimension_numbers = #tpu.dot_dimension_numbers<[1], [0], [0], [1], [0, 0, 1, 1], [], []>} : vector<8x128xf32>, vector<128x512xf32>, vector<8x512xf32> -> vector<8x512xf32>
    %185 = arith.addf %182, %184 : vector<8x512xf32>
    %186 = vector.extract_strided_slice %185 {offsets = [0, 0], sizes = [8, 128], strides = [1, 1]} : vector<8x512xf32> to vector<8x128xf32>
    %187 = arith.negf %186 : vector<8x128xf32>
    %188 = math.exp %187 : vector<8x128xf32>
    %cst_58 = arith.constant 1.000000e+00 : f32
    %189 = vector.broadcast %cst_58 : f32 to vector<8x128xf32>
    %190 = arith.addf %189, %188 : vector<8x128xf32>
    %191 = arith.divf %189, %190 : vector<8x128xf32>
    %192 = vector.extract_strided_slice %185 {offsets = [0, 128], sizes = [8, 128], strides = [1, 1]} : vector<8x512xf32> to vector<8x128xf32>
    %193 = arith.negf %192 : vector<8x128xf32>
    %194 = math.exp %193 : vector<8x128xf32>
    %cst_59 = arith.constant 1.000000e+00 : f32
    %195 = vector.broadcast %cst_59 : f32 to vector<8x128xf32>
    %196 = arith.addf %195, %194 : vector<8x128xf32>
    %197 = arith.divf %195, %196 : vector<8x128xf32>
    %198 = vector.extract_strided_slice %185 {offsets = [0, 256], sizes = [8, 128], strides = [1, 1]} : vector<8x512xf32> to vector<8x128xf32>
    %199 = math.tanh %198 : vector<8x128xf32>
    %200 = vector.extract_strided_slice %185 {offsets = [0, 384], sizes = [8, 128], strides = [1, 1]} : vector<8x512xf32> to vector<8x128xf32>
    %201 = arith.negf %200 : vector<8x128xf32>
    %202 = math.exp %201 : vector<8x128xf32>
    %cst_60 = arith.constant 1.000000e+00 : f32
    %203 = vector.broadcast %cst_60 : f32 to vector<8x128xf32>
    %204 = arith.addf %203, %202 : vector<8x128xf32>
    %205 = arith.divf %203, %204 : vector<8x128xf32>
    %206 = arith.mulf %197, %174 : vector<8x128xf32>
    %207 = arith.mulf %191, %199 : vector<8x128xf32>
    %208 = arith.addf %206, %207 : vector<8x128xf32>
    %209 = math.tanh %208 : vector<8x128xf32>
    %210 = arith.mulf %205, %209 : vector<8x128xf32>
    %211 = arith.index_cast %180 : i32 to index
    %c0_61 = arith.constant 0 : index
    %212 = vector.load %arg11[%211, %c0_61] : memref<64x128xf32, #tpu.memory_space<vmem>>, vector<8x128xf32>
    tpu.vector_store %arg11[%211, %c0_61], %210 {strides = array<i32>} : memref<64x128xf32, #tpu.memory_space<vmem>>, vector<8x128xf32>,
    %c6_i32 = arith.constant 6 : i32
    %c8_i32_62 = arith.constant 8 : i32
    %213 = arith.muli %c6_i32, %c8_i32_62 : i32
    %214 = tpu.assume_multiple %213, 8 : i32
    %215 = arith.index_cast %214 : i32 to index
    %c0_63 = arith.constant 0 : index
    %216 = vector.load %arg12[%215, %c0_63] : memref<64x512xf32, #tpu.memory_space<vmem>>, vector<8x512xf32>
    %c0_64 = arith.constant 0 : index
    %c0_65 = arith.constant 0 : index
    %217 = vector.load %arg3[%c0_64, %c0_65] : memref<128x512xf32, #tpu.memory_space<vmem>>, vector<128x512xf32>
    %cst_66 = arith.constant dense<0.000000e+00> : vector<8x512xf32>
    %218 = tpu.matmul %210, %217, %cst_66 {dimension_numbers = #tpu.dot_dimension_numbers<[1], [0], [0], [1], [0, 0, 1, 1], [], []>} : vector<8x128xf32>, vector<128x512xf32>, vector<8x512xf32> -> vector<8x512xf32>
    %219 = arith.addf %216, %218 : vector<8x512xf32>
    %220 = vector.extract_strided_slice %219 {offsets = [0, 0], sizes = [8, 128], strides = [1, 1]} : vector<8x512xf32> to vector<8x128xf32>
    %221 = arith.negf %220 : vector<8x128xf32>
    %222 = math.exp %221 : vector<8x128xf32>
    %cst_67 = arith.constant 1.000000e+00 : f32
    %223 = vector.broadcast %cst_67 : f32 to vector<8x128xf32>
    %224 = arith.addf %223, %222 : vector<8x128xf32>
    %225 = arith.divf %223, %224 : vector<8x128xf32>
    %226 = vector.extract_strided_slice %219 {offsets = [0, 128], sizes = [8, 128], strides = [1, 1]} : vector<8x512xf32> to vector<8x128xf32>
    %227 = arith.negf %226 : vector<8x128xf32>
    %228 = math.exp %227 : vector<8x128xf32>
    %cst_68 = arith.constant 1.000000e+00 : f32
    %229 = vector.broadcast %cst_68 : f32 to vector<8x128xf32>
    %230 = arith.addf %229, %228 : vector<8x128xf32>
    %231 = arith.divf %229, %230 : vector<8x128xf32>
    %232 = vector.extract_strided_slice %219 {offsets = [0, 256], sizes = [8, 128], strides = [1, 1]} : vector<8x512xf32> to vector<8x128xf32>
    %233 = math.tanh %232 : vector<8x128xf32>
    %234 = vector.extract_strided_slice %219 {offsets = [0, 384], sizes = [8, 128], strides = [1, 1]} : vector<8x512xf32> to vector<8x128xf32>
    %235 = arith.negf %234 : vector<8x128xf32>
    %236 = math.exp %235 : vector<8x128xf32>
    %cst_69 = arith.constant 1.000000e+00 : f32
    %237 = vector.broadcast %cst_69 : f32 to vector<8x128xf32>
    %238 = arith.addf %237, %236 : vector<8x128xf32>
    %239 = arith.divf %237, %238 : vector<8x128xf32>
    %240 = arith.mulf %231, %208 : vector<8x128xf32>
    %241 = arith.mulf %225, %233 : vector<8x128xf32>
    %242 = arith.addf %240, %241 : vector<8x128xf32>
    %243 = math.tanh %242 : vector<8x128xf32>
    %244 = arith.mulf %239, %243 : vector<8x128xf32>
    %245 = arith.index_cast %214 : i32 to index
    %c0_70 = arith.constant 0 : index
    %246 = vector.load %arg11[%245, %c0_70] : memref<64x128xf32, #tpu.memory_space<vmem>>, vector<8x128xf32>
    tpu.vector_store %arg11[%245, %c0_70], %244 {strides = array<i32>} : memref<64x128xf32, #tpu.memory_space<vmem>>, vector<8x128xf32>,
    %c7_i32 = arith.constant 7 : i32
    %c8_i32_71 = arith.constant 8 : i32
    %247 = arith.muli %c7_i32, %c8_i32_71 : i32
    %248 = tpu.assume_multiple %247, 8 : i32
    %249 = arith.index_cast %248 : i32 to index
    %c0_72 = arith.constant 0 : index
    %250 = vector.load %arg12[%249, %c0_72] : memref<64x512xf32, #tpu.memory_space<vmem>>, vector<8x512xf32>
    %c0_73 = arith.constant 0 : index
    %c0_74 = arith.constant 0 : index
    %251 = vector.load %arg3[%c0_73, %c0_74] : memref<128x512xf32, #tpu.memory_space<vmem>>, vector<128x512xf32>
    %cst_75 = arith.constant dense<0.000000e+00> : vector<8x512xf32>
    %252 = tpu.matmul %244, %251, %cst_75 {dimension_numbers = #tpu.dot_dimension_numbers<[1], [0], [0], [1], [0, 0, 1, 1], [], []>} : vector<8x128xf32>, vector<128x512xf32>, vector<8x512xf32> -> vector<8x512xf32>
    %253 = arith.addf %250, %252 : vector<8x512xf32>
    %254 = vector.extract_strided_slice %253 {offsets = [0, 0], sizes = [8, 128], strides = [1, 1]} : vector<8x512xf32> to vector<8x128xf32>
    %255 = arith.negf %254 : vector<8x128xf32>
    %256 = math.exp %255 : vector<8x128xf32>
    %cst_76 = arith.constant 1.000000e+00 : f32
    %257 = vector.broadcast %cst_76 : f32 to vector<8x128xf32>
    %258 = arith.addf %257, %256 : vector<8x128xf32>
    %259 = arith.divf %257, %258 : vector<8x128xf32>
    %260 = vector.extract_strided_slice %253 {offsets = [0, 128], sizes = [8, 128], strides = [1, 1]} : vector<8x512xf32> to vector<8x128xf32>
    %261 = arith.negf %260 : vector<8x128xf32>
    %262 = math.exp %261 : vector<8x128xf32>
    %cst_77 = arith.constant 1.000000e+00 : f32
    %263 = vector.broadcast %cst_77 : f32 to vector<8x128xf32>
    %264 = arith.addf %263, %262 : vector<8x128xf32>
    %265 = arith.divf %263, %264 : vector<8x128xf32>
    %266 = vector.extract_strided_slice %253 {offsets = [0, 256], sizes = [8, 128], strides = [1, 1]} : vector<8x512xf32> to vector<8x128xf32>
    %267 = math.tanh %266 : vector<8x128xf32>
    %268 = vector.extract_strided_slice %253 {offsets = [0, 384], sizes = [8, 128], strides = [1, 1]} : vector<8x512xf32> to vector<8x128xf32>
    %269 = arith.negf %268 : vector<8x128xf32>
    %270 = math.exp %269 : vector<8x128xf32>
    %cst_78 = arith.constant 1.000000e+00 : f32
    %271 = vector.broadcast %cst_78 : f32 to vector<8x128xf32>
    %272 = arith.addf %271, %270 : vector<8x128xf32>
    %273 = arith.divf %271, %272 : vector<8x128xf32>
    %274 = arith.mulf %265, %242 : vector<8x128xf32>
    %275 = arith.mulf %259, %267 : vector<8x128xf32>
    %276 = arith.addf %274, %275 : vector<8x128xf32>
    %277 = math.tanh %276 : vector<8x128xf32>
    %278 = arith.mulf %273, %277 : vector<8x128xf32>
    %279 = arith.index_cast %248 : i32 to index
    %c0_79 = arith.constant 0 : index
    %280 = vector.load %arg11[%279, %c0_79] : memref<64x128xf32, #tpu.memory_space<vmem>>, vector<8x128xf32>
    tpu.vector_store %arg11[%279, %c0_79], %278 {strides = array<i32>} : memref<64x128xf32, #tpu.memory_space<vmem>>, vector<8x128xf32>,
    %c8_i32_80 = arith.constant 8 : i32
    %c0_81 = arith.constant 0 : index
    %c0_82 = arith.constant 0 : index
    %281 = vector.load %arg11[%c0_81, %c0_82] : memref<64x128xf32, #tpu.memory_space<vmem>>, vector<64x128xf32>
    %c0_83 = arith.constant 0 : index
    %c0_84 = arith.constant 0 : index
    %c0_85 = arith.constant 0 : index
    %282 = vector.load %arg5[%c0_83, %c0_84, %c0_85] : memref<1x128x512xf32, #tpu.memory_space<vmem>>, vector<1x128x512xf32>
    %283 = vector.shape_cast %282 : vector<1x128x512xf32> to vector<128x512xf32>
    %cst_86 = arith.constant dense<0.000000e+00> : vector<64x512xf32>
    %284 = tpu.matmul %281, %283, %cst_86 {dimension_numbers = #tpu.dot_dimension_numbers<[1], [0], [0], [1], [0, 0, 1, 1], [], []>} : vector<64x128xf32>, vector<128x512xf32>, vector<64x512xf32> -> vector<64x512xf32>
    %c0_87 = arith.constant 0 : index
    %c0_88 = arith.constant 0 : index
    %c0_89 = arith.constant 0 : index
    %285 = vector.load %arg7[%c0_87, %c0_88, %c0_89] : memref<1x1x512xf32, #tpu.memory_space<vmem>>, vector<1x1x512xf32>
    %286 = vector.shape_cast %285 : vector<1x1x512xf32> to vector<1x512xf32>
    %287 = vector.broadcast %286 : vector<1x512xf32> to vector<64x512xf32>
    %288 = arith.addf %284, %287 : vector<64x512xf32>
    %c0_90 = arith.constant 0 : index
    %c0_91 = arith.constant 0 : index
    %289 = vector.load %arg12[%c0_90, %c0_91] : memref<64x512xf32, #tpu.memory_space<vmem>>, vector<64x512xf32>
    tpu.vector_store %arg12[%c0_90, %c0_91], %288 {strides = array<i32>} : memref<64x512xf32, #tpu.memory_space<vmem>>, vector<64x512xf32>,
    %cst_92 = arith.constant 0.000000e+00 : f32
    %290 = vector.broadcast %cst_92 : f32 to vector<8x128xf32>
    %c0_i32_93 = arith.constant 0 : i32
    %c0_i32_94 = arith.constant 0 : i32
    %c8_i32_95 = arith.constant 8 : i32
    %291 = arith.muli %c0_i32_94, %c8_i32_95 : i32
    %292 = tpu.assume_multiple %291, 8 : i32
    %293 = arith.index_cast %292 : i32 to index
    %c0_96 = arith.constant 0 : index
    %294 = vector.load %arg12[%293, %c0_96] : memref<64x512xf32, #tpu.memory_space<vmem>>, vector<8x512xf32>
    %295 = arith.index_cast %c0_i32_93 : i32 to index
    %c0_97 = arith.constant 0 : index
    %c0_98 = arith.constant 0 : index
    %296 = vector.load %arg6[%295, %c0_97, %c0_98] : memref<1x128x512xf32, #tpu.memory_space<vmem>>, vector<1x128x512xf32>
    %297 = vector.shape_cast %296 : vector<1x128x512xf32> to vector<128x512xf32>
    %cst_99 = arith.constant dense<0.000000e+00> : vector<8x512xf32>
    %298 = tpu.matmul %290, %297, %cst_99 {dimension_numbers = #tpu.dot_dimension_numbers<[1], [0], [0], [1], [0, 0, 1, 1], [], []>} : vector<8x128xf32>, vector<128x512xf32>, vector<8x512xf32> -> vector<8x512xf32>
    %299 = arith.addf %294, %298 : vector<8x512xf32>
    %300 = vector.extract_strided_slice %299 {offsets = [0, 0], sizes = [8, 128], strides = [1, 1]} : vector<8x512xf32> to vector<8x128xf32>
    %301 = arith.negf %300 : vector<8x128xf32>
    %302 = math.exp %301 : vector<8x128xf32>
    %cst_100 = arith.constant 1.000000e+00 : f32
    %303 = vector.broadcast %cst_100 : f32 to vector<8x128xf32>
    %304 = arith.addf %303, %302 : vector<8x128xf32>
    %305 = arith.divf %303, %304 : vector<8x128xf32>
    %306 = vector.extract_strided_slice %299 {offsets = [0, 128], sizes = [8, 128], strides = [1, 1]} : vector<8x512xf32> to vector<8x128xf32>
    %307 = arith.negf %306 : vector<8x128xf32>
    %308 = math.exp %307 : vector<8x128xf32>
    %cst_101 = arith.constant 1.000000e+00 : f32
    %309 = vector.broadcast %cst_101 : f32 to vector<8x128xf32>
    %310 = arith.addf %309, %308 : vector<8x128xf32>
    %311 = arith.divf %309, %310 : vector<8x128xf32>
    %312 = vector.extract_strided_slice %299 {offsets = [0, 256], sizes = [8, 128], strides = [1, 1]} : vector<8x512xf32> to vector<8x128xf32>
    %313 = math.tanh %312 : vector<8x128xf32>
    %314 = vector.extract_strided_slice %299 {offsets = [0, 384], sizes = [8, 128], strides = [1, 1]} : vector<8x512xf32> to vector<8x128xf32>
    %315 = arith.negf %314 : vector<8x128xf32>
    %316 = math.exp %315 : vector<8x128xf32>
    %cst_102 = arith.constant 1.000000e+00 : f32
    %317 = vector.broadcast %cst_102 : f32 to vector<8x128xf32>
    %318 = arith.addf %317, %316 : vector<8x128xf32>
    %319 = arith.divf %317, %318 : vector<8x128xf32>
    %320 = arith.mulf %311, %290 : vector<8x128xf32>
    %321 = arith.mulf %305, %313 : vector<8x128xf32>
    %322 = arith.addf %320, %321 : vector<8x128xf32>
    %323 = math.tanh %322 : vector<8x128xf32>
    %324 = arith.mulf %319, %323 : vector<8x128xf32>
    %c0_i32_103 = arith.constant 0 : i32
    %325 = arith.cmpi eq, %c0_i32_94, %c0_i32_103 : i32
    %326 = arith.select %325, %324, %290 : vector<8x128xf32>
    %c1_i32_104 = arith.constant 1 : i32
    %c8_i32_105 = arith.constant 8 : i32
    %327 = arith.muli %c1_i32_104, %c8_i32_105 : i32
    %328 = tpu.assume_multiple %327, 8 : i32
    %329 = arith.index_cast %328 : i32 to index
    %c0_106 = arith.constant 0 : index
    %330 = vector.load %arg12[%329, %c0_106] : memref<64x512xf32, #tpu.memory_space<vmem>>, vector<8x512xf32>
    %331 = arith.index_cast %c0_i32_93 : i32 to index
    %c0_107 = arith.constant 0 : index
    %c0_108 = arith.constant 0 : index
    %332 = vector.load %arg6[%331, %c0_107, %c0_108] : memref<1x128x512xf32, #tpu.memory_space<vmem>>, vector<1x128x512xf32>
    %333 = vector.shape_cast %332 : vector<1x128x512xf32> to vector<128x512xf32>
    %cst_109 = arith.constant dense<0.000000e+00> : vector<8x512xf32>
    %334 = tpu.matmul %324, %333, %cst_109 {dimension_numbers = #tpu.dot_dimension_numbers<[1], [0], [0], [1], [0, 0, 1, 1], [], []>} : vector<8x128xf32>, vector<128x512xf32>, vector<8x512xf32> -> vector<8x512xf32>
    %335 = arith.addf %330, %334 : vector<8x512xf32>
    %336 = vector.extract_strided_slice %335 {offsets = [0, 0], sizes = [8, 128], strides = [1, 1]} : vector<8x512xf32> to vector<8x128xf32>
    %337 = arith.negf %336 : vector<8x128xf32>
    %338 = math.exp %337 : vector<8x128xf32>
    %cst_110 = arith.constant 1.000000e+00 : f32
    %339 = vector.broadcast %cst_110 : f32 to vector<8x128xf32>
    %340 = arith.addf %339, %338 : vector<8x128xf32>
    %341 = arith.divf %339, %340 : vector<8x128xf32>
    %342 = vector.extract_strided_slice %335 {offsets = [0, 128], sizes = [8, 128], strides = [1, 1]} : vector<8x512xf32> to vector<8x128xf32>
    %343 = arith.negf %342 : vector<8x128xf32>
    %344 = math.exp %343 : vector<8x128xf32>
    %cst_111 = arith.constant 1.000000e+00 : f32
    %345 = vector.broadcast %cst_111 : f32 to vector<8x128xf32>
    %346 = arith.addf %345, %344 : vector<8x128xf32>
    %347 = arith.divf %345, %346 : vector<8x128xf32>
    %348 = vector.extract_strided_slice %335 {offsets = [0, 256], sizes = [8, 128], strides = [1, 1]} : vector<8x512xf32> to vector<8x128xf32>
    %349 = math.tanh %348 : vector<8x128xf32>
    %350 = vector.extract_strided_slice %335 {offsets = [0, 384], sizes = [8, 128], strides = [1, 1]} : vector<8x512xf32> to vector<8x128xf32>
    %351 = arith.negf %350 : vector<8x128xf32>
    %352 = math.exp %351 : vector<8x128xf32>
    %cst_112 = arith.constant 1.000000e+00 : f32
    %353 = vector.broadcast %cst_112 : f32 to vector<8x128xf32>
    %354 = arith.addf %353, %352 : vector<8x128xf32>
    %355 = arith.divf %353, %354 : vector<8x128xf32>
    %356 = arith.mulf %347, %322 : vector<8x128xf32>
    %357 = arith.mulf %341, %349 : vector<8x128xf32>
    %358 = arith.addf %356, %357 : vector<8x128xf32>
    %359 = math.tanh %358 : vector<8x128xf32>
    %360 = arith.mulf %355, %359 : vector<8x128xf32>
    %c0_i32_113 = arith.constant 0 : i32
    %361 = arith.cmpi eq, %c1_i32_104, %c0_i32_113 : i32
    %362 = arith.select %361, %360, %326 : vector<8x128xf32>
    %c2_i32_114 = arith.constant 2 : i32
    %c8_i32_115 = arith.constant 8 : i32
    %363 = arith.muli %c2_i32_114, %c8_i32_115 : i32
    %364 = tpu.assume_multiple %363, 8 : i32
    %365 = arith.index_cast %364 : i32 to index
    %c0_116 = arith.constant 0 : index
    %366 = vector.load %arg12[%365, %c0_116] : memref<64x512xf32, #tpu.memory_space<vmem>>, vector<8x512xf32>
    %367 = arith.index_cast %c0_i32_93 : i32 to index
    %c0_117 = arith.constant 0 : index
    %c0_118 = arith.constant 0 : index
    %368 = vector.load %arg6[%367, %c0_117, %c0_118] : memref<1x128x512xf32, #tpu.memory_space<vmem>>, vector<1x128x512xf32>
    %369 = vector.shape_cast %368 : vector<1x128x512xf32> to vector<128x512xf32>
    %cst_119 = arith.constant dense<0.000000e+00> : vector<8x512xf32>
    %370 = tpu.matmul %360, %369, %cst_119 {dimension_numbers = #tpu.dot_dimension_numbers<[1], [0], [0], [1], [0, 0, 1, 1], [], []>} : vector<8x128xf32>, vector<128x512xf32>, vector<8x512xf32> -> vector<8x512xf32>
    %371 = arith.addf %366, %370 : vector<8x512xf32>
    %372 = vector.extract_strided_slice %371 {offsets = [0, 0], sizes = [8, 128], strides = [1, 1]} : vector<8x512xf32> to vector<8x128xf32>
    %373 = arith.negf %372 : vector<8x128xf32>
    %374 = math.exp %373 : vector<8x128xf32>
    %cst_120 = arith.constant 1.000000e+00 : f32
    %375 = vector.broadcast %cst_120 : f32 to vector<8x128xf32>
    %376 = arith.addf %375, %374 : vector<8x128xf32>
    %377 = arith.divf %375, %376 : vector<8x128xf32>
    %378 = vector.extract_strided_slice %371 {offsets = [0, 128], sizes = [8, 128], strides = [1, 1]} : vector<8x512xf32> to vector<8x128xf32>
    %379 = arith.negf %378 : vector<8x128xf32>
    %380 = math.exp %379 : vector<8x128xf32>
    %cst_121 = arith.constant 1.000000e+00 : f32
    %381 = vector.broadcast %cst_121 : f32 to vector<8x128xf32>
    %382 = arith.addf %381, %380 : vector<8x128xf32>
    %383 = arith.divf %381, %382 : vector<8x128xf32>
    %384 = vector.extract_strided_slice %371 {offsets = [0, 256], sizes = [8, 128], strides = [1, 1]} : vector<8x512xf32> to vector<8x128xf32>
    %385 = math.tanh %384 : vector<8x128xf32>
    %386 = vector.extract_strided_slice %371 {offsets = [0, 384], sizes = [8, 128], strides = [1, 1]} : vector<8x512xf32> to vector<8x128xf32>
    %387 = arith.negf %386 : vector<8x128xf32>
    %388 = math.exp %387 : vector<8x128xf32>
    %cst_122 = arith.constant 1.000000e+00 : f32
    %389 = vector.broadcast %cst_122 : f32 to vector<8x128xf32>
    %390 = arith.addf %389, %388 : vector<8x128xf32>
    %391 = arith.divf %389, %390 : vector<8x128xf32>
    %392 = arith.mulf %383, %358 : vector<8x128xf32>
    %393 = arith.mulf %377, %385 : vector<8x128xf32>
    %394 = arith.addf %392, %393 : vector<8x128xf32>
    %395 = math.tanh %394 : vector<8x128xf32>
    %396 = arith.mulf %391, %395 : vector<8x128xf32>
    %c0_i32_123 = arith.constant 0 : i32
    %397 = arith.cmpi eq, %c2_i32_114, %c0_i32_123 : i32
    %398 = arith.select %397, %396, %362 : vector<8x128xf32>
    %c3_i32_124 = arith.constant 3 : i32
    %c8_i32_125 = arith.constant 8 : i32
    %399 = arith.muli %c3_i32_124, %c8_i32_125 : i32
    %400 = tpu.assume_multiple %399, 8 : i32
    %401 = arith.index_cast %400 : i32 to index
    %c0_126 = arith.constant 0 : index
    %402 = vector.load %arg12[%401, %c0_126] : memref<64x512xf32, #tpu.memory_space<vmem>>, vector<8x512xf32>
    %403 = arith.index_cast %c0_i32_93 : i32 to index
    %c0_127 = arith.constant 0 : index
    %c0_128 = arith.constant 0 : index
    %404 = vector.load %arg6[%403, %c0_127, %c0_128] : memref<1x128x512xf32, #tpu.memory_space<vmem>>, vector<1x128x512xf32>
    %405 = vector.shape_cast %404 : vector<1x128x512xf32> to vector<128x512xf32>
    %cst_129 = arith.constant dense<0.000000e+00> : vector<8x512xf32>
    %406 = tpu.matmul %396, %405, %cst_129 {dimension_numbers = #tpu.dot_dimension_numbers<[1], [0], [0], [1], [0, 0, 1, 1], [], []>} : vector<8x128xf32>, vector<128x512xf32>, vector<8x512xf32> -> vector<8x512xf32>
    %407 = arith.addf %402, %406 : vector<8x512xf32>
    %408 = vector.extract_strided_slice %407 {offsets = [0, 0], sizes = [8, 128], strides = [1, 1]} : vector<8x512xf32> to vector<8x128xf32>
    %409 = arith.negf %408 : vector<8x128xf32>
    %410 = math.exp %409 : vector<8x128xf32>
    %cst_130 = arith.constant 1.000000e+00 : f32
    %411 = vector.broadcast %cst_130 : f32 to vector<8x128xf32>
    %412 = arith.addf %411, %410 : vector<8x128xf32>
    %413 = arith.divf %411, %412 : vector<8x128xf32>
    %414 = vector.extract_strided_slice %407 {offsets = [0, 128], sizes = [8, 128], strides = [1, 1]} : vector<8x512xf32> to vector<8x128xf32>
    %415 = arith.negf %414 : vector<8x128xf32>
    %416 = math.exp %415 : vector<8x128xf32>
    %cst_131 = arith.constant 1.000000e+00 : f32
    %417 = vector.broadcast %cst_131 : f32 to vector<8x128xf32>
    %418 = arith.addf %417, %416 : vector<8x128xf32>
    %419 = arith.divf %417, %418 : vector<8x128xf32>
    %420 = vector.extract_strided_slice %407 {offsets = [0, 256], sizes = [8, 128], strides = [1, 1]} : vector<8x512xf32> to vector<8x128xf32>
    %421 = math.tanh %420 : vector<8x128xf32>
    %422 = vector.extract_strided_slice %407 {offsets = [0, 384], sizes = [8, 128], strides = [1, 1]} : vector<8x512xf32> to vector<8x128xf32>
    %423 = arith.negf %422 : vector<8x128xf32>
    %424 = math.exp %423 : vector<8x128xf32>
    %cst_132 = arith.constant 1.000000e+00 : f32
    %425 = vector.broadcast %cst_132 : f32 to vector<8x128xf32>
    %426 = arith.addf %425, %424 : vector<8x128xf32>
    %427 = arith.divf %425, %426 : vector<8x128xf32>
    %428 = arith.mulf %419, %394 : vector<8x128xf32>
    %429 = arith.mulf %413, %421 : vector<8x128xf32>
    %430 = arith.addf %428, %429 : vector<8x128xf32>
    %431 = math.tanh %430 : vector<8x128xf32>
    %432 = arith.mulf %427, %431 : vector<8x128xf32>
    %c0_i32_133 = arith.constant 0 : i32
    %433 = arith.cmpi eq, %c3_i32_124, %c0_i32_133 : i32
    %434 = arith.select %433, %432, %398 : vector<8x128xf32>
    %c4_i32_134 = arith.constant 4 : i32
    %c8_i32_135 = arith.constant 8 : i32
    %435 = arith.muli %c4_i32_134, %c8_i32_135 : i32
    %436 = tpu.assume_multiple %435, 8 : i32
    %437 = arith.index_cast %436 : i32 to index
    %c0_136 = arith.constant 0 : index
    %438 = vector.load %arg12[%437, %c0_136] : memref<64x512xf32, #tpu.memory_space<vmem>>, vector<8x512xf32>
    %439 = arith.index_cast %c0_i32_93 : i32 to index
    %c0_137 = arith.constant 0 : index
    %c0_138 = arith.constant 0 : index
    %440 = vector.load %arg6[%439, %c0_137, %c0_138] : memref<1x128x512xf32, #tpu.memory_space<vmem>>, vector<1x128x512xf32>
    %441 = vector.shape_cast %440 : vector<1x128x512xf32> to vector<128x512xf32>
    %cst_139 = arith.constant dense<0.000000e+00> : vector<8x512xf32>
    %442 = tpu.matmul %432, %441, %cst_139 {dimension_numbers = #tpu.dot_dimension_numbers<[1], [0], [0], [1], [0, 0, 1, 1], [], []>} : vector<8x128xf32>, vector<128x512xf32>, vector<8x512xf32> -> vector<8x512xf32>
    %443 = arith.addf %438, %442 : vector<8x512xf32>
    %444 = vector.extract_strided_slice %443 {offsets = [0, 0], sizes = [8, 128], strides = [1, 1]} : vector<8x512xf32> to vector<8x128xf32>
    %445 = arith.negf %444 : vector<8x128xf32>
    %446 = math.exp %445 : vector<8x128xf32>
    %cst_140 = arith.constant 1.000000e+00 : f32
    %447 = vector.broadcast %cst_140 : f32 to vector<8x128xf32>
    %448 = arith.addf %447, %446 : vector<8x128xf32>
    %449 = arith.divf %447, %448 : vector<8x128xf32>
    %450 = vector.extract_strided_slice %443 {offsets = [0, 128], sizes = [8, 128], strides = [1, 1]} : vector<8x512xf32> to vector<8x128xf32>
    %451 = arith.negf %450 : vector<8x128xf32>
    %452 = math.exp %451 : vector<8x128xf32>
    %cst_141 = arith.constant 1.000000e+00 : f32
    %453 = vector.broadcast %cst_141 : f32 to vector<8x128xf32>
    %454 = arith.addf %453, %452 : vector<8x128xf32>
    %455 = arith.divf %453, %454 : vector<8x128xf32>
    %456 = vector.extract_strided_slice %443 {offsets = [0, 256], sizes = [8, 128], strides = [1, 1]} : vector<8x512xf32> to vector<8x128xf32>
    %457 = math.tanh %456 : vector<8x128xf32>
    %458 = vector.extract_strided_slice %443 {offsets = [0, 384], sizes = [8, 128], strides = [1, 1]} : vector<8x512xf32> to vector<8x128xf32>
    %459 = arith.negf %458 : vector<8x128xf32>
    %460 = math.exp %459 : vector<8x128xf32>
    %cst_142 = arith.constant 1.000000e+00 : f32
    %461 = vector.broadcast %cst_142 : f32 to vector<8x128xf32>
    %462 = arith.addf %461, %460 : vector<8x128xf32>
    %463 = arith.divf %461, %462 : vector<8x128xf32>
    %464 = arith.mulf %455, %430 : vector<8x128xf32>
    %465 = arith.mulf %449, %457 : vector<8x128xf32>
    %466 = arith.addf %464, %465 : vector<8x128xf32>
    %467 = math.tanh %466 : vector<8x128xf32>
    %468 = arith.mulf %463, %467 : vector<8x128xf32>
    %c0_i32_143 = arith.constant 0 : i32
    %469 = arith.cmpi eq, %c4_i32_134, %c0_i32_143 : i32
    %470 = arith.select %469, %468, %434 : vector<8x128xf32>
    %c5_i32_144 = arith.constant 5 : i32
    %c8_i32_145 = arith.constant 8 : i32
    %471 = arith.muli %c5_i32_144, %c8_i32_145 : i32
    %472 = tpu.assume_multiple %471, 8 : i32
    %473 = arith.index_cast %472 : i32 to index
    %c0_146 = arith.constant 0 : index
    %474 = vector.load %arg12[%473, %c0_146] : memref<64x512xf32, #tpu.memory_space<vmem>>, vector<8x512xf32>
    %475 = arith.index_cast %c0_i32_93 : i32 to index
    %c0_147 = arith.constant 0 : index
    %c0_148 = arith.constant 0 : index
    %476 = vector.load %arg6[%475, %c0_147, %c0_148] : memref<1x128x512xf32, #tpu.memory_space<vmem>>, vector<1x128x512xf32>
    %477 = vector.shape_cast %476 : vector<1x128x512xf32> to vector<128x512xf32>
    %cst_149 = arith.constant dense<0.000000e+00> : vector<8x512xf32>
    %478 = tpu.matmul %468, %477, %cst_149 {dimension_numbers = #tpu.dot_dimension_numbers<[1], [0], [0], [1], [0, 0, 1, 1], [], []>} : vector<8x128xf32>, vector<128x512xf32>, vector<8x512xf32> -> vector<8x512xf32>
    %479 = arith.addf %474, %478 : vector<8x512xf32>
    %480 = vector.extract_strided_slice %479 {offsets = [0, 0], sizes = [8, 128], strides = [1, 1]} : vector<8x512xf32> to vector<8x128xf32>
    %481 = arith.negf %480 : vector<8x128xf32>
    %482 = math.exp %481 : vector<8x128xf32>
    %cst_150 = arith.constant 1.000000e+00 : f32
    %483 = vector.broadcast %cst_150 : f32 to vector<8x128xf32>
    %484 = arith.addf %483, %482 : vector<8x128xf32>
    %485 = arith.divf %483, %484 : vector<8x128xf32>
    %486 = vector.extract_strided_slice %479 {offsets = [0, 128], sizes = [8, 128], strides = [1, 1]} : vector<8x512xf32> to vector<8x128xf32>
    %487 = arith.negf %486 : vector<8x128xf32>
    %488 = math.exp %487 : vector<8x128xf32>
    %cst_151 = arith.constant 1.000000e+00 : f32
    %489 = vector.broadcast %cst_151 : f32 to vector<8x128xf32>
    %490 = arith.addf %489, %488 : vector<8x128xf32>
    %491 = arith.divf %489, %490 : vector<8x128xf32>
    %492 = vector.extract_strided_slice %479 {offsets = [0, 256], sizes = [8, 128], strides = [1, 1]} : vector<8x512xf32> to vector<8x128xf32>
    %493 = math.tanh %492 : vector<8x128xf32>
    %494 = vector.extract_strided_slice %479 {offsets = [0, 384], sizes = [8, 128], strides = [1, 1]} : vector<8x512xf32> to vector<8x128xf32>
    %495 = arith.negf %494 : vector<8x128xf32>
    %496 = math.exp %495 : vector<8x128xf32>
    %cst_152 = arith.constant 1.000000e+00 : f32
    %497 = vector.broadcast %cst_152 : f32 to vector<8x128xf32>
    %498 = arith.addf %497, %496 : vector<8x128xf32>
    %499 = arith.divf %497, %498 : vector<8x128xf32>
    %500 = arith.mulf %491, %466 : vector<8x128xf32>
    %501 = arith.mulf %485, %493 : vector<8x128xf32>
    %502 = arith.addf %500, %501 : vector<8x128xf32>
    %503 = math.tanh %502 : vector<8x128xf32>
    %504 = arith.mulf %499, %503 : vector<8x128xf32>
    %c0_i32_153 = arith.constant 0 : i32
    %505 = arith.cmpi eq, %c5_i32_144, %c0_i32_153 : i32
    %506 = arith.select %505, %504, %470 : vector<8x128xf32>
    %c6_i32_154 = arith.constant 6 : i32
    %c8_i32_155 = arith.constant 8 : i32
    %507 = arith.muli %c6_i32_154, %c8_i32_155 : i32
    %508 = tpu.assume_multiple %507, 8 : i32
    %509 = arith.index_cast %508 : i32 to index
    %c0_156 = arith.constant 0 : index
    %510 = vector.load %arg12[%509, %c0_156] : memref<64x512xf32, #tpu.memory_space<vmem>>, vector<8x512xf32>
    %511 = arith.index_cast %c0_i32_93 : i32 to index
    %c0_157 = arith.constant 0 : index
    %c0_158 = arith.constant 0 : index
    %512 = vector.load %arg6[%511, %c0_157, %c0_158] : memref<1x128x512xf32, #tpu.memory_space<vmem>>, vector<1x128x512xf32>
    %513 = vector.shape_cast %512 : vector<1x128x512xf32> to vector<128x512xf32>
    %cst_159 = arith.constant dense<0.000000e+00> : vector<8x512xf32>
    %514 = tpu.matmul %504, %513, %cst_159 {dimension_numbers = #tpu.dot_dimension_numbers<[1], [0], [0], [1], [0, 0, 1, 1], [], []>} : vector<8x128xf32>, vector<128x512xf32>, vector<8x512xf32> -> vector<8x512xf32>
    %515 = arith.addf %510, %514 : vector<8x512xf32>
    %516 = vector.extract_strided_slice %515 {offsets = [0, 0], sizes = [8, 128], strides = [1, 1]} : vector<8x512xf32> to vector<8x128xf32>
    %517 = arith.negf %516 : vector<8x128xf32>
    %518 = math.exp %517 : vector<8x128xf32>
    %cst_160 = arith.constant 1.000000e+00 : f32
    %519 = vector.broadcast %cst_160 : f32 to vector<8x128xf32>
    %520 = arith.addf %519, %518 : vector<8x128xf32>
    %521 = arith.divf %519, %520 : vector<8x128xf32>
    %522 = vector.extract_strided_slice %515 {offsets = [0, 128], sizes = [8, 128], strides = [1, 1]} : vector<8x512xf32> to vector<8x128xf32>
    %523 = arith.negf %522 : vector<8x128xf32>
    %524 = math.exp %523 : vector<8x128xf32>
    %cst_161 = arith.constant 1.000000e+00 : f32
    %525 = vector.broadcast %cst_161 : f32 to vector<8x128xf32>
    %526 = arith.addf %525, %524 : vector<8x128xf32>
    %527 = arith.divf %525, %526 : vector<8x128xf32>
    %528 = vector.extract_strided_slice %515 {offsets = [0, 256], sizes = [8, 128], strides = [1, 1]} : vector<8x512xf32> to vector<8x128xf32>
    %529 = math.tanh %528 : vector<8x128xf32>
    %530 = vector.extract_strided_slice %515 {offsets = [0, 384], sizes = [8, 128], strides = [1, 1]} : vector<8x512xf32> to vector<8x128xf32>
    %531 = arith.negf %530 : vector<8x128xf32>
    %532 = math.exp %531 : vector<8x128xf32>
    %cst_162 = arith.constant 1.000000e+00 : f32
    %533 = vector.broadcast %cst_162 : f32 to vector<8x128xf32>
    %534 = arith.addf %533, %532 : vector<8x128xf32>
    %535 = arith.divf %533, %534 : vector<8x128xf32>
    %536 = arith.mulf %527, %502 : vector<8x128xf32>
    %537 = arith.mulf %521, %529 : vector<8x128xf32>
    %538 = arith.addf %536, %537 : vector<8x128xf32>
    %539 = math.tanh %538 : vector<8x128xf32>
    %540 = arith.mulf %535, %539 : vector<8x128xf32>
    %c0_i32_163 = arith.constant 0 : i32
    %541 = arith.cmpi eq, %c6_i32_154, %c0_i32_163 : i32
    %542 = arith.select %541, %540, %506 : vector<8x128xf32>
    %c7_i32_164 = arith.constant 7 : i32
    %c8_i32_165 = arith.constant 8 : i32
    %543 = arith.muli %c7_i32_164, %c8_i32_165 : i32
    %544 = tpu.assume_multiple %543, 8 : i32
    %545 = arith.index_cast %544 : i32 to index
    %c0_166 = arith.constant 0 : index
    %546 = vector.load %arg12[%545, %c0_166] : memref<64x512xf32, #tpu.memory_space<vmem>>, vector<8x512xf32>
    %547 = arith.index_cast %c0_i32_93 : i32 to index
    %c0_167 = arith.constant 0 : index
    %c0_168 = arith.constant 0 : index
    %548 = vector.load %arg6[%547, %c0_167, %c0_168] : memref<1x128x512xf32, #tpu.memory_space<vmem>>, vector<1x128x512xf32>
    %549 = vector.shape_cast %548 : vector<1x128x512xf32> to vector<128x512xf32>
    %cst_169 = arith.constant dense<0.000000e+00> : vector<8x512xf32>
    %550 = tpu.matmul %540, %549, %cst_169 {dimension_numbers = #tpu.dot_dimension_numbers<[1], [0], [0], [1], [0, 0, 1, 1], [], []>} : vector<8x128xf32>, vector<128x512xf32>, vector<8x512xf32> -> vector<8x512xf32>
    %551 = arith.addf %546, %550 : vector<8x512xf32>
    %552 = vector.extract_strided_slice %551 {offsets = [0, 0], sizes = [8, 128], strides = [1, 1]} : vector<8x512xf32> to vector<8x128xf32>
    %553 = arith.negf %552 : vector<8x128xf32>
    %554 = math.exp %553 : vector<8x128xf32>
    %cst_170 = arith.constant 1.000000e+00 : f32
    %555 = vector.broadcast %cst_170 : f32 to vector<8x128xf32>
    %556 = arith.addf %555, %554 : vector<8x128xf32>
    %557 = arith.divf %555, %556 : vector<8x128xf32>
    %558 = vector.extract_strided_slice %551 {offsets = [0, 128], sizes = [8, 128], strides = [1, 1]} : vector<8x512xf32> to vector<8x128xf32>
    %559 = arith.negf %558 : vector<8x128xf32>
    %560 = math.exp %559 : vector<8x128xf32>
    %cst_171 = arith.constant 1.000000e+00 : f32
    %561 = vector.broadcast %cst_171 : f32 to vector<8x128xf32>
    %562 = arith.addf %561, %560 : vector<8x128xf32>
    %563 = arith.divf %561, %562 : vector<8x128xf32>
    %564 = vector.extract_strided_slice %551 {offsets = [0, 256], sizes = [8, 128], strides = [1, 1]} : vector<8x512xf32> to vector<8x128xf32>
    %565 = math.tanh %564 : vector<8x128xf32>
    %566 = vector.extract_strided_slice %551 {offsets = [0, 384], sizes = [8, 128], strides = [1, 1]} : vector<8x512xf32> to vector<8x128xf32>
    %567 = arith.negf %566 : vector<8x128xf32>
    %568 = math.exp %567 : vector<8x128xf32>
    %cst_172 = arith.constant 1.000000e+00 : f32
    %569 = vector.broadcast %cst_172 : f32 to vector<8x128xf32>
    %570 = arith.addf %569, %568 : vector<8x128xf32>
    %571 = arith.divf %569, %570 : vector<8x128xf32>
    %572 = arith.mulf %563, %538 : vector<8x128xf32>
    %573 = arith.mulf %557, %565 : vector<8x128xf32>
    %574 = arith.addf %572, %573 : vector<8x128xf32>
    %575 = math.tanh %574 : vector<8x128xf32>
    %576 = arith.mulf %571, %575 : vector<8x128xf32>
    %c0_i32_173 = arith.constant 0 : i32
    %577 = arith.cmpi eq, %c7_i32_164, %c0_i32_173 : i32
    %578 = arith.select %577, %576, %542 : vector<8x128xf32>
    %c8_i32_174 = arith.constant 8 : i32
    %c0_175 = arith.constant 0 : index
    %c0_176 = arith.constant 0 : index
    %579 = vector.load %arg8[%c0_175, %c0_176] : memref<256x128xf32, #tpu.memory_space<vmem>>, vector<128x128xf32>
    %cst_177 = arith.constant dense<0.000000e+00> : vector<8x128xf32>
    %580 = tpu.matmul %578, %579, %cst_177 {dimension_numbers = #tpu.dot_dimension_numbers<[1], [0], [0], [1], [0, 0, 1, 1], [], []>} : vector<8x128xf32>, vector<128x128xf32>, vector<8x128xf32> -> vector<8x128xf32>
    %c128 = arith.constant 128 : index
    %c0_178 = arith.constant 0 : index
    %581 = vector.load %arg8[%c128, %c0_178] : memref<256x128xf32, #tpu.memory_space<vmem>>, vector<128x128xf32>
    %cst_179 = arith.constant dense<0.000000e+00> : vector<8x128xf32>
    %582 = tpu.matmul %576, %581, %cst_179 {dimension_numbers = #tpu.dot_dimension_numbers<[1], [0], [0], [1], [0, 0, 1, 1], [], []>} : vector<8x128xf32>, vector<128x128xf32>, vector<8x128xf32> -> vector<8x128xf32>
    %583 = arith.addf %580, %582 : vector<8x128xf32>
    %c0_180 = arith.constant 0 : index
    %c0_181 = arith.constant 0 : index
    %584 = vector.load %arg9[%c0_180, %c0_181] : memref<1x128xf32, #tpu.memory_space<vmem>>, vector<1x128xf32>
    %585 = vector.broadcast %584 : vector<1x128xf32> to vector<8x128xf32>
    %586 = arith.addf %583, %585 : vector<8x128xf32>
    %c0_182 = arith.constant 0 : index
    %c0_183 = arith.constant 0 : index
    %587 = vector.load %arg10[%c0_182, %c0_183] : memref<8x128xf32, #tpu.memory_space<vmem>>, vector<8x128xf32>
    tpu.vector_store %arg10[%c0_182, %c0_183], %586 {strides = array<i32>} : memref<8x128xf32, #tpu.memory_space<vmem>>, vector<8x128xf32>,
    return
  }
  func.func @transform_0(%arg0: i32) -> (i32, i32, i32) {
    %c0_i32 = arith.constant 0 : i32
    %c0_i32_0 = arith.constant 0 : i32
    %c0_i32_1 = arith.constant 0 : i32
    return %c0_i32, %arg0, %c0_i32_0 : i32, i32, i32
  }
  func.func @transform_1(%arg0: i32) -> (i32, i32) {
    %c0_i32 = arith.constant 0 : i32
    %c0_i32_0 = arith.constant 0 : i32
    %c0_i32_1 = arith.constant 0 : i32
    return %c0_i32, %c0_i32_0 : i32, i32
  }
  func.func @transform_2(%arg0: i32) -> (i32, i32) {
    %c0_i32 = arith.constant 0 : i32
    %c0_i32_0 = arith.constant 0 : i32
    %c0_i32_1 = arith.constant 0 : i32
    return %c0_i32, %c0_i32_0 : i32, i32
  }
  func.func @transform_3(%arg0: i32) -> (i32, i32) {
    %c0_i32 = arith.constant 0 : i32
    %c0_i32_0 = arith.constant 0 : i32
    %c0_i32_1 = arith.constant 0 : i32
    return %c0_i32, %c0_i32_0 : i32, i32
  }
  func.func @transform_4(%arg0: i32) -> (i32, i32, i32) {
    %c0_i32 = arith.constant 0 : i32
    %c0_i32_0 = arith.constant 0 : i32
    %c0_i32_1 = arith.constant 0 : i32
    %c0_i32_2 = arith.constant 0 : i32
    return %c0_i32, %c0_i32_0, %c0_i32_1 : i32, i32, i32
  }
  func.func @transform_5(%arg0: i32) -> (i32, i32, i32) {
    %c0_i32 = arith.constant 0 : i32
    %c0_i32_0 = arith.constant 0 : i32
    %c0_i32_1 = arith.constant 0 : i32
    %c0_i32_2 = arith.constant 0 : i32
    return %c0_i32, %c0_i32_0, %c0_i32_1 : i32, i32, i32
  }
  func.func @transform_6(%arg0: i32) -> (i32, i32, i32) {
    %c0_i32 = arith.constant 0 : i32
    %c0_i32_0 = arith.constant 0 : i32
    %c0_i32_1 = arith.constant 0 : i32
    %c0_i32_2 = arith.constant 0 : i32
    return %c0_i32, %c0_i32_0, %c0_i32_1 : i32, i32, i32
  }
  func.func @transform_7(%arg0: i32) -> (i32, i32) {
    %c0_i32 = arith.constant 0 : i32
    %c0_i32_0 = arith.constant 0 : i32
    %c0_i32_1 = arith.constant 0 : i32
    return %c0_i32, %c0_i32_0 : i32, i32
  }
  func.func @transform_8(%arg0: i32) -> (i32, i32) {
    %c0_i32 = arith.constant 0 : i32
    %c0_i32_0 = arith.constant 0 : i32
    %c0_i32_1 = arith.constant 0 : i32
    return %c0_i32, %c0_i32_0 : i32, i32
  }
  func.func @transform_9(%arg0: i32) -> (i32, i32) {
    %c0_i32 = arith.constant 0 : i32
    %c0_i32_0 = arith.constant 0 : i32
    return %arg0, %c0_i32 : i32, i32
  }
}

</mosaic_0001>

<bundles_post_ra>
// kernel: tpu_custom_call.1
= control target key start
LH: loop header
LB: loop body
LE: loop exit
PB: predicated region body
PF: predicated region fallthrough
CT: control target
= control target key end

     0   :  { %14 = vsyncpa [#allocation5], 0  ;;  %s7119_s0 = inlined_call_operand.hbm [shape: f32[8,8,32], index: 0, kind: input, shape index: {}]   ;;  %s7120_s1 = inlined_call_operand.hbm [shape: f32[32,512], index: 1, kind: input, shape index: {}]   ;;  %s7121_s2 = inlined_call_operand.hbm [shape: f32[128,512], index: 2, kind: input, shape index: {}]   ;;  %s7122_s3 = inlined_call_operand.vmem [shape: f32[1,512], index: 3, kind: input, shape index: {}]   ;;  %s7123_s4 = inlined_call_operand.hbm [shape: f32[1,128,512], index: 4, kind: input, shape index: {}]   ;;  %s7124_s5 = inlined_call_operand.hbm [shape: f32[1,128,512], index: 5, kind: input, shape index: {}]   ;;  %s7125_s6 = inlined_call_operand.vmem [shape: f32[1,1,512], index: 6, kind: input, shape index: {}]   ;;  %s7126_s7 = inlined_call_operand.hbm [shape: f32[256,128], index: 7, kind: input, shape index: {}]   ;;  %s7127_s8 = inlined_call_operand.vmem [shape: f32[1,128], index: 8, kind: input, shape index: {}]   ;;  %s7128_s9 = inlined_call_operand.hbm [shape: f32[8,128], index: 9, kind: output, shape index: {}]  }
   0x1   :  { %15 = vsyncpa [#allocation8], 0 }
   0x2   :  { %16 = vsyncpa [#allocation11], 0 }
   0x3   :  { %17 = vsyncpa [#allocation14], 0 }
   0x4   :  { %18 = vsyncpa [#allocation6], 0  ;;  %s5053_s30 = smov [#allocation7]  }
   0x5   :  { %s36_s10 = sshll.u32 %s5053_s30, 4  ;;  %s37_s10 = int_to_ptr.vmem [resolvable:$true] %s36_s10 }
   0x6   :  { %s4911_s11 = scalar_lea.vmem %s37_s10, 2048  ;;  %p4916_p1 = scmp.lt.s32.totalorder %s37_s10, %s37_s10 }
   0x7   :  { %p4912_p0 = scmp.ne.s32.totalorder %s37_s10, %s4911_s11  ;;  %p4917_p2 = scmp.lt.s32.totalorder %s4911_s11, %s4911_s11 }
   0x9   :  { %p4918_p3 = por %p4917_p2, %p4916_p1 }
   0xb   :  { %p4919_p4 = pnand %p4918_p3, %p4912_p0 }
   0xd   :  { %4922 = shalt.err (!%p4919_p4)
}
   0xe   :  { %s5054_s12 = smov 512   ;;  %s5055_s13 = smov 32  }
   0xf   :  { %42 = dma.hbm_to_vmem [thread:$0]  %s7120_s1, 2048, %s37_s10, [#allocation8], %s5054_s12, %s5054_s12, %s5055_s13  }
  0x10   :  { %s5056_s16 = smov [#allocation10]   ;;  %s5057_s18 = smov [#allocation4]  }
  0x11   :  { %s62_s17 = sshll.u32 %s5056_s16, 4  ;;  %s24_s19 = sshll.u32 %s5057_s18, 4  ;;  %s63_s17 = int_to_ptr.vmem [resolvable:$true] %s62_s17  ;;  %s25_s19 = int_to_ptr.vmem [resolvable:$true] %s24_s19 }
  0x12   :  { %s4931_s20 = scalar_lea.vmem %s63_s17, 8192  ;;  %p4936_p6 = scmp.lt.s32.totalorder %s63_s17, %s63_s17 }
  0x13   :  { %p4932_p5 = scmp.ne.s32.totalorder %s63_s17, %s4931_s20  ;;  %p4937_p7 = scmp.lt.s32.totalorder %s4931_s20, %s4931_s20 }
  0x15   :  { %p4938_p8 = por %p4937_p7, %p4936_p6 }
  0x17   :  { %p4939_p9 = pnand %p4938_p8, %p4932_p5 }
  0x19   :  { %4942 = shalt.err (!%p4939_p9)
}
  0x1a   :  { %68 = dma.hbm_to_vmem [thread:$0]  %s7123_s4, 8192, %s63_s17, [#allocation11], %s5054_s12, %s5054_s12, %s5055_s13  }
  0x1b   :  { %s4951_s1 = scalar_lea.vmem %s25_s19, 1024  ;;  %p4956_p11 = scmp.lt.s32.totalorder %s25_s19, %s25_s19 }
  0x1c   :  { %p4952_p10 = scmp.ne.s32.totalorder %s25_s19, %s4951_s1  ;;  %p4957_p12 = scmp.lt.s32.totalorder %s4951_s1, %s4951_s1 }
  0x1e   :  { %p4958_p13 = por %p4957_p12, %p4956_p11 }
  0x20   :  { %p4959_p0 = pnand %p4958_p13, %p4952_p10 }
  0x22   :  { %4962 = shalt.err (!%p4959_p0)
}
  0x23   :  { %s5058_s23 = smov 128   ;;  %s5059_s24 = smov 8  }
  0x24   :  { %30 = dma.hbm_to_vmem [thread:$0]  %s7119_s0, 1024, %s25_s19, [#allocation5], %s5058_s23, %s5058_s23, %s5059_s24  }
  0x25   :  { %s5060_s27 = smov [#allocation9]   ;;  %s5061_s4 = smov [#allocation12]  }
  0x26   :  { %s48_s28 = sshll.u32 %s5060_s27, 4  ;;  %s74_s29 = sshll.u32 %s5061_s4, 4  ;;  %s49_s28 = int_to_ptr.vmem [resolvable:$true] %s48_s28  ;;  %s75_s29 = int_to_ptr.vmem [resolvable:$true] %s74_s29 }
  0x27   :  { %s4971_s30 = scalar_lea.vmem %s49_s28, 8192  ;;  %p4976_p2 = scmp.lt.s32.totalorder %s49_s28, %s49_s28 }
  0x28   :  { %p4972_p1 = scmp.ne.s32.totalorder %s49_s28, %s4971_s30  ;;  %p4977_p3 = scmp.lt.s32.totalorder %s4971_s30, %s4971_s30 }
  0x2a   :  { %p4978_p4 = por %p4977_p3, %p4976_p2 }
  0x2c   :  { %p4979_p5 = pnand %p4978_p4, %p4972_p1 }
  0x2e   :  { %4982 = shalt.err (!%p4979_p5)
}
  0x2f   :  { %54 = dma.hbm_to_vmem [thread:$0]  %s7121_s2, 8192, %s49_s28, [#allocation8], %s5054_s12, %s5054_s12, %s5055_s13  }
  0x30   :  { %s4991_s0 = scalar_lea.vmem %s75_s29, 8192  ;;  %p4996_p7 = scmp.lt.s32.totalorder %s75_s29, %s75_s29 }
  0x31   :  { %p4992_p6 = scmp.ne.s32.totalorder %s75_s29, %s4991_s0  ;;  %p4997_p8 = scmp.lt.s32.totalorder %s4991_s0, %s4991_s0 }
  0x33   :  { %p4998_p9 = por %p4997_p8, %p4996_p7 }
  0x35   :  { %p4999_p10 = pnand %p4998_p9, %p4992_p6 }
  0x37   :  { %5002 = shalt.err (!%p4999_p10)
}
  0x38   :  { %80 = dma.hbm_to_vmem [thread:$0]  %s7124_s5, 8192, %s75_s29, [#allocation11], %s5054_s12, %s5054_s12, %s5055_s13  }
  0x39   :  { %s5062_s16 = smov [#allocation13]  }
  0x3a   :  { %s88_s17 = sshll.u32 %s5062_s16, 4  ;;  %s89_s17 = int_to_ptr.vmem [resolvable:$true] %s88_s17 }
  0x3b   :  { %s5011_s18 = scalar_lea.vmem %s89_s17, 4096  ;;  %p5016_p12 = scmp.lt.s32.totalorder %s89_s17, %s89_s17 }
  0x3c   :  { %p5012_p11 = scmp.ne.s32.totalorder %s89_s17, %s5011_s18  ;;  %p5017_p13 = scmp.lt.s32.totalorder %s5011_s18, %s5011_s18 }
  0x3e   :  { %p5018_p0 = por %p5017_p13, %p5016_p12 }
  0x40   :  { %p5019_p1 = pnand %p5018_p0, %p5012_p11 }
  0x42   :  { %5022 = shalt.err (!%p5019_p1)
}
  0x43   :  { %94 = dma.hbm_to_vmem [thread:$0]  %s7126_s7, 4096, %s89_s17, [#allocation14], %s5058_s23, %s5058_s23, %s5059_s24  }
  0x44   :  { %5043 = dma.done.wait [#allocation5], 1024  }
  0x45   :  { %5044 = vsyncadd [#allocation5], 4294966272 }
  0x46   :  { %5045 = dma.done.wait [#allocation8], 10240  }
  0x47   :  { %5046 = vsyncadd [#allocation8], 4294957056 }
  0x48   :  { %5047 = dma.done.wait [#allocation11], 16384  }
  0x49   :  { %5048 = vsyncadd [#allocation11], 4294950912 }
  0x4a   :  { %5049 = dma.done.wait [#allocation14], 4096  }
  0x4b   :  { %5050 = vsyncadd [#allocation14], 4294963200  ;;  %v7129_v0 = vmov 0.0   ;;  %v136_v1 = vld [vmem:[#allocation7 + $0x68] sm:$0xff]  ;;  %v138_v2 = vld [vmem:[#allocation7 + $0x78] sm:$0xff]  ;;  %vm161_vm0 = vcmask 261120  }
  0x4c   :  { %250 = vmatprep.mubr.f32.mxu0 %v7129_v0  ;;  %363 = vmatprep.mubr.f32.mxu1 %v7129_v0  ;;  %v135_v3 = vld [vmem:[#allocation7 + $0x60] sm:$0xff]  ;;  %v137_v4 = vld [vmem:[#allocation7 + $0x70] sm:$0xff]  ;;  %v132_v5 = vld [vmem:[#allocation7 + $0x48] sm:$0xff]  ;;  %vm5064_vm1 = vmmov 0   ;;  %s5065_s20 = smov [#allocation15]  }
  0x4d   :  { %210 = vmatprep.subr.mxu0 %v136_v1  ;;  %323 = vmatprep.subr.mxu1 %v138_v2  ;;  %v134_v6 = vld [vmem:[#allocation7 + $0x58] sm:$0xff]  ;;  %v131_v7 = vld [vmem:[#allocation7 + $0x40] sm:$0xff]  ;;  %v133_v8 = vld [vmem:[#allocation7 + $0x50] sm:$0xff]  ;;  %s4382_s21 = sshll.u32 %s5065_s20, 4  ;;  %s4383_s21 = int_to_ptr.vmem [resolvable:$true] %s4382_s21 }
  0x4e   :  { %211 = vmatpush1.msra.mxu0 %v135_v3  ;;  %324 = vmatpush1.msra.mxu1 %v137_v4  ;;  %v128_v9 = vld [vmem:[#allocation7 + $0x28] sm:$0xff]  ;;  %v130_v10 = vld [vmem:[#allocation7 + $0x38] sm:$0xff]  ;;  %v127_v11 = vld [vmem:[#allocation7 + $0x20] sm:$0xff]  ;;  %s5023_s22 = scalar_lea.vmem %s4383_s21, 128  ;;  %p5028_p3 = scmp.lt.s32.totalorder %s4383_s21, %s4383_s21 }
  0x4f   :  { %212 = vmatprep.subr.mxu0 %v132_v5  ;;  %325 = vmatprep.subr.mxu1 %v134_v6  ;;  %v129_v12 = vld [vmem:[#allocation7 + $0x30] sm:$0xff]  ;;  %v124_v13 = vld [vmem:[#allocation7 + $0x8] sm:$0xff]  ;;  %v126_v14 = vld [vmem:[#allocation7 + $0x18] sm:$0xff]  ;;  %p5024_p2 = scmp.ne.s32.totalorder %s4383_s21, %s5023_s22  ;;  %p5029_p4 = scmp.lt.s32.totalorder %s5023_s22, %s5023_s22 }
  0x50   :  { %213 = vmatpush1.msra.mxu0 %v131_v7  ;;  %326 = vmatpush1.msra.mxu1 %v133_v8  ;;  %v123_v15 = vld [vmem:[#allocation7] sm:$0xff]  ;;  %v125_v16 = vld [vmem:[#allocation7 + $0x10] sm:$0xff]  ;;  %v5154_v18 = vld [vmem:[#allocation9 + $0x1e8] sm:$0xff] }
  0x51   :  { %214 = vmatprep.subr.mxu0 %v128_v9  ;;  %327 = vmatprep.subr.mxu1 %v130_v10  ;;  %v115_v17 = vld [vmem:[#allocation4] sm:$0xff]  ;;  %v5156_v19 = vld [vmem:[#allocation9 + $0x1f8] sm:$0xff]  ;;  %v5160_v21 = vld [vmem:[#allocation9 + $0x1f0] sm:$0xff]  ;;  %p5030_p5 = por %p5029_p4, %p5028_p3 }
  0x52   :  { %215 = vmatpush1.msra.mxu0 %v127_v11  ;;  %328 = vmatpush1.msra.mxu1 %v129_v12  ;;  %v5158_v20 = vld [vmem:[#allocation9 + $0x1e0] sm:$0xff]  ;;  %v5164_v22 = vld [vmem:[#allocation9 + $0x1c8] sm:$0xff]  ;;  %v5166_v23 = vld [vmem:[#allocation9 + $0x1d8] sm:$0xff] }
  0x53   :  { %216 = vmatprep.subr.mxu0 %v124_v13  ;;  %329 = vmatprep.subr.mxu1 %v126_v14  ;;  %v5172_v24 = vld [vmem:[#allocation9 + $0x1c0] sm:$0xff]  ;;  %v5174_v25 = vld [vmem:[#allocation9 + $0x1d0] sm:$0xff]  ;;  %v116_v26 = vld [vmem:[#allocation4 + $0x8] sm:$0xff]  ;;  %p5031_p6 = pnand %p5030_p5, %p5024_p2 }
  0x54   :  { %217 = vmatpush1.msra.mxu0 %v123_v15  ;;  %330 = vmatpush1.msra.mxu1 %v125_v16  ;;  %v5180_v27 = vld [vmem:[#allocation9 + $0x1a8] sm:$0xff]  ;;  %v5182_v28 = vld [vmem:[#allocation9 + $0x1b8] sm:$0xff]  ;;  %v5186_v29 = vld [vmem:[#allocation9 + $0x1a0] sm:$0xff] }
  0x55   :  { %4401 = vmatmul.mubr.msk.f32.vlgmr.msra.gmra.mxu0 %vm161_vm0, %v115_v17  ;;  %4409 = vmatmul.mubr.msk.f32.vlgmr.msra.gmra.mxu1 %vm161_vm0, %v115_v17  ;;  %v5188_v30 = vld [vmem:[#allocation9 + $0x1b0] sm:$0xff]  ;;  %v5192_v31 = vld [vmem:[#allocation9 + $0x188] sm:$0xff]  ;;  %v5194_v32 = vld [vmem:[#allocation9 + $0x198] sm:$0xff] }
  0x56   :  { %515 = vmatprep.subr.mxu0 %v5154_v18  ;;  %586 = vmatprep.subr.mxu1 %v5156_v19  ;;  %v5200_v33 = vld [vmem:[#allocation9 + $0x180] sm:$0xff]  ;;  %v5202_v34 = vld [vmem:[#allocation9 + $0x190] sm:$0xff]  ;;  %v5208_v36 = vld [vmem:[#allocation9 + $0x168] sm:$0xff] }
  0x57   :  { %516 = vmatpush1.msra.mxu0 %v5158_v20  ;;  %587 = vmatpush1.msra.mxu1 %v5160_v21  ;;  %v117_v35 = vld [vmem:[#allocation4 + $0x10] sm:$0xff]  ;;  %v5210_v37 = vld [vmem:[#allocation9 + $0x178] sm:$0xff]  ;;  %v5214_v38 = vld [vmem:[#allocation9 + $0x160] sm:$0xff] }
  0x58   :  { %517 = vmatprep.subr.mxu0 %v5164_v22  ;;  %588 = vmatprep.subr.mxu1 %v5166_v23  ;;  %v5216_v39 = vld [vmem:[#allocation9 + $0x170] sm:$0xff]  ;;  %v5220_v40 = vld [vmem:[#allocation9 + $0x148] sm:$0xff]  ;;  %v5222_v41 = vld [vmem:[#allocation9 + $0x158] sm:$0xff] }
  0x59   :  { %256 = vmatprep.mubr.f32.mxu0 %v7129_v0  ;;  %369 = vmatprep.mubr.f32.mxu1 %v7129_v0  ;;  %v5228_v42 = vld [vmem:[#allocation9 + $0x140] sm:$0xff]  ;;  %v5230_v43 = vld [vmem:[#allocation9 + $0x150] sm:$0xff]  ;;  %v118_v44 = vld [vmem:[#allocation4 + $0x18] sm:$0xff] }
  0x5a   :  { %518 = vmatpush1.msra.mxu0 %v5172_v24  ;;  %589 = vmatpush1.msra.mxu1 %v5174_v25  ;;  %v5236_v45 = vld [vmem:[#allocation9 + $0x128] sm:$0xff]  ;;  %v5238_v46 = vld [vmem:[#allocation9 + $0x138] sm:$0xff]  ;;  %v5242_v47 = vld [vmem:[#allocation9 + $0x120] sm:$0xff] }
  0x5b   :  { %4402 = vmatmul.mubr.msk.f32.gmra.mxu0 %vm161_vm0, %v116_v26  ;;  %4410 = vmatmul.mubr.msk.f32.gmra.mxu1 %vm161_vm0, %v116_v26  ;;  %v5244_v48 = vld [vmem:[#allocation9 + $0x130] sm:$0xff]  ;;  %v5248_v49 = vld [vmem:[#allocation9 + $0x108] sm:$0xff]  ;;  %v5250_v50 = vld [vmem:[#allocation9 + $0x118] sm:$0xff] }
  0x5c   :  { %519 = vmatprep.subr.mxu0 %v5180_v27  ;;  %590 = vmatprep.subr.mxu1 %v5182_v28  ;;  %v5256_v51 = vld [vmem:[#allocation9 + $0x100] sm:$0xff]  ;;  %v5258_v52 = vld [vmem:[#allocation9 + $0x110] sm:$0xff]  ;;  %v5264_v54 = vld [vmem:[#allocation9 + $0xe8] sm:$0xff] }
  0x5d   :  { %520 = vmatpush1.msra.mxu0 %v5186_v29  ;;  %591 = vmatpush1.msra.mxu1 %v5188_v30  ;;  %v119_v53 = vld [vmem:[#allocation4 + $0x20] sm:$0xff]  ;;  %v5266_v55 = vld [vmem:[#allocation9 + $0xf8] sm:$0xff]  ;;  %v5272_v57 = vld [vmem:[#allocation9 + $0xf0] sm:$0xff] }
  0x5e   :  { %521 = vmatprep.subr.mxu0 %v5192_v31  ;;  %592 = vmatprep.subr.mxu1 %v5194_v32  ;;  %v5270_v56 = vld [vmem:[#allocation9 + $0xe0] sm:$0xff]  ;;  %v5276_v58 = vld [vmem:[#allocation9 + $0xc8] sm:$0xff]  ;;  %v5278_v59 = vld [vmem:[#allocation9 + $0xd8] sm:$0xff] }
  0x5f   :  { %262 = vmatprep.mubr.f32.mxu0 %v7129_v0  ;;  %375 = vmatprep.mubr.f32.mxu1 %v7129_v0  ;;  %v5284_v60 = vld [vmem:[#allocation9 + $0xc0] sm:$0xff]  ;;  %v5286_v61 = vld [vmem:[#allocation9 + $0xd0] sm:$0xff]  ;;  %v120_v62 = vld [vmem:[#allocation4 + $0x28] sm:$0xff] }
  0x60   :  { %522 = vmatpush1.msra.mxu0 %v5200_v33  ;;  %593 = vmatpush1.msra.mxu1 %v5202_v34  ;;  %v5292_v63 = vld [vmem:[#allocation9 + $0xa8] sm:$0xff]  ;;  %v5294_v1 = vld [vmem:[#allocation9 + $0xb8] sm:$0xff]  ;;  %v5298_v2 = vld [vmem:[#allocation9 + $0xa0] sm:$0xff] }
  0x61   :  { %4403 = vmatmul.mubr.msk.f32.gmra.mxu0 %vm161_vm0, %v117_v35  ;;  %4411 = vmatmul.mubr.msk.f32.gmra.mxu1 %vm161_vm0, %v117_v35  ;;  %v5300_v3 = vld [vmem:[#allocation9 + $0xb0] sm:$0xff]  ;;  %v5304_v4 = vld [vmem:[#allocation9 + $0x88] sm:$0xff]  ;;  %v5306_v5 = vld [vmem:[#allocation9 + $0x98] sm:$0xff] }
  0x62   :  { %523 = vmatprep.subr.mxu0 %v5208_v36  ;;  %594 = vmatprep.subr.mxu1 %v5210_v37  ;;  %7311 = vst [vmem:[#allocation21_spill] sm:$0xff] %v5300_v3  ;;  %7312 = vst [vmem:[#allocation22_spill] sm:$0xff] %v5304_v4  ;;  %v5312_v6 = vld [vmem:[#allocation9 + $0x80] sm:$0xff]  ;;  %v5314_v7 = vld [vmem:[#allocation9 + $0x90] sm:$0xff] }
  0x63   :  { %524 = vmatpush1.msra.mxu0 %v5214_v38  ;;  %595 = vmatpush1.msra.mxu1 %v5216_v39  ;;  %7313 = vst [vmem:[#allocation23_spill] sm:$0xff] %v5306_v5  ;;  %7314 = vst [vmem:[#allocation24_spill] sm:$0xff] %v5312_v6  ;;  %v121_v8 = vld [vmem:[#allocation4 + $0x30] sm:$0xff]  ;;  %v5320_v9 = vld [vmem:[#allocation9 + $0x68] sm:$0xff] }
  0x64   :  { %525 = vmatprep.subr.mxu0 %v5220_v40  ;;  %596 = vmatprep.subr.mxu1 %v5222_v41  ;;  %7315 = vst [vmem:[#allocation25_spill] sm:$0xff] %v5314_v7  ;;  %7316 = vst [vmem:[#allocation26_spill] sm:$0xff] %v5320_v9  ;;  %v5322_v10 = vld [vmem:[#allocation9 + $0x78] sm:$0xff]  ;;  %v5326_v11 = vld [vmem:[#allocation9 + $0x60] sm:$0xff] }
  0x65   :  { %268 = vmatprep.mubr.f32.mxu0 %v7129_v0  ;;  %381 = vmatprep.mubr.f32.mxu1 %v7129_v0  ;;  %7317 = vst [vmem:[#allocation27_spill] sm:$0xff] %v5322_v10  ;;  %7318 = vst [vmem:[#allocation28_spill] sm:$0xff] %v5326_v11  ;;  %v5328_v12 = vld [vmem:[#allocation9 + $0x70] sm:$0xff]  ;;  %v5332_v13 = vld [vmem:[#allocation9 + $0x48] sm:$0xff] }
  0x66   :  { %526 = vmatpush1.msra.mxu0 %v5228_v42  ;;  %597 = vmatpush1.msra.mxu1 %v5230_v43  ;;  %7319 = vst [vmem:[#allocation29_spill] sm:$0xff] %v5328_v12  ;;  %7320 = vst [vmem:[#allocation30_spill] sm:$0xff] %v5332_v13  ;;  %v5334_v14 = vld [vmem:[#allocation9 + $0x58] sm:$0xff]  ;;  %v5340_v15 = vld [vmem:[#allocation9 + $0x40] sm:$0xff] }
  0x67   :  { %4404 = vmatmul.mubr.msk.f32.gmra.mxu0 %vm161_vm0, %v118_v44  ;;  %4412 = vmatmul.mubr.msk.f32.gmra.mxu1 %vm161_vm0, %v118_v44  ;;  %7321 = vst [vmem:[#allocation31_spill] sm:$0xff] %v5334_v14  ;;  %7322 = vst [vmem:[#allocation32_spill] sm:$0xff] %v5340_v15  ;;  %v5342_v16 = vld [vmem:[#allocation9 + $0x50] sm:$0xff]  ;;  %v122_v17 = vld [vmem:[#allocation4 + $0x38] sm:$0xff] }
  0x68   :  { %527 = vmatprep.subr.mxu0 %v5236_v45  ;;  %598 = vmatprep.subr.mxu1 %v5238_v46  ;;  %7323 = vst [vmem:[#allocation33_spill] sm:$0xff] %v5342_v16  ;;  %v5348_v26 = vld [vmem:[#allocation9 + $0x28] sm:$0xff]  ;;  %v5350_v35 = vld [vmem:[#allocation9 + $0x38] sm:$0xff]  ;;  %v5354_v44 = vld [vmem:[#allocation9 + $0x20] sm:$0xff] }
  0x69   :  { %528 = vmatpush1.msra.mxu0 %v5242_v47  ;;  %599 = vmatpush1.msra.mxu1 %v5244_v48  ;;  %7324 = vst [vmem:[#allocation34_spill] sm:$0xff] %v5348_v26  ;;  %7325 = vst [vmem:[#allocation35_spill] sm:$0xff] %v5350_v35 }
  0x6a   :  { %529 = vmatprep.subr.mxu0 %v5248_v49  ;;  %600 = vmatprep.subr.mxu1 %v5250_v50  ;;  %7326 = vst [vmem:[#allocation36_spill] sm:$0xff] %v5354_v44 }
  0x6b   :  { %274 = vmatprep.mubr.f32.mxu0 %v7129_v0  ;;  %387 = vmatprep.mubr.f32.mxu1 %v7129_v0 }
  0x6c   :  { %530 = vmatpush1.msra.mxu0 %v5256_v51  ;;  %601 = vmatpush1.msra.mxu1 %v5258_v52 }
  0x6d   :  { %4405 = vmatmul.mubr.msk.f32.gmra.mxu0 %vm161_vm0, %v119_v53  ;;  %4413 = vmatmul.mubr.msk.f32.gmra.mxu1 %vm161_vm0, %v119_v53  ;;  %v5356_v53 = vld [vmem:[#allocation9 + $0x30] sm:$0xff] }
  0x6e   :  { %531 = vmatprep.subr.mxu0 %v5264_v54  ;;  %602 = vmatprep.subr.mxu1 %v5266_v55  ;;  %7327 = vst [vmem:[#allocation37_spill] sm:$0xff] %v5356_v53 }
  0x6f   :  { %532 = vmatpush1.msra.mxu0 %v5270_v56  ;;  %603 = vmatpush1.msra.mxu1 %v5272_v57 }
  0x70   :  { %533 = vmatprep.subr.mxu0 %v5276_v58  ;;  %604 = vmatprep.subr.mxu1 %v5278_v59 }
  0x71   :  { %280 = vmatprep.mubr.f32.mxu0 %v7129_v0  ;;  %393 = vmatprep.mubr.f32.mxu1 %v7129_v0 }
  0x72   :  { %534 = vmatpush1.msra.mxu0 %v5284_v60  ;;  %605 = vmatpush1.msra.mxu1 %v5286_v61 }
  0x73   :  { %4406 = vmatmul.mubr.msk.f32.gmra.mxu0 %vm161_vm0, %v120_v62  ;;  %4414 = vmatmul.mubr.msk.f32.gmra.mxu1 %vm161_vm0, %v120_v62  ;;  %v5360_v62 = vld [vmem:[#allocation9 + $0x8] sm:$0xff] }
  0x74   :  { %535 = vmatprep.subr.mxu0 %v5292_v63  ;;  %606 = vmatprep.subr.mxu1 %v5294_v1  ;;  %7328 = vst [vmem:[#allocation38_spill] sm:$0xff] %v5360_v62 }
  0x75   :  { %536 = vmatpush1.msra.mxu0 %v5298_v2  ;;  %607 = vmatpush1.msra.mxu1 %v5300_v3 }
  0x76   :  { %537 = vmatprep.subr.mxu0 %v5304_v4  ;;  %608 = vmatprep.subr.mxu1 %v5306_v5 }
  0x77   :  { %286 = vmatprep.mubr.f32.mxu0 %v7129_v0  ;;  %399 = vmatprep.mubr.f32.mxu1 %v7129_v0 }
  0x78   :  { %538 = vmatpush1.msra.mxu0 %v5312_v6  ;;  %609 = vmatpush1.msra.mxu1 %v5314_v7 }
  0x79   :  { %4407 = vmatmul.mubr.msk.f32.gmra.mxu0 %vm161_vm0, %v121_v8  ;;  %4415 = vmatmul.mubr.msk.f32.gmra.mxu1 %vm161_vm0, %v121_v8  ;;  %v5362_v8 = vld [vmem:[#allocation9 + $0x18] sm:$0xff] }
  0x7a   :  { %539 = vmatprep.subr.mxu0 %v5320_v9  ;;  %610 = vmatprep.subr.mxu1 %v5322_v10  ;;  %7329 = vst [vmem:[#allocation39_spill] sm:$0xff] %v5362_v8 }
  0x7b   :  { %540 = vmatpush1.msra.mxu0 %v5326_v11  ;;  %611 = vmatpush1.msra.mxu1 %v5328_v12 }
  0x7c   :  { %541 = vmatprep.subr.mxu0 %v5332_v13  ;;  %612 = vmatprep.subr.mxu1 %v5334_v14 }
  0x7d   :  { %292 = vmatprep.mubr.f32.mxu0 %v7129_v0  ;;  %405 = vmatprep.mubr.f32.mxu1 %v7129_v0  ;;  %v5366_v0 = vld [vmem:[#allocation9] sm:$0xff] }
  0x7e   :  { %542 = vmatpush1.msra.mxu0 %v5340_v15  ;;  %613 = vmatpush1.msra.mxu1 %v5342_v16  ;;  %7330 = vst [vmem:[#allocation40_spill] sm:$0xff] %v5366_v0  ;;  %v5370_v16 = vld [vmem:[#allocation9 + $0x10] sm:$0xff] }
  0x7f   :  { %4408 = vmatmul.mubr.msk.f32.gmra.mxu0 %vm161_vm0, %v122_v17  ;;  %4416 = vmatmul.mubr.msk.f32.gmra.mxu1 %vm161_vm0, %v122_v17  ;;  %7331 = vst [vmem:[#allocation41_spill] sm:$0xff] %v5370_v16  ;;  %v7332_v17 = vmov 0.0  }
  0x80   :  { %543 = vmatprep.subr.mxu0 %v5348_v26  ;;  %614 = vmatprep.subr.mxu1 %v5350_v35 }
  0x81   :  { %544 = vmatpush1.msra.mxu0 %v5354_v44  ;;  %615 = vmatpush1.msra.mxu1 %v5356_v53 }
  0x82   :  { %545 = vmatprep.subr.mxu0 %v5360_v62  ;;  %616 = vmatprep.subr.mxu1 %v5362_v8 }
  0x83   :  { %546 = vmatpush1.msra.mxu0 %v5366_v0  ;;  %579 = vmatprep.mubr.f32.mxu0 %v7332_v17 }
  0x84   :  { %617 = vmatpush1.msra.mxu1 %v5370_v16  ;;  %650 = vmatprep.mubr.f32.mxu1 %v7332_v17 }
  0x85   :  { %580 = vmatmul.mubr.f32.vlgmr.msra.gmra.mxu0 %v7332_v17  ;;  %651 = vmatmul.mubr.f32.vlgmr.msra.gmra.mxu1 %v7332_v17 }
  0x86   :  { %757 = vmatprep.subr.mxu0 %v5154_v18  ;;  %828 = vmatprep.subr.mxu1 %v5156_v19 }
  0x87   :  { %758 = vmatpush1.msra.mxu0 %v5158_v20  ;;  %829 = vmatpush1.msra.mxu1 %v5160_v21 }
  0x88   :  { %759 = vmatprep.subr.mxu0 %v5164_v22  ;;  %830 = vmatprep.subr.mxu1 %v5166_v23 }
  0x89   :  { %760 = vmatpush1.msra.mxu0 %v5172_v24  ;;  %831 = vmatpush1.msra.mxu1 %v5174_v25 }
  0x8a   :  { %761 = vmatprep.subr.mxu0 %v5180_v27  ;;  %832 = vmatprep.subr.mxu1 %v5182_v28 }
  0x8b   :  { %762 = vmatpush1.msra.mxu0 %v5186_v29  ;;  %833 = vmatpush1.msra.mxu1 %v5188_v30 }
  0x8c   :  { %763 = vmatprep.subr.mxu0 %v5192_v31  ;;  %834 = vmatprep.subr.mxu1 %v5194_v32 }
  0x8d   :  { %764 = vmatpush1.msra.mxu0 %v5200_v33  ;;  %835 = vmatpush1.msra.mxu1 %v5202_v34 }
  0x8e   :  { %765 = vmatprep.subr.mxu0 %v5208_v36  ;;  %836 = vmatprep.subr.mxu1 %v5210_v37 }
  0x8f   :  { %766 = vmatpush1.msra.mxu0 %v5214_v38  ;;  %837 = vmatpush1.msra.mxu1 %v5216_v39 }
  0x90   :  { %767 = vmatprep.subr.mxu0 %v5220_v40  ;;  %838 = vmatprep.subr.mxu1 %v5222_v41 }
  0x91   :  { %768 = vmatpush1.msra.mxu0 %v5228_v42  ;;  %839 = vmatpush1.msra.mxu1 %v5230_v43 }
  0x92   :  { %769 = vmatprep.subr.mxu0 %v5236_v45  ;;  %840 = vmatprep.subr.mxu1 %v5238_v46 }
  0x93   :  { %770 = vmatpush1.msra.mxu0 %v5242_v47  ;;  %841 = vmatpush1.msra.mxu1 %v5244_v48 }
  0x94   :  { %771 = vmatprep.subr.mxu0 %v5248_v49  ;;  %842 = vmatprep.subr.mxu1 %v5250_v50 }
  0x95   :  { %772 = vmatpush1.msra.mxu0 %v5256_v51  ;;  %843 = vmatpush1.msra.mxu1 %v5258_v52 }
  0x96   :  { %773 = vmatprep.subr.mxu0 %v5264_v54  ;;  %844 = vmatprep.subr.mxu1 %v5266_v55 }
  0x97   :  { %774 = vmatpush1.msra.mxu0 %v5270_v56  ;;  %845 = vmatpush1.msra.mxu1 %v5272_v57 }
  0x98   :  { %775 = vmatprep.subr.mxu0 %v5276_v58  ;;  %846 = vmatprep.subr.mxu1 %v5278_v59 }
  0x99   :  { %776 = vmatpush1.msra.mxu0 %v5284_v60  ;;  %847 = vmatpush1.msra.mxu1 %v5286_v61 }
  0x9a   :  { %777 = vmatprep.subr.mxu0 %v5292_v63  ;;  %848 = vmatprep.subr.mxu1 %v5294_v1 }
  0x9b   :  { %778 = vmatpush1.msra.mxu0 %v5298_v2  ;;  %849 = vmatpush1.msra.mxu1 %v5300_v3 }
  0x9c   :  { %779 = vmatprep.subr.mxu0 %v5304_v4  ;;  %850 = vmatprep.subr.mxu1 %v5306_v5  ;;  %v7333_v4 = vld [vmem:[#allocation33_spill] sm:$0xff] }
  0x9d   :  { %780 = vmatpush1.msra.mxu0 %v5312_v6  ;;  %851 = vmatpush1.msra.mxu1 %v5314_v7 }
  0x9e   :  { %781 = vmatprep.subr.mxu0 %v5320_v9  ;;  %852 = vmatprep.subr.mxu1 %v5322_v10 }
  0x9f   :  { %782 = vmatpush1.msra.mxu0 %v5326_v11  ;;  %853 = vmatpush1.msra.mxu1 %v5328_v12 }
  0xa0   :  { %783 = vmatprep.subr.mxu0 %v5332_v13  ;;  %854 = vmatprep.subr.mxu1 %v5334_v14 }
  0xa1   :  { %784 = vmatpush1.msra.mxu0 %v5340_v15  ;;  %855 = vmatpush1.msra.mxu1 %v7333_v4 }
  0xa2   :  { %785 = vmatprep.subr.mxu0 %v5348_v26  ;;  %856 = vmatprep.subr.mxu1 %v5350_v35  ;;  %v141_v35 = vlaneseq }
  0xa3   :  { %786 = vmatpush1.msra.mxu0 %v5354_v44  ;;  %857 = vmatpush1.msra.mxu1 %v5356_v53 }
  0xa4   :  { %787 = vmatprep.subr.mxu0 %v5360_v62  ;;  %858 = vmatprep.subr.mxu1 %v5362_v8  ;;  %v5448_v44 = vshrl.u32 %v141_v35, 7 }
  0xa5   :  { %788 = vmatpush1.msra.mxu0 %v5366_v0  ;;  %821 = vmatprep.mubr.f32.mxu0 %v7332_v17 }
  0xa6   :  { %859 = vmatpush1.msra.mxu1 %v5370_v16  ;;  %892 = vmatprep.mubr.f32.mxu1 %v7332_v17  ;;  %7334 = vst [vmem:[#allocation42_spill] sm:$0xff] %v5448_v44  ;;  %v7150_v8 = vsub.s32 0, %v5448_v44  ;;  %v7152_v0 = vsub.s32 2, %v5448_v44  ;;  %v139_v16 = vld [vmem:[%s7122_s3] sm:$0xf]  ;;  %v7157_v35 = vsub.s32 3, %v5448_v44 }
  0xa7   :  { %1000 = vmatprep.subr.mxu0 %v5154_v18  ;;  %1071 = vmatprep.subr.mxu1 %v5156_v19  ;;  %v7156_v19 = vsub.s32 1, %v5448_v44 }
  0xa8   :  { %v144_v26 = vrot.slane %v139_v16, %v7150_v8  ;;  %v5469_v4 = vrot.slane %v139_v16, %v7152_v0  ;;  %v5475_v12 = vrot.slane %v139_v16, %v7157_v35 }
  0xa9   :  { %v148_v13 = vrot.slane %v139_v16, %v7156_v19 }
 0x115   :  { %v5450_v53 = vpop.f32.mrf.mxu0  ;;  %v5452_v62 = vpop.f32.mrf.mxu1 }
 0x117   :  { %v5459_v17 = vpop.f32.mrf.mxu0  ;;  %v5461_v18 = vpop.f32.mrf.mxu1 }
 0x11b   :  { %v258_v15 = vpop.f32.mrf.mxu0  ;;  %v371_v14 = vpop.f32.mrf.mxu1 }
 0x11c   :  { %v5477_v11 = vadd.f32 %v258_v15, %v144_v26  ;;  %v5480_v10 = vadd.f32 %v371_v14, %v5469_v4 }
 0x11d   :  { %v260_v9 = vpop.f32.mrf.mxu0  ;;  %v373_v8 = vpop.f32.mrf.mxu1 }
 0x11e   :  { %7335 = vst [vmem:[#allocation43_spill] sm:$0xff] %v5480_v10  ;;  %v5482_v7 = vadd.f32 %v260_v9, %v148_v13  ;;  %v5485_v0 = vadd.f32 %v373_v8, %v5475_v12 }
 0x120   :  { %7336 = vst [vmem:[#allocation44_spill] sm:$0xff] %v5482_v7  ;;  %7337 = vst [vmem:[#allocation45_spill] sm:$0xff] %v5485_v0 }
 0x121   :  { %v264_v6 = vpop.f32.mrf.mxu0  ;;  %v377_v5 = vpop.f32.mrf.mxu1 }
 0x122   :  { %v5487_v3 = vadd.f32 %v264_v6, %v144_v26  ;;  %v5490_v19 = vadd.f32 %v377_v5, %v5469_v4 }
 0x123   :  { %v266_v16 = vpop.f32.mrf.mxu0  ;;  %v379_v15 = vpop.f32.mrf.mxu1 }
 0x124   :  { %7338 = vst [vmem:[#allocation46_spill] sm:$0xff] %v5487_v3  ;;  %7339 = vst [vmem:[#allocation47_spill] sm:$0xff] %v5490_v19  ;;  %v5492_v35 = vadd.f32 %v266_v16, %v148_v13  ;;  %v5495_v14 = vadd.f32 %v379_v15, %v5475_v12 }
 0x126   :  { %7340 = vst [vmem:[#allocation48_spill] sm:$0xff] %v5492_v35  ;;  %7341 = vst [vmem:[#allocation49_spill] sm:$0xff] %v5495_v14 }
 0x127   :  { %v270_v44 = vpop.f32.mrf.mxu0  ;;  %v383_v9 = vpop.f32.mrf.mxu1 }
 0x128   :  { %v5497_v10 = vadd.f32 %v270_v44, %v144_v26  ;;  %v5500_v8 = vadd.f32 %v383_v9, %v5469_v4 }
 0x129   :  { %v272_v0 = vpop.f32.mrf.mxu0  ;;  %v385_v6 = vpop.f32.mrf.mxu1 }
 0x12a   :  { %7342 = vst [vmem:[#allocation50_spill] sm:$0xff] %v5497_v10  ;;  %7343 = vst [vmem:[#allocation51_spill] sm:$0xff] %v5500_v8  ;;  %v5502_v3 = vadd.f32 %v272_v0, %v148_v13  ;;  %v5505_v5 = vadd.f32 %v385_v6, %v5475_v12 }
 0x12c   :  { %7344 = vst [vmem:[#allocation52_spill] sm:$0xff] %v5502_v3  ;;  %7345 = vst [vmem:[#allocation53_spill] sm:$0xff] %v5505_v5 }
 0x12d   :  { %v276_v19 = vpop.f32.mrf.mxu0  ;;  %v389_v16 = vpop.f32.mrf.mxu1 }
 0x12e   :  { %v5507_v35 = vadd.f32 %v276_v19, %v144_v26  ;;  %v5510_v15 = vadd.f32 %v389_v16, %v5469_v4 }
 0x12f   :  { %v278_v14 = vpop.f32.mrf.mxu0  ;;  %v391_v44 = vpop.f32.mrf.mxu1 }
 0x130   :  { %7346 = vst [vmem:[#allocation54_spill] sm:$0xff] %v5507_v35  ;;  %7347 = vst [vmem:[#allocation55_spill] sm:$0xff] %v5510_v15  ;;  %v5512_v10 = vadd.f32 %v278_v14, %v148_v13  ;;  %v5515_v9 = vadd.f32 %v391_v44, %v5475_v12 }
 0x132   :  { %7348 = vst [vmem:[#allocation56_spill] sm:$0xff] %v5512_v10  ;;  %7349 = vst [vmem:[#allocation57_spill] sm:$0xff] %v5515_v9 }
 0x133   :  { %v282_v8 = vpop.f32.mrf.mxu0  ;;  %v395_v0 = vpop.f32.mrf.mxu1 }
 0x134   :  { %v5517_v3 = vadd.f32 %v282_v8, %v144_v26  ;;  %v5520_v6 = vadd.f32 %v395_v0, %v5469_v4 }
 0x135   :  { %v284_v5 = vpop.f32.mrf.mxu0  ;;  %v397_v19 = vpop.f32.mrf.mxu1 }
 0x136   :  { %7350 = vst [vmem:[#allocation58_spill] sm:$0xff] %v5517_v3  ;;  %7351 = vst [vmem:[#allocation59_spill] sm:$0xff] %v5520_v6  ;;  %v5522_v35 = vadd.f32 %v284_v5, %v148_v13  ;;  %v5525_v16 = vadd.f32 %v397_v19, %v5475_v12 }
 0x138   :  { %7352 = vst [vmem:[#allocation60_spill] sm:$0xff] %v5522_v35  ;;  %7353 = vst [vmem:[#allocation61_spill] sm:$0xff] %v5525_v16 }
 0x139   :  { %v288_v15 = vpop.f32.mrf.mxu0  ;;  %v401_v14 = vpop.f32.mrf.mxu1 }
 0x13a   :  { %v5527_v10 = vadd.f32 %v288_v15, %v144_v26  ;;  %v5530_v44 = vadd.f32 %v401_v14, %v5469_v4 }
 0x13b   :  { %v290_v9 = vpop.f32.mrf.mxu0  ;;  %v403_v8 = vpop.f32.mrf.mxu1 }
 0x13c   :  { %7354 = vst [vmem:[#allocation62_spill] sm:$0xff] %v5527_v10  ;;  %7355 = vst [vmem:[#allocation63_spill] sm:$0xff] %v5530_v44  ;;  %v5532_v3 = vadd.f32 %v290_v9, %v148_v13  ;;  %v5535_v0 = vadd.f32 %v403_v8, %v5475_v12  ;;  %v253_v9 = vadd.f32 %v5450_v53, %v144_v26 }
 0x13d   :  { %v255_v8 = vadd.f32 %v5459_v17, %v148_v13 }
 0x13e   :  { %7356 = vst [vmem:[#allocation64_spill] sm:$0xff] %v5532_v3  ;;  %7357 = vst [vmem:[#allocation65_spill] sm:$0xff] %v5535_v0 }
 0x13f   :  { %v294_v6 = vpop.f32.mrf.mxu0  ;;  %v407_v5 = vpop.f32.mrf.mxu1 }
 0x140   :  { %v5537_v35 = vadd.f32 %v294_v6, %v144_v26  ;;  %v5540_v19 = vadd.f32 %v407_v5, %v5469_v4 }
 0x141   :  { %v296_v16 = vpop.f32.mrf.mxu0  ;;  %v409_v15 = vpop.f32.mrf.mxu1 }
 0x142   :  { %7358 = vst [vmem:[#allocation66_spill] sm:$0xff] %v5537_v35  ;;  %7359 = vst [vmem:[#allocation67_spill] sm:$0xff] %v5540_v19  ;;  %v5542_v10 = vadd.f32 %v296_v16, %v148_v13  ;;  %v5545_v14 = vadd.f32 %v409_v15, %v5475_v12  ;;  %v368_v16 = vadd.f32 %v5461_v18, %v5475_v12 }
 0x143   :  { %v366_v15 = vadd.f32 %v5452_v62, %v5469_v4 }
 0x144   :  { %7360 = vst [vmem:[#allocation68_spill] sm:$0xff] %v5542_v10  ;;  %7361 = vst [vmem:[#allocation69_spill] sm:$0xff] %v5545_v14 }
 0x145   :  { %v581_v44 = vpop.f32.mrf.mxu0  ;;  %v652_v35 = vpop.f32.mrf.mxu1 }
 0x146   :  { %v657_v0 = vadd.f32 %v581_v44, %v253_v9  ;;  %v659_v14 = vadd.f32 %v652_v35, %v366_v15 }
 0x147   :  { %v583_v3 = vpop.f32.mrf.mxu0  ;;  %v654_v19 = vpop.f32.mrf.mxu1 }
 0x148   :  { %v4417_v7 = vmul.f32 -1.442695, %v657_v0  ;;  %v658_v6 = vadd.f32 %v583_v3, %v255_v8  ;;  %v660_v10 = vadd.f32 %v654_v19, %v368_v16 }
 0x14a   :  { %4583 = vpow2.f32 %v4417_v7  ;;  %v4418_v5 = vmul.f32 -1.442695, %v658_v6  ;;  %v4419_v26 = vmul.f32 -1.442695, %v660_v10 }
 0x14c   :  { %4585 = vpow2.f32 %v4418_v5 }
 0x14d   :  { %4587 = vpow2.f32 %v4419_v26 }
 0x157   :  { %v4584_v53 = vpop.eup %4583 }
 0x158   :  { %v664_v13 = vadd.f32 1.0, %v4584_v53 }
 0x159   :  { %v4586_v17 = vpop.eup %4585 }
 0x15a   :  { %4589 = vrcp.f32 %v664_v13  ;;  %v670_v3 = vadd.f32 1.0, %v4586_v17  ;;  %v4588_v7 = vpop.eup %4587  ;;  %v5638_v17 = vld [vmem:[#allocation9 + $0x1e8] sm:$0xff] }
 0x15b   :  { %4591 = vtanh.f32 %v659_v14  ;;  %v677_v8 = vadd.f32 1.0, %v4588_v7  ;;  %v5644_v7 = vld [vmem:[#allocation9 + $0x1e0] sm:$0xff] }
 0x15c   :  { %4593 = vrcp.f32 %v670_v3  ;;  %v5640_v3 = vld [vmem:[#allocation9 + $0x1f8] sm:$0xff] }
 0x15d   :  { %4595 = vrcp.f32 %v677_v8  ;;  %v5656_v8 = vld [vmem:[#allocation9 + $0x1c0] sm:$0xff] }
 0x167   :  { %v4590_v44 = vpop.eup %4589 }
 0x168   :  { %v4592_v0 = vpop.eup %4591 }
 0x169   :  { %v4594_v9 = vpop.eup %4593  ;;  %v681_v18 = vmul.f32 %v4592_v0, %v4590_v44  ;;  %v5646_v44 = vld [vmem:[#allocation9 + $0x1f0] sm:$0xff]  ;;  %v5650_v0 = vld [vmem:[#allocation9 + $0x1c8] sm:$0xff] }
 0x16a   :  { %v680_v12 = vmul.f32 0.0, %v4594_v9  ;;  %v4596_v4 = vpop.eup %4595  ;;  %v5652_v9 = vld [vmem:[#allocation9 + $0x1d8] sm:$0xff] }
 0x16c   :  { %v5553_v19 = vadd.f32 %v681_v18, %v680_v12  ;;  %v5658_v12 = vld [vmem:[#allocation9 + $0x1d0] sm:$0xff]  ;;  %v5662_v18 = vld [vmem:[#allocation9 + $0x1a8] sm:$0xff] }
 0x16e   :  { %4597 = vtanh.f32 %v5553_v19 }
 0x17b   :  { %v4598_v10 = vpop.eup %4597 }
 0x17c   :  { %v5556_v62 = vmul.f32 %v4598_v10, %v4596_v4  ;;  %v5668_v4 = vld [vmem:[#allocation9 + $0x1a0] sm:$0xff]  ;;  %v5670_v10 = vld [vmem:[#allocation9 + $0x1b0] sm:$0xff] }
 0x17e   :  { %7362 = vst [vmem:[#allocation70_spill] sm:$0xff] %v5556_v62  ;;  %822 = vmatmul.mubr.f32.vlgmr.msra.gmra.mxu0 %v5556_v62  ;;  %893 = vmatmul.mubr.f32.vlgmr.msra.gmra.mxu1 %v5556_v62  ;;  %v5816_v62 = vld [vmem:[#allocation9 + $0x18] sm:$0xff] }
 0x17f   :  { %1001 = vmatpush1.msra.mxu0 %v5158_v20  ;;  %1072 = vmatpush1.msra.mxu1 %v5160_v21  ;;  %v7363_v20 = vld [vmem:[#allocation21_spill] sm:$0xff]  ;;  %v7364_v21 = vld [vmem:[#allocation22_spill] sm:$0xff] }
 0x180   :  { %1002 = vmatprep.subr.mxu0 %v5164_v22  ;;  %1073 = vmatprep.subr.mxu1 %v5166_v23  ;;  %v7365_v22 = vld [vmem:[#allocation23_spill] sm:$0xff]  ;;  %v7366_v23 = vld [vmem:[#allocation24_spill] sm:$0xff]  ;;  %7389 = vst [vmem:[#allocation22_spill] sm:$0xff] %v5638_v17 }
 0x181   :  { %1003 = vmatpush1.msra.mxu0 %v5172_v24  ;;  %1074 = vmatpush1.msra.mxu1 %v5174_v25  ;;  %v7367_v24 = vld [vmem:[#allocation25_spill] sm:$0xff]  ;;  %v7368_v25 = vld [vmem:[#allocation26_spill] sm:$0xff]  ;;  %7390 = vst [vmem:[#allocation23_spill] sm:$0xff] %v5640_v3 }
 0x182   :  { %1004 = vmatprep.subr.mxu0 %v5180_v27  ;;  %1075 = vmatprep.subr.mxu1 %v5182_v28  ;;  %v7369_v27 = vld [vmem:[#allocation27_spill] sm:$0xff]  ;;  %v7370_v28 = vld [vmem:[#allocation28_spill] sm:$0xff] }
 0x183   :  { %1005 = vmatpush1.msra.mxu0 %v5186_v29  ;;  %1076 = vmatpush1.msra.mxu1 %v5188_v30  ;;  %v7371_v29 = vld [vmem:[#allocation29_spill] sm:$0xff]  ;;  %v7372_v30 = vld [vmem:[#allocation30_spill] sm:$0xff] }
 0x184   :  { %1006 = vmatprep.subr.mxu0 %v5192_v31  ;;  %1077 = vmatprep.subr.mxu1 %v5194_v32  ;;  %v7373_v31 = vld [vmem:[#allocation31_spill] sm:$0xff]  ;;  %v7374_v32 = vld [vmem:[#allocation32_spill] sm:$0xff] }
 0x185   :  { %1007 = vmatpush1.msra.mxu0 %v5200_v33  ;;  %1078 = vmatpush1.msra.mxu1 %v5202_v34  ;;  %v7375_v33 = vld [vmem:[#allocation33_spill] sm:$0xff]  ;;  %v7376_v34 = vld [vmem:[#allocation34_spill] sm:$0xff] }
 0x186   :  { %1008 = vmatprep.subr.mxu0 %v5208_v36  ;;  %1079 = vmatprep.subr.mxu1 %v5210_v37  ;;  %v7377_v36 = vld [vmem:[#allocation35_spill] sm:$0xff]  ;;  %v7378_v37 = vld [vmem:[#allocation36_spill] sm:$0xff] }
 0x187   :  { %1009 = vmatpush1.msra.mxu0 %v5214_v38  ;;  %1080 = vmatpush1.msra.mxu1 %v5216_v39  ;;  %v7379_v38 = vld [vmem:[#allocation37_spill] sm:$0xff]  ;;  %v7380_v39 = vld [vmem:[#allocation38_spill] sm:$0xff] }
 0x188   :  { %1010 = vmatprep.subr.mxu0 %v5220_v40  ;;  %1081 = vmatprep.subr.mxu1 %v5222_v41  ;;  %v7381_v40 = vld [vmem:[#allocation39_spill] sm:$0xff]  ;;  %v7382_v41 = vld [vmem:[#allocation40_spill] sm:$0xff]  ;;  %7405 = vst [vmem:[#allocation38_spill] sm:$0xff] %v5816_v62 }
 0x189   :  { %1011 = vmatpush1.msra.mxu0 %v5228_v42  ;;  %1082 = vmatpush1.msra.mxu1 %v5230_v43  ;;  %v7383_v42 = vmov 0.0   ;;  %v7384_v43 = vld [vmem:[#allocation41_spill] sm:$0xff] }
 0x18a   :  { %1012 = vmatprep.subr.mxu0 %v5236_v45  ;;  %1083 = vmatprep.subr.mxu1 %v5238_v46 }
 0x18b   :  { %1013 = vmatpush1.msra.mxu0 %v5242_v47  ;;  %1084 = vmatpush1.msra.mxu1 %v5244_v48 }
 0x18c   :  { %1014 = vmatprep.subr.mxu0 %v5248_v49  ;;  %1085 = vmatprep.subr.mxu1 %v5250_v50  ;;  %v7385_v49 = vld [vmem:[#allocation44_spill] sm:$0xff] }
 0x18d   :  { %1015 = vmatpush1.msra.mxu0 %v5256_v51  ;;  %1086 = vmatpush1.msra.mxu1 %v5258_v52 }
 0x18e   :  { %1016 = vmatprep.subr.mxu0 %v5264_v54  ;;  %1087 = vmatprep.subr.mxu1 %v5266_v55  ;;  %v7386_v55 = vld [vmem:[#allocation45_spill] sm:$0xff] }
 0x18f   :  { %1017 = vmatpush1.msra.mxu0 %v5270_v56  ;;  %1088 = vmatpush1.msra.mxu1 %v5272_v57  ;;  %v7387_v57 = vld [vmem:[#allocation43_spill] sm:$0xff] }
 0x190   :  { %1018 = vmatprep.subr.mxu0 %v5276_v58  ;;  %1089 = vmatprep.subr.mxu1 %v5278_v59 }
 0x191   :  { %1019 = vmatpush1.msra.mxu0 %v5284_v60  ;;  %1090 = vmatpush1.msra.mxu1 %v5286_v61 }
 0x192   :  { %1020 = vmatprep.subr.mxu0 %v5292_v63  ;;  %1091 = vmatprep.subr.mxu1 %v5294_v1 }
 0x193   :  { %1021 = vmatpush1.msra.mxu0 %v5298_v2  ;;  %1092 = vmatpush1.msra.mxu1 %v7363_v20  ;;  %v5674_v20 = vld [vmem:[#allocation9 + $0x188] sm:$0xff] }
 0x194   :  { %1022 = vmatprep.subr.mxu0 %v7364_v21  ;;  %1093 = vmatprep.subr.mxu1 %v7365_v22  ;;  %v5676_v21 = vld [vmem:[#allocation9 + $0x198] sm:$0xff]  ;;  %v5680_v22 = vld [vmem:[#allocation9 + $0x180] sm:$0xff] }
 0x195   :  { %1023 = vmatpush1.msra.mxu0 %v7366_v23  ;;  %1094 = vmatpush1.msra.mxu1 %v7367_v24  ;;  %v5682_v23 = vld [vmem:[#allocation9 + $0x190] sm:$0xff]  ;;  %v5686_v24 = vld [vmem:[#allocation9 + $0x168] sm:$0xff] }
 0x196   :  { %1024 = vmatprep.subr.mxu0 %v7368_v25  ;;  %1095 = vmatprep.subr.mxu1 %v7369_v27  ;;  %v5688_v25 = vld [vmem:[#allocation9 + $0x178] sm:$0xff]  ;;  %v5692_v27 = vld [vmem:[#allocation9 + $0x160] sm:$0xff] }
 0x197   :  { %1025 = vmatpush1.msra.mxu0 %v7370_v28  ;;  %1096 = vmatpush1.msra.mxu1 %v7371_v29  ;;  %v5694_v28 = vld [vmem:[#allocation9 + $0x170] sm:$0xff]  ;;  %v5698_v29 = vld [vmem:[#allocation9 + $0x148] sm:$0xff] }
 0x198   :  { %1026 = vmatprep.subr.mxu0 %v7372_v30  ;;  %1097 = vmatprep.subr.mxu1 %v7373_v31  ;;  %v5700_v30 = vld [vmem:[#allocation9 + $0x158] sm:$0xff]  ;;  %v5704_v31 = vld [vmem:[#allocation9 + $0x140] sm:$0xff] }
 0x199   :  { %1027 = vmatpush1.msra.mxu0 %v7374_v32  ;;  %1098 = vmatpush1.msra.mxu1 %v7375_v33  ;;  %v5706_v32 = vld [vmem:[#allocation9 + $0x150] sm:$0xff]  ;;  %v5710_v33 = vld [vmem:[#allocation9 + $0x128] sm:$0xff] }
 0x19a   :  { %1028 = vmatprep.subr.mxu0 %v7376_v34  ;;  %1099 = vmatprep.subr.mxu1 %v7377_v36  ;;  %v5712_v34 = vld [vmem:[#allocation9 + $0x138] sm:$0xff]  ;;  %v5716_v36 = vld [vmem:[#allocation9 + $0x120] sm:$0xff] }
 0x19b   :  { %1029 = vmatpush1.msra.mxu0 %v7378_v37  ;;  %1100 = vmatpush1.msra.mxu1 %v7379_v38  ;;  %v5718_v37 = vld [vmem:[#allocation9 + $0x130] sm:$0xff]  ;;  %v5722_v38 = vld [vmem:[#allocation9 + $0x108] sm:$0xff] }
 0x19c   :  { %1030 = vmatprep.subr.mxu0 %v7380_v39  ;;  %1101 = vmatprep.subr.mxu1 %v7381_v40  ;;  %v5724_v39 = vld [vmem:[#allocation9 + $0x118] sm:$0xff]  ;;  %v5726_v40 = vld [vmem:[#allocation9 + $0x100] sm:$0xff] }
 0x19d   :  { %1031 = vmatpush1.msra.mxu0 %v7382_v41  ;;  %1064 = vmatprep.mubr.f32.mxu0 %v7383_v42  ;;  %v5730_v41 = vld [vmem:[#allocation9 + $0x110] sm:$0xff] }
 0x19e   :  { %1102 = vmatpush1.msra.mxu1 %v7384_v43  ;;  %1135 = vmatprep.mubr.f32.mxu1 %v7383_v42  ;;  %v5732_v43 = vld [vmem:[#allocation9 + $0xe8] sm:$0xff] }
 0x19f   :  { %1243 = vmatprep.subr.mxu0 %v5638_v17  ;;  %1314 = vmatprep.subr.mxu1 %v5640_v3 }
 0x23e   :  { %v823_v45 = vpop.f32.mrf.mxu0  ;;  %v894_v51 = vpop.f32.mrf.mxu1 }
 0x23f   :  { %v899_v46 = vadd.f32 %v823_v45, %v5477_v11  ;;  %v901_v58 = vadd.f32 %v894_v51, %v7387_v57  ;;  %v5734_v45 = vld [vmem:[#allocation9 + $0xf8] sm:$0xff]  ;;  %v5750_v51 = vld [vmem:[#allocation9 + $0xd0] sm:$0xff]  ;;  %v5766_v57 = vld [vmem:[#allocation9 + $0x88] sm:$0xff] }
 0x240   :  { %v825_v47 = vpop.f32.mrf.mxu0  ;;  %v896_v54 = vpop.f32.mrf.mxu1 }
 0x241   :  { %v4420_v48 = vmul.f32 -1.442695, %v899_v46  ;;  %v900_v50 = vadd.f32 %v825_v47, %v7385_v49  ;;  %v902_v56 = vadd.f32 %v896_v54, %v7386_v55  ;;  %v5738_v46 = vld [vmem:[#allocation9 + $0xe0] sm:$0xff]  ;;  %v5740_v47 = vld [vmem:[#allocation9 + $0xf0] sm:$0xff]  ;;  %v5746_v49 = vld [vmem:[#allocation9 + $0xd8] sm:$0xff] }
 0x242   :  { %v5756_v54 = vld [vmem:[#allocation9 + $0xb8] sm:$0xff]  ;;  %v5760_v55 = vld [vmem:[#allocation9 + $0xa0] sm:$0xff] }
 0x243   :  { %4599 = vpow2.f32 %v4420_v48  ;;  %v4421_v52 = vmul.f32 -1.442695, %v900_v50  ;;  %v4422_v59 = vmul.f32 -1.442695, %v902_v56  ;;  %v5742_v48 = vld [vmem:[#allocation9 + $0xc8] sm:$0xff]  ;;  %v5748_v50 = vld [vmem:[#allocation9 + $0xc0] sm:$0xff] }
 0x244   :  { %v5762_v56 = vld [vmem:[#allocation9 + $0xb0] sm:$0xff] }
 0x245   :  { %4601 = vpow2.f32 %v4421_v52  ;;  %v5754_v52 = vld [vmem:[#allocation9 + $0xa8] sm:$0xff] }
 0x246   :  { %4603 = vtanh.f32 %v901_v58  ;;  %v5768_v58 = vld [vmem:[#allocation9 + $0x98] sm:$0xff] }
 0x247   :  { %4605 = vpow2.f32 %v4422_v59  ;;  %v5772_v59 = vld [vmem:[#allocation9 + $0x80] sm:$0xff] }
 0x250   :  { %v4600_v60 = vpop.eup %4599 }
 0x251   :  { %v906_v61 = vadd.f32 1.0, %v4600_v60  ;;  %v5774_v60 = vld [vmem:[#allocation9 + $0x90] sm:$0xff] }
 0x252   :  { %v4602_v63 = vpop.eup %4601  ;;  %7391 = vst [vmem:[#allocation24_spill] sm:$0xff] %v5774_v60 }
 0x253   :  { %4607 = vrcp.f32 %v906_v61  ;;  %v912_v1 = vadd.f32 1.0, %v4602_v63  ;;  %v4604_v2 = vpop.eup %4603  ;;  %v5778_v61 = vld [vmem:[#allocation9 + $0x68] sm:$0xff]  ;;  %v5780_v63 = vld [vmem:[#allocation9 + $0x78] sm:$0xff] }
 0x254   :  { %v4606_v11 = vpop.eup %4605  ;;  %7392 = vst [vmem:[#allocation25_spill] sm:$0xff] %v5778_v61  ;;  %7393 = vst [vmem:[#allocation26_spill] sm:$0xff] %v5780_v63 }
 0x255   :  { %4609 = vrcp.f32 %v912_v1  ;;  %v919_v5 = vadd.f32 1.0, %v4606_v11  ;;  %v5784_v1 = vld [vmem:[#allocation9 + $0x60] sm:$0xff]  ;;  %v5790_v11 = vld [vmem:[#allocation9 + $0x48] sm:$0xff] }
 0x256   :  { %7394 = vst [vmem:[#allocation27_spill] sm:$0xff] %v5784_v1  ;;  %7396 = vst [vmem:[#allocation29_spill] sm:$0xff] %v5790_v11 }
 0x257   :  { %4611 = vrcp.f32 %v919_v5  ;;  %v5802_v5 = vld [vmem:[#allocation9 + $0x28] sm:$0xff] }
 0x258   :  { %7400 = vst [vmem:[#allocation33_spill] sm:$0xff] %v5802_v5 }
 0x260   :  { %v4608_v35 = vpop.eup %4607 }
 0x261   :  { %v923_v14 = vmul.f32 %v4608_v35, %v4604_v2  ;;  %v5786_v2 = vld [vmem:[#allocation9 + $0x70] sm:$0xff]  ;;  %v5792_v35 = vld [vmem:[#allocation9 + $0x58] sm:$0xff] }
 0x262   :  { %v4610_v6 = vpop.eup %4609  ;;  %7395 = vst [vmem:[#allocation28_spill] sm:$0xff] %v5786_v2  ;;  %7397 = vst [vmem:[#allocation30_spill] sm:$0xff] %v5792_v35 }
 0x263   :  { %v922_v16 = vmul.f32 %v4610_v6, %v5553_v19  ;;  %v5664_v19 = vld [vmem:[#allocation9 + $0x1b8] sm:$0xff]  ;;  %v5798_v6 = vld [vmem:[#allocation9 + $0x50] sm:$0xff] }
 0x264   :  { %v4612_v26 = vpop.eup %4611  ;;  %7399 = vst [vmem:[#allocation32_spill] sm:$0xff] %v5798_v6 }
 0x265   :  { %v5629_v15 = vadd.f32 %v923_v14, %v922_v16  ;;  %v5796_v14 = vld [vmem:[#allocation9 + $0x40] sm:$0xff]  ;;  %v5804_v16 = vld [vmem:[#allocation9 + $0x38] sm:$0xff] }
 0x266   :  { %7398 = vst [vmem:[#allocation31_spill] sm:$0xff] %v5796_v14  ;;  %7401 = vst [vmem:[#allocation34_spill] sm:$0xff] %v5804_v16 }
 0x267   :  { %4613 = vtanh.f32 %v5629_v15 }
 0x274   :  { %v4614_v53 = vpop.eup %4613 }
 0x275   :  { %v5632_v13 = vmul.f32 %v4614_v53, %v4612_v26  ;;  %v5808_v26 = vld [vmem:[#allocation9 + $0x20] sm:$0xff]  ;;  %v5810_v53 = vld [vmem:[#allocation9 + $0x30] sm:$0xff] }
 0x276   :  { %7402 = vst [vmem:[#allocation35_spill] sm:$0xff] %v5808_v26  ;;  %7403 = vst [vmem:[#allocation36_spill] sm:$0xff] %v5810_v53 }
 0x277   :  { %7388 = vst [vmem:[#allocation21_spill] sm:$0xff] %v5632_v13  ;;  %1065 = vmatmul.mubr.f32.vlgmr.msra.gmra.mxu0 %v5632_v13  ;;  %1136 = vmatmul.mubr.f32.vlgmr.msra.gmra.mxu1 %v5632_v13  ;;  %v5814_v13 = vld [vmem:[#allocation9 + $0x8] sm:$0xff] }
 0x278   :  { %1307 = vmatprep.mubr.f32.mxu0 %v7383_v42  ;;  %1378 = vmatprep.mubr.f32.mxu1 %v7383_v42  ;;  %7404 = vst [vmem:[#allocation37_spill] sm:$0xff] %v5814_v13  ;;  %v5820_v42 = vld [vmem:[#allocation9] sm:$0xff] }
 0x279   :  { %1244 = vmatpush1.msra.mxu0 %v5644_v7  ;;  %1315 = vmatpush1.msra.mxu1 %v5646_v44  ;;  %7406 = vst [vmem:[#allocation39_spill] sm:$0xff] %v5820_v42 }
 0x27a   :  { %1245 = vmatprep.subr.mxu0 %v5650_v0  ;;  %1316 = vmatprep.subr.mxu1 %v5652_v9 }
 0x27b   :  { %1246 = vmatpush1.msra.mxu0 %v5656_v8  ;;  %1317 = vmatpush1.msra.mxu1 %v5658_v12 }
 0x27c   :  { %1247 = vmatprep.subr.mxu0 %v5662_v18  ;;  %1318 = vmatprep.subr.mxu1 %v5664_v19 }
 0x27d   :  { %1248 = vmatpush1.msra.mxu0 %v5668_v4  ;;  %1319 = vmatpush1.msra.mxu1 %v5670_v10 }
 0x27e   :  { %1249 = vmatprep.subr.mxu0 %v5674_v20  ;;  %1320 = vmatprep.subr.mxu1 %v5676_v21 }
 0x27f   :  { %1250 = vmatpush1.msra.mxu0 %v5680_v22  ;;  %1321 = vmatpush1.msra.mxu1 %v5682_v23 }
 0x280   :  { %1251 = vmatprep.subr.mxu0 %v5686_v24  ;;  %1322 = vmatprep.subr.mxu1 %v5688_v25 }
 0x281   :  { %1252 = vmatpush1.msra.mxu0 %v5692_v27  ;;  %1323 = vmatpush1.msra.mxu1 %v5694_v28 }
 0x282   :  { %1253 = vmatprep.subr.mxu0 %v5698_v29  ;;  %1324 = vmatprep.subr.mxu1 %v5700_v30 }
 0x283   :  { %1254 = vmatpush1.msra.mxu0 %v5704_v31  ;;  %1325 = vmatpush1.msra.mxu1 %v5706_v32 }
 0x284   :  { %1255 = vmatprep.subr.mxu0 %v5710_v33  ;;  %1326 = vmatprep.subr.mxu1 %v5712_v34 }
 0x285   :  { %1256 = vmatpush1.msra.mxu0 %v5716_v36  ;;  %1327 = vmatpush1.msra.mxu1 %v5718_v37 }
 0x286   :  { %1257 = vmatprep.subr.mxu0 %v5722_v38  ;;  %1328 = vmatprep.subr.mxu1 %v5724_v39 }
 0x287   :  { %1258 = vmatpush1.msra.mxu0 %v5726_v40  ;;  %1329 = vmatpush1.msra.mxu1 %v5730_v41 }
 0x288   :  { %1259 = vmatprep.subr.mxu0 %v5732_v43  ;;  %1330 = vmatprep.subr.mxu1 %v5734_v45 }
 0x289   :  { %1260 = vmatpush1.msra.mxu0 %v5738_v46  ;;  %1331 = vmatpush1.msra.mxu1 %v5740_v47 }
 0x28a   :  { %1261 = vmatprep.subr.mxu0 %v5742_v48  ;;  %1332 = vmatprep.subr.mxu1 %v5746_v49 }
 0x28b   :  { %1262 = vmatpush1.msra.mxu0 %v5748_v50  ;;  %1333 = vmatpush1.msra.mxu1 %v5750_v51 }
 0x28c   :  { %1263 = vmatprep.subr.mxu0 %v5754_v52  ;;  %1334 = vmatprep.subr.mxu1 %v5756_v54 }
 0x28d   :  { %1264 = vmatpush1.msra.mxu0 %v5760_v55  ;;  %1335 = vmatpush1.msra.mxu1 %v5762_v56 }
 0x28e   :  { %1265 = vmatprep.subr.mxu0 %v5766_v57  ;;  %1336 = vmatprep.subr.mxu1 %v5768_v58 }
 0x28f   :  { %1266 = vmatpush1.msra.mxu0 %v5772_v59  ;;  %1337 = vmatpush1.msra.mxu1 %v5774_v60 }
 0x290   :  { %1267 = vmatprep.subr.mxu0 %v5778_v61  ;;  %1338 = vmatprep.subr.mxu1 %v5780_v63  ;;  %v7411_v63 = vld [vmem:[#allocation47_spill] sm:$0xff] }
 0x291   :  { %1268 = vmatpush1.msra.mxu0 %v5784_v1  ;;  %1339 = vmatpush1.msra.mxu1 %v5786_v2  ;;  %v7410_v1 = vld [vmem:[#allocation49_spill] sm:$0xff] }
 0x292   :  { %1269 = vmatprep.subr.mxu0 %v5790_v11  ;;  %1340 = vmatprep.subr.mxu1 %v5792_v35  ;;  %v5822_v11 = vld [vmem:[#allocation9 + $0x10] sm:$0xff] }
 0x293   :  { %1270 = vmatpush1.msra.mxu0 %v5796_v14  ;;  %1341 = vmatpush1.msra.mxu1 %v5798_v6  ;;  %7407 = vst [vmem:[#allocation40_spill] sm:$0xff] %v5822_v11 }
 0x294   :  { %1271 = vmatprep.subr.mxu0 %v5802_v5  ;;  %1342 = vmatprep.subr.mxu1 %v5804_v16  ;;  %v7408_v5 = vld [vmem:[#allocation46_spill] sm:$0xff] }
 0x295   :  { %1272 = vmatpush1.msra.mxu0 %v5808_v26  ;;  %1343 = vmatpush1.msra.mxu1 %v5810_v53  ;;  %v7409_v26 = vld [vmem:[#allocation48_spill] sm:$0xff] }
 0x296   :  { %1273 = vmatprep.subr.mxu0 %v5814_v13  ;;  %1344 = vmatprep.subr.mxu1 %v5816_v62 }
 0x297   :  { %1274 = vmatpush1.msra.mxu0 %v5820_v42  ;;  %1345 = vmatpush1.msra.mxu1 %v5822_v11 }
 0x298   :  { %1486 = vmatprep.subr.mxu0 %v5638_v17  ;;  %1557 = vmatprep.subr.mxu1 %v5640_v3 }
 0x337   :  { %v1066_v16 = vpop.f32.mrf.mxu0  ;;  %v1137_v53 = vpop.f32.mrf.mxu1 }
 0x338   :  { %v1142_v6 = vadd.f32 %v1066_v16, %v7408_v5  ;;  %v1144_v11 = vadd.f32 %v1137_v53, %v7411_v63  ;;  %v7419_v53 = vld [vmem:[#allocation30_spill] sm:$0xff] }
 0x339   :  { %v1068_v14 = vpop.f32.mrf.mxu0  ;;  %v1139_v62 = vpop.f32.mrf.mxu1 }
 0x33a   :  { %v4423_v35 = vmul.f32 -1.442695, %v1142_v6  ;;  %v1143_v2 = vadd.f32 %v1068_v14, %v7409_v26  ;;  %v1145_v42 = vadd.f32 %v1139_v62, %v7410_v1  ;;  %v7417_v1 = vld [vmem:[#allocation28_spill] sm:$0xff] }
 0x33c   :  { %4615 = vpow2.f32 %v4423_v35  ;;  %v4424_v13 = vmul.f32 -1.442695, %v1143_v2  ;;  %v4425_v61 = vmul.f32 -1.442695, %v1145_v42 }
 0x33e   :  { %4617 = vpow2.f32 %v4424_v13 }
 0x33f   :  { %4619 = vtanh.f32 %v1144_v11  ;;  %v7418_v11 = vld [vmem:[#allocation29_spill] sm:$0xff] }
 0x340   :  { %4621 = vpow2.f32 %v4425_v61  ;;  %v7416_v61 = vld [vmem:[#allocation27_spill] sm:$0xff] }
 0x349   :  { %v4616_v17 = vpop.eup %4615 }
 0x34a   :  { %v1149_v60 = vadd.f32 1.0, %v4616_v17 }
 0x34b   :  { %v4618_v3 = vpop.eup %4617 }
 0x34c   :  { %4623 = vrcp.f32 %v1149_v60  ;;  %v1155_v5 = vadd.f32 1.0, %v4618_v3  ;;  %v4620_v6 = vpop.eup %4619  ;;  %v7414_v3 = vld [vmem:[#allocation25_spill] sm:$0xff]  ;;  %v7415_v60 = vld [vmem:[#allocation26_spill] sm:$0xff] }
 0x34d   :  { %v4622_v14 = vpop.eup %4621 }
 0x34e   :  { %4625 = vrcp.f32 %v1155_v5  ;;  %v1162_v13 = vadd.f32 1.0, %v4622_v14  ;;  %v7420_v5 = vld [vmem:[#allocation31_spill] sm:$0xff]  ;;  %v7422_v14 = vld [vmem:[#allocation33_spill] sm:$0xff] }
 0x350   :  { %4627 = vrcp.f32 %v1162_v13  ;;  %v7426_v13 = vld [vmem:[#allocation37_spill] sm:$0xff] }
 0x359   :  { %v4624_v35 = vpop.eup %4623 }
 0x35a   :  { %v1166_v16 = vmul.f32 %v4624_v35, %v4620_v6  ;;  %v7421_v6 = vld [vmem:[#allocation32_spill] sm:$0xff]  ;;  %v7423_v35 = vld [vmem:[#allocation34_spill] sm:$0xff] }
 0x35b   :  { %v4626_v2 = vpop.eup %4625 }
 0x35c   :  { %v1165_v26 = vmul.f32 %v4626_v2, %v5629_v15  ;;  %v7413_v15 = vld [vmem:[#allocation24_spill] sm:$0xff] }
 0x35d   :  { %v4628_v42 = vpop.eup %4627  ;;  %v7425_v2 = vld [vmem:[#allocation36_spill] sm:$0xff] }
 0x35e   :  { %v5837_v62 = vadd.f32 %v1166_v16, %v1165_v26  ;;  %v7424_v16 = vld [vmem:[#allocation35_spill] sm:$0xff]  ;;  %v7427_v26 = vld [vmem:[#allocation38_spill] sm:$0xff] }
 0x360   :  { %4629 = vtanh.f32 %v5837_v62 }
 0x36d   :  { %v4630_v17 = vpop.eup %4629 }
 0x36e   :  { %v5840_v63 = vmul.f32 %v4630_v17, %v4628_v42  ;;  %v7428_v42 = vld [vmem:[#allocation39_spill] sm:$0xff]  ;;  %v7429_v17 = vmov 0.0  }
 0x370   :  { %7412 = vst [vmem:[#allocation41_spill] sm:$0xff] %v5840_v63  ;;  %1308 = vmatmul.mubr.f32.vlgmr.msra.gmra.mxu0 %v5840_v63  ;;  %1379 = vmatmul.mubr.f32.vlgmr.msra.gmra.mxu1 %v5840_v63  ;;  %v7430_v63 = vld [vmem:[#allocation40_spill] sm:$0xff] }
 0x371   :  { %1487 = vmatpush1.msra.mxu0 %v5644_v7  ;;  %1558 = vmatpush1.msra.mxu1 %v5646_v44 }
 0x372   :  { %1488 = vmatprep.subr.mxu0 %v5650_v0  ;;  %1559 = vmatprep.subr.mxu1 %v5652_v9 }
 0x373   :  { %1489 = vmatpush1.msra.mxu0 %v5656_v8  ;;  %1560 = vmatpush1.msra.mxu1 %v5658_v12 }
 0x374   :  { %1490 = vmatprep.subr.mxu0 %v5662_v18  ;;  %1561 = vmatprep.subr.mxu1 %v5664_v19 }
 0x375   :  { %1491 = vmatpush1.msra.mxu0 %v5668_v4  ;;  %1562 = vmatpush1.msra.mxu1 %v5670_v10 }
 0x376   :  { %1492 = vmatprep.subr.mxu0 %v5674_v20  ;;  %1563 = vmatprep.subr.mxu1 %v5676_v21 }
 0x377   :  { %1493 = vmatpush1.msra.mxu0 %v5680_v22  ;;  %1564 = vmatpush1.msra.mxu1 %v5682_v23 }
 0x378   :  { %1494 = vmatprep.subr.mxu0 %v5686_v24  ;;  %1565 = vmatprep.subr.mxu1 %v5688_v25 }
 0x379   :  { %1495 = vmatpush1.msra.mxu0 %v5692_v27  ;;  %1566 = vmatpush1.msra.mxu1 %v5694_v28 }
 0x37a   :  { %1496 = vmatprep.subr.mxu0 %v5698_v29  ;;  %1567 = vmatprep.subr.mxu1 %v5700_v30 }
 0x37b   :  { %1497 = vmatpush1.msra.mxu0 %v5704_v31  ;;  %1568 = vmatpush1.msra.mxu1 %v5706_v32 }
 0x37c   :  { %1498 = vmatprep.subr.mxu0 %v5710_v33  ;;  %1569 = vmatprep.subr.mxu1 %v5712_v34 }
 0x37d   :  { %1499 = vmatpush1.msra.mxu0 %v5716_v36  ;;  %1570 = vmatpush1.msra.mxu1 %v5718_v37 }
 0x37e   :  { %1500 = vmatprep.subr.mxu0 %v5722_v38  ;;  %1571 = vmatprep.subr.mxu1 %v5724_v39 }
 0x37f   :  { %1501 = vmatpush1.msra.mxu0 %v5726_v40  ;;  %1572 = vmatpush1.msra.mxu1 %v5730_v41 }
 0x380   :  { %1502 = vmatprep.subr.mxu0 %v5732_v43  ;;  %1573 = vmatprep.subr.mxu1 %v5734_v45 }
 0x381   :  { %1503 = vmatpush1.msra.mxu0 %v5738_v46  ;;  %1574 = vmatpush1.msra.mxu1 %v5740_v47 }
 0x382   :  { %1504 = vmatprep.subr.mxu0 %v5742_v48  ;;  %1575 = vmatprep.subr.mxu1 %v5746_v49 }
 0x383   :  { %1505 = vmatpush1.msra.mxu0 %v5748_v50  ;;  %1576 = vmatpush1.msra.mxu1 %v5750_v51 }
 0x384   :  { %1506 = vmatprep.subr.mxu0 %v5754_v52  ;;  %1577 = vmatprep.subr.mxu1 %v5756_v54 }
 0x385   :  { %1507 = vmatpush1.msra.mxu0 %v5760_v55  ;;  %1578 = vmatpush1.msra.mxu1 %v5762_v56 }
 0x386   :  { %1508 = vmatprep.subr.mxu0 %v5766_v57  ;;  %1579 = vmatprep.subr.mxu1 %v5768_v58 }
 0x387   :  { %1509 = vmatpush1.msra.mxu0 %v5772_v59  ;;  %1580 = vmatpush1.msra.mxu1 %v7413_v15 }
 0x388   :  { %1510 = vmatprep.subr.mxu0 %v7414_v3  ;;  %1581 = vmatprep.subr.mxu1 %v7415_v60  ;;  %v7436_v60 = vld [vmem:[#allocation51_spill] sm:$0xff] }
 0x389   :  { %1511 = vmatpush1.msra.mxu0 %v7416_v61  ;;  %1582 = vmatpush1.msra.mxu1 %v7417_v1  ;;  %v7435_v61 = vld [vmem:[#allocation53_spill] sm:$0xff] }
 0x38a   :  { %1512 = vmatprep.subr.mxu0 %v7418_v11  ;;  %1583 = vmatprep.subr.mxu1 %v7419_v53 }
 0x38b   :  { %1513 = vmatpush1.msra.mxu0 %v7420_v5  ;;  %1584 = vmatpush1.msra.mxu1 %v7421_v6  ;;  %v7431_v6 = vld [vmem:[#allocation22_spill] sm:$0xff] }
 0x38c   :  { %1514 = vmatprep.subr.mxu0 %v7422_v14  ;;  %1585 = vmatprep.subr.mxu1 %v7423_v35  ;;  %v7432_v14 = vld [vmem:[#allocation23_spill] sm:$0xff] }
 0x38d   :  { %1515 = vmatpush1.msra.mxu0 %v7424_v16  ;;  %1586 = vmatpush1.msra.mxu1 %v7425_v2  ;;  %v7433_v16 = vld [vmem:[#allocation50_spill] sm:$0xff] }
 0x38e   :  { %1516 = vmatprep.subr.mxu0 %v7426_v13  ;;  %1587 = vmatprep.subr.mxu1 %v7427_v26  ;;  %v7434_v13 = vld [vmem:[#allocation52_spill] sm:$0xff] }
 0x38f   :  { %1517 = vmatpush1.msra.mxu0 %v7428_v42  ;;  %1550 = vmatprep.mubr.f32.mxu0 %v7429_v17 }
 0x390   :  { %1588 = vmatpush1.msra.mxu1 %v7430_v63  ;;  %1621 = vmatprep.mubr.f32.mxu1 %v7429_v17 }
 0x391   :  { %1729 = vmatprep.subr.mxu0 %v7431_v6  ;;  %1800 = vmatprep.subr.mxu1 %v7432_v14 }
 0x430   :  { %v1309_v35 = vpop.f32.mrf.mxu0  ;;  %v1380_v26 = vpop.f32.mrf.mxu1 }
 0x431   :  { %v1385_v5 = vadd.f32 %v1309_v35, %v7433_v16  ;;  %v1387_v17 = vadd.f32 %v1380_v26, %v7436_v60  ;;  %v7443_v26 = vld [vmem:[#allocation29_spill] sm:$0xff] }
 0x432   :  { %v1311_v2 = vpop.f32.mrf.mxu0  ;;  %v1382_v1 = vpop.f32.mrf.mxu1 }
 0x433   :  { %v4426_v53 = vmul.f32 -1.442695, %v1385_v5  ;;  %v1386_v11 = vadd.f32 %v1311_v2, %v7434_v13  ;;  %v1388_v63 = vadd.f32 %v1382_v1, %v7435_v61 }
 0x435   :  { %4631 = vpow2.f32 %v4426_v53  ;;  %v4427_v42 = vmul.f32 -1.442695, %v1386_v11  ;;  %v4428_v3 = vmul.f32 -1.442695, %v1388_v63 }
 0x437   :  { %4633 = vpow2.f32 %v4427_v42 }
 0x438   :  { %4635 = vtanh.f32 %v1387_v17  ;;  %v7444_v17 = vld [vmem:[#allocation30_spill] sm:$0xff] }
 0x439   :  { %4637 = vpow2.f32 %v4428_v3  ;;  %v7440_v3 = vld [vmem:[#allocation26_spill] sm:$0xff] }
 0x442   :  { %v4632_v6 = vpop.eup %4631 }
 0x443   :  { %v1392_v15 = vadd.f32 1.0, %v4632_v6  ;;  %v7441_v6 = vld [vmem:[#allocation27_spill] sm:$0xff] }
 0x444   :  { %v4634_v14 = vpop.eup %4633 }
 0x445   :  { %4639 = vrcp.f32 %v1392_v15  ;;  %v1398_v35 = vadd.f32 1.0, %v4634_v14  ;;  %v4636_v5 = vpop.eup %4635  ;;  %v7439_v15 = vld [vmem:[#allocation25_spill] sm:$0xff]  ;;  %v7442_v14 = vld [vmem:[#allocation28_spill] sm:$0xff] }
 0x446   :  { %v4638_v16 = vpop.eup %4637 }
 0x447   :  { %4641 = vrcp.f32 %v1398_v35  ;;  %v1405_v13 = vadd.f32 1.0, %v4638_v16  ;;  %v7445_v35 = vld [vmem:[#allocation31_spill] sm:$0xff]  ;;  %v7447_v16 = vld [vmem:[#allocation33_spill] sm:$0xff] }
 0x449   :  { %4643 = vrcp.f32 %v1405_v13  ;;  %v7451_v13 = vld [vmem:[#allocation37_spill] sm:$0xff] }
 0x452   :  { %v4640_v53 = vpop.eup %4639 }
 0x453   :  { %v1409_v2 = vmul.f32 %v4640_v53, %v4636_v5  ;;  %v7446_v5 = vld [vmem:[#allocation32_spill] sm:$0xff]  ;;  %v7448_v53 = vld [vmem:[#allocation34_spill] sm:$0xff] }
 0x454   :  { %v4642_v11 = vpop.eup %4641 }
 0x455   :  { %v1408_v42 = vmul.f32 %v4642_v11, %v5837_v62  ;;  %v7438_v62 = vld [vmem:[#allocation24_spill] sm:$0xff] }
 0x456   :  { %v4644_v63 = vpop.eup %4643  ;;  %v7450_v11 = vld [vmem:[#allocation36_spill] sm:$0xff] }
 0x457   :  { %v5915_v61 = vadd.f32 %v1409_v2, %v1408_v42  ;;  %v7449_v2 = vld [vmem:[#allocation35_spill] sm:$0xff]  ;;  %v7452_v42 = vld [vmem:[#allocation38_spill] sm:$0xff] }
 0x459   :  { %4645 = vtanh.f32 %v5915_v61 }
 0x466   :  { %v4646_v60 = vpop.eup %4645 }
 0x467   :  { %v5918_v1 = vmul.f32 %v4646_v60, %v4644_v63  ;;  %v7453_v63 = vld [vmem:[#allocation39_spill] sm:$0xff]  ;;  %v7454_v60 = vmov 0.0  }
 0x469   :  { %7437 = vst [vmem:[#allocation44_spill] sm:$0xff] %v5918_v1  ;;  %1551 = vmatmul.mubr.f32.vlgmr.msra.gmra.mxu0 %v5918_v1  ;;  %1622 = vmatmul.mubr.f32.vlgmr.msra.gmra.mxu1 %v5918_v1  ;;  %v7455_v1 = vld [vmem:[#allocation40_spill] sm:$0xff] }
 0x46a   :  { %1730 = vmatpush1.msra.mxu0 %v5644_v7  ;;  %1801 = vmatpush1.msra.mxu1 %v5646_v44 }
 0x46b   :  { %1731 = vmatprep.subr.mxu0 %v5650_v0  ;;  %1802 = vmatprep.subr.mxu1 %v5652_v9 }
 0x46c   :  { %1732 = vmatpush1.msra.mxu0 %v5656_v8  ;;  %1803 = vmatpush1.msra.mxu1 %v5658_v12 }
 0x46d   :  { %1733 = vmatprep.subr.mxu0 %v5662_v18  ;;  %1804 = vmatprep.subr.mxu1 %v5664_v19 }
 0x46e   :  { %1734 = vmatpush1.msra.mxu0 %v5668_v4  ;;  %1805 = vmatpush1.msra.mxu1 %v5670_v10 }
 0x46f   :  { %1735 = vmatprep.subr.mxu0 %v5674_v20  ;;  %1806 = vmatprep.subr.mxu1 %v5676_v21 }
 0x470   :  { %1736 = vmatpush1.msra.mxu0 %v5680_v22  ;;  %1807 = vmatpush1.msra.mxu1 %v5682_v23 }
 0x471   :  { %1737 = vmatprep.subr.mxu0 %v5686_v24  ;;  %1808 = vmatprep.subr.mxu1 %v5688_v25 }
 0x472   :  { %1738 = vmatpush1.msra.mxu0 %v5692_v27  ;;  %1809 = vmatpush1.msra.mxu1 %v5694_v28 }
 0x473   :  { %1739 = vmatprep.subr.mxu0 %v5698_v29  ;;  %1810 = vmatprep.subr.mxu1 %v5700_v30 }
 0x474   :  { %1740 = vmatpush1.msra.mxu0 %v5704_v31  ;;  %1811 = vmatpush1.msra.mxu1 %v5706_v32 }
 0x475   :  { %1741 = vmatprep.subr.mxu0 %v5710_v33  ;;  %1812 = vmatprep.subr.mxu1 %v5712_v34 }
 0x476   :  { %1742 = vmatpush1.msra.mxu0 %v5716_v36  ;;  %1813 = vmatpush1.msra.mxu1 %v5718_v37 }
 0x477   :  { %1743 = vmatprep.subr.mxu0 %v5722_v38  ;;  %1814 = vmatprep.subr.mxu1 %v5724_v39 }
 0x478   :  { %1744 = vmatpush1.msra.mxu0 %v5726_v40  ;;  %1815 = vmatpush1.msra.mxu1 %v5730_v41 }
 0x479   :  { %1745 = vmatprep.subr.mxu0 %v5732_v43  ;;  %1816 = vmatprep.subr.mxu1 %v5734_v45 }
 0x47a   :  { %1746 = vmatpush1.msra.mxu0 %v5738_v46  ;;  %1817 = vmatpush1.msra.mxu1 %v5740_v47 }
 0x47b   :  { %1747 = vmatprep.subr.mxu0 %v5742_v48  ;;  %1818 = vmatprep.subr.mxu1 %v5746_v49 }
 0x47c   :  { %1748 = vmatpush1.msra.mxu0 %v5748_v50  ;;  %1819 = vmatpush1.msra.mxu1 %v5750_v51 }
 0x47d   :  { %1749 = vmatprep.subr.mxu0 %v5754_v52  ;;  %1820 = vmatprep.subr.mxu1 %v5756_v54 }
 0x47e   :  { %1750 = vmatpush1.msra.mxu0 %v5760_v55  ;;  %1821 = vmatpush1.msra.mxu1 %v5762_v56 }
 0x47f   :  { %1751 = vmatprep.subr.mxu0 %v5766_v57  ;;  %1822 = vmatprep.subr.mxu1 %v5768_v58 }
 0x480   :  { %1752 = vmatpush1.msra.mxu0 %v5772_v59  ;;  %1823 = vmatpush1.msra.mxu1 %v7438_v62 }
 0x481   :  { %1753 = vmatprep.subr.mxu0 %v7439_v15  ;;  %1824 = vmatprep.subr.mxu1 %v7440_v3  ;;  %v7461_v3 = vld [vmem:[#allocation55_spill] sm:$0xff] }
 0x482   :  { %1754 = vmatpush1.msra.mxu0 %v7441_v6  ;;  %1825 = vmatpush1.msra.mxu1 %v7442_v14  ;;  %v7460_v6 = vld [vmem:[#allocation57_spill] sm:$0xff] }
 0x483   :  { %1755 = vmatprep.subr.mxu0 %v7443_v26  ;;  %1826 = vmatprep.subr.mxu1 %v7444_v17 }
 0x484   :  { %1756 = vmatpush1.msra.mxu0 %v7445_v35  ;;  %1827 = vmatpush1.msra.mxu1 %v7446_v5  ;;  %v7456_v5 = vld [vmem:[#allocation22_spill] sm:$0xff] }
 0x485   :  { %1757 = vmatprep.subr.mxu0 %v7447_v16  ;;  %1828 = vmatprep.subr.mxu1 %v7448_v53  ;;  %v7457_v16 = vld [vmem:[#allocation23_spill] sm:$0xff] }
 0x486   :  { %1758 = vmatpush1.msra.mxu0 %v7449_v2  ;;  %1829 = vmatpush1.msra.mxu1 %v7450_v11  ;;  %v7458_v2 = vld [vmem:[#allocation54_spill] sm:$0xff] }
 0x487   :  { %1759 = vmatprep.subr.mxu0 %v7451_v13  ;;  %1830 = vmatprep.subr.mxu1 %v7452_v42  ;;  %v7459_v13 = vld [vmem:[#allocation56_spill] sm:$0xff] }
 0x488   :  { %1760 = vmatpush1.msra.mxu0 %v7453_v63  ;;  %1793 = vmatprep.mubr.f32.mxu0 %v7454_v60 }
 0x489   :  { %1831 = vmatpush1.msra.mxu1 %v7455_v1  ;;  %1864 = vmatprep.mubr.f32.mxu1 %v7454_v60 }
 0x48a   :  { %1972 = vmatprep.subr.mxu0 %v7456_v5  ;;  %2043 = vmatprep.subr.mxu1 %v7457_v16 }
 0x529   :  { %v1552_v53 = vpop.f32.mrf.mxu0  ;;  %v1623_v42 = vpop.f32.mrf.mxu1 }
 0x52a   :  { %v1628_v35 = vadd.f32 %v1552_v53, %v7458_v2  ;;  %v1630_v60 = vadd.f32 %v1623_v42, %v7461_v3  ;;  %v2212_v42 = vld [vmem:[#allocation9 + $0x1e8] sm:$0xff] }
 0x52b   :  { %v1554_v11 = vpop.f32.mrf.mxu0  ;;  %v1625_v14 = vpop.f32.mrf.mxu1 }
 0x52c   :  { %v4429_v17 = vmul.f32 -1.442695, %v1628_v35  ;;  %v1629_v26 = vadd.f32 %v1554_v11, %v7459_v13  ;;  %v1631_v1 = vadd.f32 %v1625_v14, %v7460_v6 }
 0x52e   :  { %4647 = vpow2.f32 %v4429_v17  ;;  %v4430_v63 = vmul.f32 -1.442695, %v1629_v26  ;;  %v4431_v15 = vmul.f32 -1.442695, %v1631_v1 }
 0x530   :  { %4649 = vpow2.f32 %v4430_v63 }
 0x531   :  { %4651 = vtanh.f32 %v1630_v60  ;;  %v2214_v60 = vld [vmem:[#allocation9 + $0x1f8] sm:$0xff] }
 0x532   :  { %4653 = vpow2.f32 %v4431_v15 }
 0x53b   :  { %v4648_v5 = vpop.eup %4647 }
 0x53c   :  { %v1635_v62 = vadd.f32 1.0, %v4648_v5  ;;  %v2211_v5 = vld [vmem:[#allocation9 + $0x1e0] sm:$0xff] }
 0x53d   :  { %v4650_v16 = vpop.eup %4649 }
 0x53e   :  { %4655 = vrcp.f32 %v1635_v62  ;;  %v1641_v53 = vadd.f32 1.0, %v4650_v16  ;;  %v4652_v35 = vpop.eup %4651  ;;  %v2213_v16 = vld [vmem:[#allocation9 + $0x1f0] sm:$0xff] }
 0x53f   :  { %v4654_v2 = vpop.eup %4653 }
 0x540   :  { %4657 = vrcp.f32 %v1641_v53  ;;  %v1648_v13 = vadd.f32 1.0, %v4654_v2  ;;  %v2208_v53 = vld [vmem:[#allocation9 + $0x1c8] sm:$0xff]  ;;  %v2207_v2 = vld [vmem:[#allocation9 + $0x1c0] sm:$0xff] }
 0x542   :  { %4659 = vrcp.f32 %v1648_v13  ;;  %v2203_v13 = vld [vmem:[#allocation9 + $0x1a0] sm:$0xff] }
 0x54b   :  { %v4656_v17 = vpop.eup %4655 }
 0x54c   :  { %v1652_v11 = vmul.f32 %v4656_v17, %v4652_v35  ;;  %v2210_v35 = vld [vmem:[#allocation9 + $0x1d8] sm:$0xff]  ;;  %v2209_v17 = vld [vmem:[#allocation9 + $0x1d0] sm:$0xff] }
 0x54d   :  { %v4658_v26 = vpop.eup %4657 }
 0x54e   :  { %v1651_v63 = vmul.f32 %v4658_v26, %v5915_v61  ;;  %v2206_v26 = vld [vmem:[#allocation9 + $0x1b8] sm:$0xff] }
 0x54f   :  { %v4660_v1 = vpop.eup %4659 }
 0x550   :  { %v5993_v6 = vadd.f32 %v1652_v11, %v1651_v63  ;;  %v2204_v11 = vld [vmem:[#allocation9 + $0x1a8] sm:$0xff]  ;;  %v2205_v63 = vld [vmem:[#allocation9 + $0x1b0] sm:$0xff] }
 0x552   :  { %4661 = vtanh.f32 %v5993_v6 }
 0x55f   :  { %v4662_v3 = vpop.eup %4661 }
 0x560   :  { %v5996_v14 = vmul.f32 %v4662_v3, %v4660_v1  ;;  %v2202_v1 = vld [vmem:[#allocation9 + $0x198] sm:$0xff]  ;;  %v2199_v3 = vld [vmem:[#allocation9 + $0x180] sm:$0xff] }
 0x562   :  { %1794 = vmatmul.mubr.f32.vlgmr.msra.gmra.mxu0 %v5996_v14  ;;  %1865 = vmatmul.mubr.f32.vlgmr.msra.gmra.mxu1 %v5996_v14 }
 0x563   :  { %1973 = vmatpush1.msra.mxu0 %v5644_v7  ;;  %2044 = vmatpush1.msra.mxu1 %v5646_v44  ;;  %v7462_v7 = vld [vmem:[#allocation24_spill] sm:$0xff]  ;;  %v7463_v44 = vld [vmem:[#allocation25_spill] sm:$0xff] }
 0x564   :  { %1974 = vmatprep.subr.mxu0 %v5650_v0  ;;  %2045 = vmatprep.subr.mxu1 %v5652_v9  ;;  %v7464_v0 = vld [vmem:[#allocation26_spill] sm:$0xff]  ;;  %v7465_v9 = vld [vmem:[#allocation27_spill] sm:$0xff] }
 0x565   :  { %1975 = vmatpush1.msra.mxu0 %v5656_v8  ;;  %2046 = vmatpush1.msra.mxu1 %v5658_v12  ;;  %v7466_v8 = vld [vmem:[#allocation28_spill] sm:$0xff]  ;;  %v7467_v12 = vld [vmem:[#allocation29_spill] sm:$0xff] }
 0x566   :  { %1976 = vmatprep.subr.mxu0 %v5662_v18  ;;  %2047 = vmatprep.subr.mxu1 %v5664_v19  ;;  %v7468_v18 = vld [vmem:[#allocation30_spill] sm:$0xff]  ;;  %v7469_v19 = vld [vmem:[#allocation31_spill] sm:$0xff] }
 0x567   :  { %1977 = vmatpush1.msra.mxu0 %v5668_v4  ;;  %2048 = vmatpush1.msra.mxu1 %v5670_v10  ;;  %v7470_v4 = vld [vmem:[#allocation32_spill] sm:$0xff]  ;;  %v7471_v10 = vld [vmem:[#allocation33_spill] sm:$0xff] }
 0x568   :  { %1978 = vmatprep.subr.mxu0 %v5674_v20  ;;  %2049 = vmatprep.subr.mxu1 %v5676_v21  ;;  %v7472_v20 = vld [vmem:[#allocation34_spill] sm:$0xff]  ;;  %v7473_v21 = vld [vmem:[#allocation35_spill] sm:$0xff] }
 0x569   :  { %1979 = vmatpush1.msra.mxu0 %v5680_v22  ;;  %2050 = vmatpush1.msra.mxu1 %v5682_v23  ;;  %v7474_v22 = vld [vmem:[#allocation36_spill] sm:$0xff]  ;;  %v7475_v23 = vld [vmem:[#allocation37_spill] sm:$0xff] }
 0x56a   :  { %1980 = vmatprep.subr.mxu0 %v5686_v24  ;;  %2051 = vmatprep.subr.mxu1 %v5688_v25  ;;  %v7476_v24 = vld [vmem:[#allocation38_spill] sm:$0xff]  ;;  %v7477_v25 = vld [vmem:[#allocation39_spill] sm:$0xff] }
 0x56b   :  { %1981 = vmatpush1.msra.mxu0 %v5692_v27  ;;  %2052 = vmatpush1.msra.mxu1 %v5694_v28  ;;  %v7478_v27 = vmov 0.0   ;;  %v7479_v28 = vld [vmem:[#allocation40_spill] sm:$0xff] }
 0x56c   :  { %1982 = vmatprep.subr.mxu0 %v5698_v29  ;;  %2053 = vmatprep.subr.mxu1 %v5700_v30  ;;  %v7480_v30 = vld [vmem:[#allocation58_spill] sm:$0xff] }
 0x56d   :  { %1983 = vmatpush1.msra.mxu0 %v5704_v31  ;;  %2054 = vmatpush1.msra.mxu1 %v5706_v32 }
 0x56e   :  { %1984 = vmatprep.subr.mxu0 %v5710_v33  ;;  %2055 = vmatprep.subr.mxu1 %v5712_v34  ;;  %v7481_v34 = vld [vmem:[#allocation60_spill] sm:$0xff] }
 0x56f   :  { %1985 = vmatpush1.msra.mxu0 %v5716_v36  ;;  %2056 = vmatpush1.msra.mxu1 %v5718_v37 }
 0x570   :  { %1986 = vmatprep.subr.mxu0 %v5722_v38  ;;  %2057 = vmatprep.subr.mxu1 %v5724_v39 }
 0x571   :  { %1987 = vmatpush1.msra.mxu0 %v5726_v40  ;;  %2058 = vmatpush1.msra.mxu1 %v5730_v41  ;;  %v7482_v40 = vld [vmem:[#allocation61_spill] sm:$0xff] }
 0x572   :  { %1988 = vmatprep.subr.mxu0 %v5732_v43  ;;  %2059 = vmatprep.subr.mxu1 %v5734_v45  ;;  %v7483_v43 = vld [vmem:[#allocation59_spill] sm:$0xff] }
 0x573   :  { %1989 = vmatpush1.msra.mxu0 %v5738_v46  ;;  %2060 = vmatpush1.msra.mxu1 %v5740_v47 }
 0x574   :  { %1990 = vmatprep.subr.mxu0 %v5742_v48  ;;  %2061 = vmatprep.subr.mxu1 %v5746_v49 }
 0x575   :  { %1991 = vmatpush1.msra.mxu0 %v5748_v50  ;;  %2062 = vmatpush1.msra.mxu1 %v5750_v51 }
 0x576   :  { %1992 = vmatprep.subr.mxu0 %v5754_v52  ;;  %2063 = vmatprep.subr.mxu1 %v5756_v54 }
 0x577   :  { %1993 = vmatpush1.msra.mxu0 %v5760_v55  ;;  %2064 = vmatpush1.msra.mxu1 %v5762_v56 }
 0x578   :  { %1994 = vmatprep.subr.mxu0 %v5766_v57  ;;  %2065 = vmatprep.subr.mxu1 %v5768_v58 }
 0x579   :  { %1995 = vmatpush1.msra.mxu0 %v5772_v59  ;;  %2066 = vmatpush1.msra.mxu1 %v7462_v7  ;;  %v2201_v7 = vld [vmem:[#allocation9 + $0x190] sm:$0xff] }
 0x57a   :  { %1996 = vmatprep.subr.mxu0 %v7463_v44  ;;  %2067 = vmatprep.subr.mxu1 %v7464_v0  ;;  %v2196_v44 = vld [vmem:[#allocation9 + $0x168] sm:$0xff]  ;;  %v2198_v0 = vld [vmem:[#allocation9 + $0x178] sm:$0xff] }
 0x57b   :  { %1997 = vmatpush1.msra.mxu0 %v7465_v9  ;;  %2068 = vmatpush1.msra.mxu1 %v7466_v8  ;;  %v2195_v9 = vld [vmem:[#allocation9 + $0x160] sm:$0xff]  ;;  %v2197_v8 = vld [vmem:[#allocation9 + $0x170] sm:$0xff] }
 0x57c   :  { %1998 = vmatprep.subr.mxu0 %v7467_v12  ;;  %2069 = vmatprep.subr.mxu1 %v7468_v18  ;;  %v2192_v12 = vld [vmem:[#allocation9 + $0x148] sm:$0xff]  ;;  %v2194_v18 = vld [vmem:[#allocation9 + $0x158] sm:$0xff] }
 0x57d   :  { %1999 = vmatpush1.msra.mxu0 %v7469_v19  ;;  %2070 = vmatpush1.msra.mxu1 %v7470_v4  ;;  %v2191_v19 = vld [vmem:[#allocation9 + $0x140] sm:$0xff]  ;;  %v2193_v4 = vld [vmem:[#allocation9 + $0x150] sm:$0xff] }
 0x57e   :  { %2000 = vmatprep.subr.mxu0 %v7471_v10  ;;  %2071 = vmatprep.subr.mxu1 %v7472_v20  ;;  %v2188_v10 = vld [vmem:[#allocation9 + $0x128] sm:$0xff]  ;;  %v2190_v20 = vld [vmem:[#allocation9 + $0x138] sm:$0xff] }
 0x57f   :  { %2001 = vmatpush1.msra.mxu0 %v7473_v21  ;;  %2072 = vmatpush1.msra.mxu1 %v7474_v22  ;;  %v2187_v21 = vld [vmem:[#allocation9 + $0x120] sm:$0xff]  ;;  %v2189_v22 = vld [vmem:[#allocation9 + $0x130] sm:$0xff] }
 0x580   :  { %2002 = vmatprep.subr.mxu0 %v7475_v23  ;;  %2073 = vmatprep.subr.mxu1 %v7476_v24  ;;  %v2184_v23 = vld [vmem:[#allocation9 + $0x108] sm:$0xff]  ;;  %v2186_v24 = vld [vmem:[#allocation9 + $0x118] sm:$0xff] }
 0x581   :  { %2003 = vmatpush1.msra.mxu0 %v7477_v25  ;;  %2036 = vmatprep.mubr.f32.mxu0 %v7478_v27  ;;  %v2183_v25 = vld [vmem:[#allocation9 + $0x100] sm:$0xff] }
 0x582   :  { %2074 = vmatpush1.msra.mxu1 %v7479_v28  ;;  %2107 = vmatprep.mubr.f32.mxu1 %v7478_v27  ;;  %v2185_v28 = vld [vmem:[#allocation9 + $0x110] sm:$0xff] }
 0x583   :  { %2215 = vmatprep.subr.mxu0 %v2212_v42  ;;  %2286 = vmatprep.subr.mxu1 %v2214_v60  ;;  %v2152_v42 = vld [vmem:[#allocation9 + $0x8] sm:$0xff]  ;;  %v2154_v60 = vld [vmem:[#allocation9 + $0x18] sm:$0xff] }
 0x622   :  { %v1795_v29 = vpop.f32.mrf.mxu0  ;;  %v1866_v37 = vpop.f32.mrf.mxu1 }
 0x623   :  { %v1871_v31 = vadd.f32 %v1795_v29, %v7480_v30  ;;  %v1873_v45 = vadd.f32 %v1866_v37, %v7483_v43  ;;  %v2180_v29 = vld [vmem:[#allocation9 + $0xe8] sm:$0xff]  ;;  %v2182_v30 = vld [vmem:[#allocation9 + $0xf8] sm:$0xff]  ;;  %v2177_v37 = vld [vmem:[#allocation9 + $0xd0] sm:$0xff] }
 0x624   :  { %v1797_v32 = vpop.f32.mrf.mxu0  ;;  %v1868_v39 = vpop.f32.mrf.mxu1  ;;  %v2168_v43 = vld [vmem:[#allocation9 + $0x88] sm:$0xff] }
 0x625   :  { %v4432_v33 = vmul.f32 -1.442695, %v1871_v31  ;;  %v1872_v36 = vadd.f32 %v1797_v32, %v7481_v34  ;;  %v1874_v41 = vadd.f32 %v1868_v39, %v7482_v40  ;;  %v2179_v31 = vld [vmem:[#allocation9 + $0xe0] sm:$0xff]  ;;  %v2181_v32 = vld [vmem:[#allocation9 + $0xf0] sm:$0xff]  ;;  %v2178_v34 = vld [vmem:[#allocation9 + $0xd8] sm:$0xff] }
 0x626   :  { %v2174_v39 = vld [vmem:[#allocation9 + $0xb8] sm:$0xff]  ;;  %v2171_v40 = vld [vmem:[#allocation9 + $0xa0] sm:$0xff] }
 0x627   :  { %4663 = vpow2.f32 %v4432_v33  ;;  %v4433_v38 = vmul.f32 -1.442695, %v1872_v36  ;;  %v4434_v46 = vmul.f32 -1.442695, %v1874_v41  ;;  %v2176_v33 = vld [vmem:[#allocation9 + $0xc8] sm:$0xff]  ;;  %v2175_v36 = vld [vmem:[#allocation9 + $0xc0] sm:$0xff] }
 0x628   :  { %v2173_v41 = vld [vmem:[#allocation9 + $0xb0] sm:$0xff] }
 0x629   :  { %4665 = vpow2.f32 %v4433_v38  ;;  %v2172_v38 = vld [vmem:[#allocation9 + $0xa8] sm:$0xff] }
 0x62a   :  { %4667 = vtanh.f32 %v1873_v45  ;;  %v2170_v45 = vld [vmem:[#allocation9 + $0x98] sm:$0xff] }
 0x62b   :  { %4669 = vpow2.f32 %v4434_v46  ;;  %v2167_v46 = vld [vmem:[#allocation9 + $0x80] sm:$0xff] }
 0x634   :  { %v4664_v47 = vpop.eup %4663 }
 0x635   :  { %v1878_v48 = vadd.f32 1.0, %v4664_v47  ;;  %v2169_v47 = vld [vmem:[#allocation9 + $0x90] sm:$0xff] }
 0x636   :  { %v4666_v49 = vpop.eup %4665 }
 0x637   :  { %4671 = vrcp.f32 %v1878_v48  ;;  %v1884_v50 = vadd.f32 1.0, %v4666_v49  ;;  %v4668_v51 = vpop.eup %4667  ;;  %v2164_v48 = vld [vmem:[#allocation9 + $0x68] sm:$0xff]  ;;  %v2166_v49 = vld [vmem:[#allocation9 + $0x78] sm:$0xff] }
 0x638   :  { %v4670_v52 = vpop.eup %4669 }
 0x639   :  { %4673 = vrcp.f32 %v1884_v50  ;;  %v1891_v57 = vadd.f32 1.0, %v4670_v52  ;;  %v2163_v50 = vld [vmem:[#allocation9 + $0x60] sm:$0xff]  ;;  %v2160_v52 = vld [vmem:[#allocation9 + $0x48] sm:$0xff] }
 0x63b   :  { %4675 = vrcp.f32 %v1891_v57  ;;  %v2156_v57 = vld [vmem:[#allocation9 + $0x28] sm:$0xff] }
 0x644   :  { %v4672_v54 = vpop.eup %4671 }
 0x645   :  { %v1895_v55 = vmul.f32 %v4672_v54, %v4668_v51  ;;  %v2165_v51 = vld [vmem:[#allocation9 + $0x70] sm:$0xff]  ;;  %v2162_v54 = vld [vmem:[#allocation9 + $0x58] sm:$0xff] }
 0x646   :  { %v4674_v56 = vpop.eup %4673 }
 0x647   :  { %v1894_v58 = vmul.f32 %v4674_v56, %v5993_v6  ;;  %v2200_v6 = vld [vmem:[#allocation9 + $0x188] sm:$0xff]  ;;  %v2161_v56 = vld [vmem:[#allocation9 + $0x50] sm:$0xff] }
 0x648   :  { %v4676_v61 = vpop.eup %4675 }
 0x649   :  { %v6069_v59 = vadd.f32 %v1895_v55, %v1894_v58  ;;  %v2159_v55 = vld [vmem:[#allocation9 + $0x40] sm:$0xff]  ;;  %v2158_v58 = vld [vmem:[#allocation9 + $0x38] sm:$0xff] }
 0x64b   :  { %4677 = vtanh.f32 %v6069_v59 }
 0x658   :  { %v4678_v62 = vpop.eup %4677 }
 0x659   :  { %v6072_v15 = vmul.f32 %v4678_v62, %v4676_v61  ;;  %v2155_v61 = vld [vmem:[#allocation9 + $0x20] sm:$0xff]  ;;  %v2157_v62 = vld [vmem:[#allocation9 + $0x30] sm:$0xff] }
 0x65b   :  { %2037 = vmatmul.mubr.f32.vlgmr.msra.gmra.mxu0 %v6072_v15  ;;  %2108 = vmatmul.mubr.f32.vlgmr.msra.gmra.mxu1 %v6072_v15 }
 0x65c   :  { %2279 = vmatprep.mubr.f32.mxu0 %v7478_v27  ;;  %2350 = vmatprep.mubr.f32.mxu1 %v7478_v27 }
 0x65d   :  { %2216 = vmatpush1.msra.mxu0 %v2211_v5  ;;  %2287 = vmatpush1.msra.mxu1 %v2213_v16  ;;  %v2151_v5 = vld [vmem:[#allocation9] sm:$0xff]  ;;  %v2153_v16 = vld [vmem:[#allocation9 + $0x10] sm:$0xff] }
 0x65e   :  { %2217 = vmatprep.subr.mxu0 %v2208_v53  ;;  %2288 = vmatprep.subr.mxu1 %v2210_v35  ;;  %v2456_v53 = vld [vmem:[#allocation10 + $0x1e8] sm:$0xff]  ;;  %v2458_v35 = vld [vmem:[#allocation10 + $0x1f8] sm:$0xff] }
 0x65f   :  { %2218 = vmatpush1.msra.mxu0 %v2207_v2  ;;  %2289 = vmatpush1.msra.mxu1 %v2209_v17  ;;  %v7484_v17 = vld [vmem:[#allocation62_spill] sm:$0xff] }
 0x660   :  { %2219 = vmatprep.subr.mxu0 %v2204_v11  ;;  %2290 = vmatprep.subr.mxu1 %v2206_v26 }
 0x661   :  { %2220 = vmatpush1.msra.mxu0 %v2203_v13  ;;  %2291 = vmatpush1.msra.mxu1 %v2205_v63  ;;  %v7485_v63 = vld [vmem:[#allocation64_spill] sm:$0xff] }
 0x662   :  { %2221 = vmatprep.subr.mxu0 %v2200_v6  ;;  %2292 = vmatprep.subr.mxu1 %v2202_v1 }
 0x663   :  { %2222 = vmatpush1.msra.mxu0 %v2199_v3  ;;  %2293 = vmatpush1.msra.mxu1 %v2201_v7 }
 0x664   :  { %2223 = vmatprep.subr.mxu0 %v2196_v44  ;;  %2294 = vmatprep.subr.mxu1 %v2198_v0  ;;  %v7486_v44 = vld [vmem:[#allocation65_spill] sm:$0xff] }
 0x665   :  { %2224 = vmatpush1.msra.mxu0 %v2195_v9  ;;  %2295 = vmatpush1.msra.mxu1 %v2197_v8  ;;  %v7487_v9 = vld [vmem:[#allocation63_spill] sm:$0xff] }
 0x666   :  { %2225 = vmatprep.subr.mxu0 %v2192_v12  ;;  %2296 = vmatprep.subr.mxu1 %v2194_v18 }
 0x667   :  { %2226 = vmatpush1.msra.mxu0 %v2191_v19  ;;  %2297 = vmatpush1.msra.mxu1 %v2193_v4 }
 0x668   :  { %2227 = vmatprep.subr.mxu0 %v2188_v10  ;;  %2298 = vmatprep.subr.mxu1 %v2190_v20 }
 0x669   :  { %2228 = vmatpush1.msra.mxu0 %v2187_v21  ;;  %2299 = vmatpush1.msra.mxu1 %v2189_v22 }
 0x66a   :  { %2229 = vmatprep.subr.mxu0 %v2184_v23  ;;  %2300 = vmatprep.subr.mxu1 %v2186_v24 }
 0x66b   :  { %2230 = vmatpush1.msra.mxu0 %v2183_v25  ;;  %2301 = vmatpush1.msra.mxu1 %v2185_v28 }
 0x66c   :  { %2231 = vmatprep.subr.mxu0 %v2180_v29  ;;  %2302 = vmatprep.subr.mxu1 %v2182_v30 }
 0x66d   :  { %2232 = vmatpush1.msra.mxu0 %v2179_v31  ;;  %2303 = vmatpush1.msra.mxu1 %v2181_v32 }
 0x66e   :  { %2233 = vmatprep.subr.mxu0 %v2176_v33  ;;  %2304 = vmatprep.subr.mxu1 %v2178_v34  ;;  %v2455_v33 = vld [vmem:[#allocation10 + $0x1e0] sm:$0xff]  ;;  %v2457_v34 = vld [vmem:[#allocation10 + $0x1f0] sm:$0xff] }
 0x66f   :  { %2234 = vmatpush1.msra.mxu0 %v2175_v36  ;;  %2305 = vmatpush1.msra.mxu1 %v2177_v37  ;;  %v2452_v36 = vld [vmem:[#allocation10 + $0x1c8] sm:$0xff]  ;;  %v2454_v37 = vld [vmem:[#allocation10 + $0x1d8] sm:$0xff] }
 0x670   :  { %2235 = vmatprep.subr.mxu0 %v2172_v38  ;;  %2306 = vmatprep.subr.mxu1 %v2174_v39  ;;  %v2451_v38 = vld [vmem:[#allocation10 + $0x1c0] sm:$0xff]  ;;  %v2453_v39 = vld [vmem:[#allocation10 + $0x1d0] sm:$0xff] }
 0x671   :  { %2236 = vmatpush1.msra.mxu0 %v2171_v40  ;;  %2307 = vmatpush1.msra.mxu1 %v2173_v41  ;;  %v2450_v40 = vld [vmem:[#allocation10 + $0x1b8] sm:$0xff]  ;;  %v2447_v41 = vld [vmem:[#allocation10 + $0x1a0] sm:$0xff] }
 0x672   :  { %2237 = vmatprep.subr.mxu0 %v2168_v43  ;;  %2308 = vmatprep.subr.mxu1 %v2170_v45  ;;  %v2449_v43 = vld [vmem:[#allocation10 + $0x1b0] sm:$0xff]  ;;  %v2444_v45 = vld [vmem:[#allocation10 + $0x188] sm:$0xff] }
 0x673   :  { %2238 = vmatpush1.msra.mxu0 %v2167_v46  ;;  %2309 = vmatpush1.msra.mxu1 %v2169_v47  ;;  %v2446_v46 = vld [vmem:[#allocation10 + $0x198] sm:$0xff]  ;;  %v2443_v47 = vld [vmem:[#allocation10 + $0x180] sm:$0xff] }
 0x674   :  { %2239 = vmatprep.subr.mxu0 %v2164_v48  ;;  %2310 = vmatprep.subr.mxu1 %v2166_v49  ;;  %v2445_v48 = vld [vmem:[#allocation10 + $0x190] sm:$0xff]  ;;  %v2440_v49 = vld [vmem:[#allocation10 + $0x168] sm:$0xff] }
 0x675   :  { %2240 = vmatpush1.msra.mxu0 %v2163_v50  ;;  %2311 = vmatpush1.msra.mxu1 %v2165_v51  ;;  %v2442_v50 = vld [vmem:[#allocation10 + $0x178] sm:$0xff]  ;;  %v2439_v51 = vld [vmem:[#allocation10 + $0x160] sm:$0xff] }
 0x676   :  { %2241 = vmatprep.subr.mxu0 %v2160_v52  ;;  %2312 = vmatprep.subr.mxu1 %v2162_v54  ;;  %v2441_v52 = vld [vmem:[#allocation10 + $0x170] sm:$0xff]  ;;  %v2436_v54 = vld [vmem:[#allocation10 + $0x148] sm:$0xff] }
 0x677   :  { %2242 = vmatpush1.msra.mxu0 %v2159_v55  ;;  %2313 = vmatpush1.msra.mxu1 %v2161_v56  ;;  %v2438_v55 = vld [vmem:[#allocation10 + $0x158] sm:$0xff]  ;;  %v2435_v56 = vld [vmem:[#allocation10 + $0x140] sm:$0xff] }
 0x678   :  { %2243 = vmatprep.subr.mxu0 %v2156_v57  ;;  %2314 = vmatprep.subr.mxu1 %v2158_v58  ;;  %v2437_v57 = vld [vmem:[#allocation10 + $0x150] sm:$0xff]  ;;  %v2432_v58 = vld [vmem:[#allocation10 + $0x128] sm:$0xff] }
 0x679   :  { %2244 = vmatpush1.msra.mxu0 %v2155_v61  ;;  %2315 = vmatpush1.msra.mxu1 %v2157_v62  ;;  %v2434_v61 = vld [vmem:[#allocation10 + $0x138] sm:$0xff]  ;;  %v2431_v62 = vld [vmem:[#allocation10 + $0x120] sm:$0xff] }
 0x67a   :  { %2245 = vmatprep.subr.mxu0 %v2152_v42  ;;  %2316 = vmatprep.subr.mxu1 %v2154_v60  ;;  %v2433_v42 = vld [vmem:[#allocation10 + $0x130] sm:$0xff]  ;;  %v2428_v60 = vld [vmem:[#allocation10 + $0x108] sm:$0xff] }
 0x67b   :  { %2246 = vmatpush1.msra.mxu0 %v2151_v5  ;;  %2317 = vmatpush1.msra.mxu1 %v2153_v16  ;;  %v2430_v5 = vld [vmem:[#allocation10 + $0x118] sm:$0xff]  ;;  %v2427_v16 = vld [vmem:[#allocation10 + $0x100] sm:$0xff] }
 0x67c   :  { %2481 = vmatprep.subr.mxu0 %v2456_v53  ;;  %2594 = vmatprep.subr.mxu1 %v2458_v35  ;;  %v2429_v53 = vld [vmem:[#allocation10 + $0x110] sm:$0xff]  ;;  %v2424_v35 = vld [vmem:[#allocation10 + $0xe8] sm:$0xff] }
 0x71b   :  { %v2038_v2 = vpop.f32.mrf.mxu0  ;;  %v2109_v1 = vpop.f32.mrf.mxu1 }
 0x71c   :  { %v2114_v11 = vadd.f32 %v2038_v2, %v7484_v17  ;;  %v2116_v8 = vadd.f32 %v2109_v1, %v7487_v9  ;;  %v2426_v2 = vld [vmem:[#allocation10 + $0xf8] sm:$0xff]  ;;  %v2423_v17 = vld [vmem:[#allocation10 + $0xe0] sm:$0xff]  ;;  %v2416_v1 = vld [vmem:[#allocation10 + $0xa8] sm:$0xff] }
 0x71d   :  { %v2040_v26 = vpop.f32.mrf.mxu0  ;;  %v2111_v7 = vpop.f32.mrf.mxu1  ;;  %v2414_v9 = vld [vmem:[#allocation10 + $0x98] sm:$0xff] }
 0x71e   :  { %v4435_v13 = vmul.f32 -1.442695, %v2114_v11  ;;  %v2115_v6 = vadd.f32 %v2040_v26, %v7485_v63  ;;  %v2117_v0 = vadd.f32 %v2111_v7, %v7486_v44  ;;  %v2425_v11 = vld [vmem:[#allocation10 + $0xf0] sm:$0xff]  ;;  %v2420_v26 = vld [vmem:[#allocation10 + $0xc8] sm:$0xff]  ;;  %v2419_v63 = vld [vmem:[#allocation10 + $0xc0] sm:$0xff] }
 0x71f   :  { %v2415_v7 = vld [vmem:[#allocation10 + $0xa0] sm:$0xff]  ;;  %v2417_v44 = vld [vmem:[#allocation10 + $0xb0] sm:$0xff] }
 0x720   :  { %4679 = vpow2.f32 %v4435_v13  ;;  %v4436_v3 = vmul.f32 -1.442695, %v2115_v6  ;;  %v4437_v12 = vmul.f32 -1.442695, %v2117_v0  ;;  %v2422_v13 = vld [vmem:[#allocation10 + $0xd8] sm:$0xff]  ;;  %v2421_v6 = vld [vmem:[#allocation10 + $0xd0] sm:$0xff] }
 0x721   :  { %v2412_v0 = vld [vmem:[#allocation10 + $0x88] sm:$0xff] }
 0x722   :  { %4681 = vpow2.f32 %v4436_v3  ;;  %v2418_v3 = vld [vmem:[#allocation10 + $0xb8] sm:$0xff] }
 0x723   :  { %4683 = vtanh.f32 %v2116_v8  ;;  %v2411_v8 = vld [vmem:[#allocation10 + $0x80] sm:$0xff] }
 0x724   :  { %4685 = vpow2.f32 %v4437_v12  ;;  %v2413_v12 = vld [vmem:[#allocation10 + $0x90] sm:$0xff] }
 0x72d   :  { %v4680_v18 = vpop.eup %4679 }
 0x72e   :  { %v2121_v19 = vadd.f32 1.0, %v4680_v18  ;;  %v2408_v18 = vld [vmem:[#allocation10 + $0x68] sm:$0xff] }
 0x72f   :  { %v4682_v4 = vpop.eup %4681 }
 0x730   :  { %4687 = vrcp.f32 %v2121_v19  ;;  %v2127_v10 = vadd.f32 1.0, %v4682_v4  ;;  %v4684_v20 = vpop.eup %4683  ;;  %v2410_v19 = vld [vmem:[#allocation10 + $0x78] sm:$0xff]  ;;  %v2407_v4 = vld [vmem:[#allocation10 + $0x60] sm:$0xff] }
 0x731   :  { %v4686_v21 = vpop.eup %4685 }
 0x732   :  { %4689 = vrcp.f32 %v2127_v10  ;;  %v2134_v25 = vadd.f32 1.0, %v4686_v21  ;;  %v2409_v10 = vld [vmem:[#allocation10 + $0x70] sm:$0xff]  ;;  %v2406_v21 = vld [vmem:[#allocation10 + $0x58] sm:$0xff] }
 0x734   :  { %4691 = vrcp.f32 %v2134_v25  ;;  %v2402_v25 = vld [vmem:[#allocation10 + $0x38] sm:$0xff] }
 0x73d   :  { %v4688_v22 = vpop.eup %4687 }
 0x73e   :  { %v2138_v23 = vmul.f32 %v4688_v22, %v4684_v20  ;;  %v2404_v20 = vld [vmem:[#allocation10 + $0x48] sm:$0xff]  ;;  %v2403_v22 = vld [vmem:[#allocation10 + $0x40] sm:$0xff] }
 0x73f   :  { %v4690_v24 = vpop.eup %4689 }
 0x740   :  { %v2137_v28 = vmul.f32 %v4690_v24, %v6069_v59  ;;  %v2448_v59 = vld [vmem:[#allocation10 + $0x1a8] sm:$0xff] }
 0x741   :  { %v4692_v30 = vpop.eup %4691  ;;  %v2400_v24 = vld [vmem:[#allocation10 + $0x28] sm:$0xff] }
 0x742   :  { %v6083_v29 = vadd.f32 %v2138_v23, %v2137_v28  ;;  %v2405_v23 = vld [vmem:[#allocation10 + $0x50] sm:$0xff]  ;;  %v2399_v28 = vld [vmem:[#allocation10 + $0x20] sm:$0xff] }
 0x744   :  { %4693 = vtanh.f32 %v6083_v29 }
 0x751   :  { %v4694_v31 = vpop.eup %4693 }
 0x752   :  { %v6086_v32 = vmul.f32 %v4694_v31, %v4692_v30  ;;  %v2401_v30 = vld [vmem:[#allocation10 + $0x30] sm:$0xff]  ;;  %v2396_v31 = vld [vmem:[#allocation10 + $0x8] sm:$0xff] }
 0x754   :  { %2280 = vmatmul.mubr.f32.vlgmr.msra.gmra.mxu0 %v6086_v32  ;;  %2351 = vmatmul.mubr.f32.vlgmr.msra.gmra.mxu1 %v6086_v32 }
 0x755   :  { %2482 = vmatpush1.msra.mxu0 %v2455_v33  ;;  %2595 = vmatpush1.msra.mxu1 %v2457_v34  ;;  %v2398_v33 = vld [vmem:[#allocation10 + $0x18] sm:$0xff]  ;;  %v2395_v34 = vld [vmem:[#allocation10] sm:$0xff] }
 0x756   :  { %2483 = vmatprep.subr.mxu0 %v2452_v36  ;;  %2596 = vmatprep.subr.mxu1 %v2454_v37  ;;  %v2397_v36 = vld [vmem:[#allocation10 + $0x10] sm:$0xff] }
 0x757   :  { %2484 = vmatpush1.msra.mxu0 %v2451_v38  ;;  %2597 = vmatpush1.msra.mxu1 %v2453_v39  ;;  %v7488_v37 = vld [vmem:[#allocation70_spill] sm:$0xff]  ;;  %v7489_v38 = vld [vmem:[#allocation21_spill] sm:$0xff] }
 0x758   :  { %2485 = vmatprep.subr.mxu0 %v2448_v59  ;;  %2598 = vmatprep.subr.mxu1 %v2450_v40  ;;  %v7490_v39 = vld [vmem:[#allocation41_spill] sm:$0xff]  ;;  %v7491_v59 = vld [vmem:[#allocation44_spill] sm:$0xff]  ;;  %v6122_v40 = vld [vmem:[#allocation12 + $0x1f8] sm:$0xff] }
 0x759   :  { %2486 = vmatpush1.msra.mxu0 %v2447_v41  ;;  %2599 = vmatpush1.msra.mxu1 %v2449_v43  ;;  %7493 = vst [vmem:[#allocation43_spill] sm:$0xff] %v6122_v40  ;;  %v6128_v41 = vld [vmem:[#allocation12 + $0x1f0] sm:$0xff]  ;;  %v6134_v43 = vld [vmem:[#allocation12 + $0x1d8] sm:$0xff] }
 0x75a   :  { %2487 = vmatprep.subr.mxu0 %v2444_v45  ;;  %2600 = vmatprep.subr.mxu1 %v2446_v46  ;;  %v6138_v45 = vld [vmem:[#allocation12 + $0x1c0] sm:$0xff]  ;;  %v6140_v46 = vld [vmem:[#allocation12 + $0x1d0] sm:$0xff] }
 0x75b   :  { %2488 = vmatpush1.msra.mxu0 %v2443_v47  ;;  %2601 = vmatpush1.msra.mxu1 %v2445_v48  ;;  %v6144_v47 = vld [vmem:[#allocation12 + $0x1a8] sm:$0xff]  ;;  %v6146_v48 = vld [vmem:[#allocation12 + $0x1b8] sm:$0xff] }
 0x75c   :  { %2489 = vmatprep.subr.mxu0 %v2440_v49  ;;  %2602 = vmatprep.subr.mxu1 %v2442_v50  ;;  %v6150_v49 = vld [vmem:[#allocation12 + $0x1a0] sm:$0xff]  ;;  %v6152_v50 = vld [vmem:[#allocation12 + $0x1b0] sm:$0xff] }
 0x75d   :  { %2490 = vmatpush1.msra.mxu0 %v2439_v51  ;;  %2603 = vmatpush1.msra.mxu1 %v2441_v52  ;;  %v6156_v51 = vld [vmem:[#allocation12 + $0x188] sm:$0xff]  ;;  %v6158_v52 = vld [vmem:[#allocation12 + $0x198] sm:$0xff] }
 0x75e   :  { %2491 = vmatprep.subr.mxu0 %v2436_v54  ;;  %2604 = vmatprep.subr.mxu1 %v2438_v55  ;;  %v6162_v54 = vld [vmem:[#allocation12 + $0x180] sm:$0xff]  ;;  %v6164_v55 = vld [vmem:[#allocation12 + $0x190] sm:$0xff] }
 0x75f   :  { %2492 = vmatpush1.msra.mxu0 %v2435_v56  ;;  %2605 = vmatpush1.msra.mxu1 %v2437_v57  ;;  %v6168_v56 = vld [vmem:[#allocation12 + $0x168] sm:$0xff]  ;;  %v6170_v57 = vld [vmem:[#allocation12 + $0x178] sm:$0xff] }
 0x760   :  { %2493 = vmatprep.subr.mxu0 %v2432_v58  ;;  %2606 = vmatprep.subr.mxu1 %v2434_v61  ;;  %v6174_v58 = vld [vmem:[#allocation12 + $0x160] sm:$0xff]  ;;  %v6176_v61 = vld [vmem:[#allocation12 + $0x170] sm:$0xff] }
 0x761   :  { %2494 = vmatpush1.msra.mxu0 %v2431_v62  ;;  %2607 = vmatpush1.msra.mxu1 %v2433_v42  ;;  %v6180_v62 = vld [vmem:[#allocation12 + $0x148] sm:$0xff]  ;;  %v6182_v42 = vld [vmem:[#allocation12 + $0x158] sm:$0xff] }
 0x762   :  { %2495 = vmatprep.subr.mxu0 %v2428_v60  ;;  %2608 = vmatprep.subr.mxu1 %v2430_v5  ;;  %v6186_v60 = vld [vmem:[#allocation12 + $0x140] sm:$0xff]  ;;  %v6188_v5 = vld [vmem:[#allocation12 + $0x150] sm:$0xff] }
 0x763   :  { %2496 = vmatpush1.msra.mxu0 %v2427_v16  ;;  %2609 = vmatpush1.msra.mxu1 %v2429_v53  ;;  %v6192_v16 = vld [vmem:[#allocation12 + $0x128] sm:$0xff]  ;;  %v6194_v53 = vld [vmem:[#allocation12 + $0x138] sm:$0xff] }
 0x764   :  { %2497 = vmatprep.subr.mxu0 %v2424_v35  ;;  %2610 = vmatprep.subr.mxu1 %v2426_v2  ;;  %v6198_v35 = vld [vmem:[#allocation12 + $0x120] sm:$0xff]  ;;  %v6200_v2 = vld [vmem:[#allocation12 + $0x130] sm:$0xff] }
 0x765   :  { %2498 = vmatpush1.msra.mxu0 %v2423_v17  ;;  %2611 = vmatpush1.msra.mxu1 %v2425_v11  ;;  %v6204_v17 = vld [vmem:[#allocation12 + $0x108] sm:$0xff]  ;;  %v6206_v11 = vld [vmem:[#allocation12 + $0x118] sm:$0xff] }
 0x766   :  { %2499 = vmatprep.subr.mxu0 %v2420_v26  ;;  %2612 = vmatprep.subr.mxu1 %v2422_v13  ;;  %v6210_v26 = vld [vmem:[#allocation12 + $0x100] sm:$0xff]  ;;  %v6212_v13 = vld [vmem:[#allocation12 + $0x110] sm:$0xff] }
 0x767   :  { %2500 = vmatpush1.msra.mxu0 %v2419_v63  ;;  %2613 = vmatpush1.msra.mxu1 %v2421_v6  ;;  %v6216_v63 = vld [vmem:[#allocation12 + $0xe8] sm:$0xff]  ;;  %v6218_v6 = vld [vmem:[#allocation12 + $0xf8] sm:$0xff] }
 0x768   :  { %2501 = vmatprep.subr.mxu0 %v2416_v1  ;;  %2614 = vmatprep.subr.mxu1 %v2418_v3  ;;  %v6222_v1 = vld [vmem:[#allocation12 + $0xe0] sm:$0xff]  ;;  %v6224_v3 = vld [vmem:[#allocation12 + $0xf0] sm:$0xff] }
 0x769   :  { %2502 = vmatpush1.msra.mxu0 %v2415_v7  ;;  %2615 = vmatpush1.msra.mxu1 %v2417_v44  ;;  %v6228_v7 = vld [vmem:[#allocation12 + $0xc8] sm:$0xff]  ;;  %v6230_v44 = vld [vmem:[#allocation12 + $0xd8] sm:$0xff] }
 0x76a   :  { %2503 = vmatprep.subr.mxu0 %v2412_v0  ;;  %2616 = vmatprep.subr.mxu1 %v2414_v9  ;;  %v6234_v0 = vld [vmem:[#allocation12 + $0xc0] sm:$0xff]  ;;  %v6236_v9 = vld [vmem:[#allocation12 + $0xd0] sm:$0xff] }
 0x76b   :  { %2504 = vmatpush1.msra.mxu0 %v2411_v8  ;;  %2617 = vmatpush1.msra.mxu1 %v2413_v12  ;;  %v6240_v8 = vld [vmem:[#allocation12 + $0xa8] sm:$0xff]  ;;  %v6242_v12 = vld [vmem:[#allocation12 + $0xb8] sm:$0xff] }
 0x76c   :  { %2505 = vmatprep.subr.mxu0 %v2408_v18  ;;  %2618 = vmatprep.subr.mxu1 %v2410_v19  ;;  %v6246_v18 = vld [vmem:[#allocation12 + $0xa0] sm:$0xff]  ;;  %v6248_v19 = vld [vmem:[#allocation12 + $0xb0] sm:$0xff] }
 0x76d   :  { %2506 = vmatpush1.msra.mxu0 %v2407_v4  ;;  %2619 = vmatpush1.msra.mxu1 %v2409_v10  ;;  %7494 = vst [vmem:[#allocation46_spill] sm:$0xff] %v6248_v19  ;;  %v6252_v4 = vld [vmem:[#allocation12 + $0x88] sm:$0xff]  ;;  %v6254_v10 = vld [vmem:[#allocation12 + $0x98] sm:$0xff] }
 0x76e   :  { %2507 = vmatprep.subr.mxu0 %v2404_v20  ;;  %2620 = vmatprep.subr.mxu1 %v2406_v21  ;;  %7495 = vst [vmem:[#allocation48_spill] sm:$0xff] %v6252_v4  ;;  %7496 = vst [vmem:[#allocation49_spill] sm:$0xff] %v6254_v10  ;;  %v6258_v20 = vld [vmem:[#allocation12 + $0x80] sm:$0xff]  ;;  %v6260_v21 = vld [vmem:[#allocation12 + $0x90] sm:$0xff] }
 0x76f   :  { %2508 = vmatpush1.msra.mxu0 %v2403_v22  ;;  %2621 = vmatpush1.msra.mxu1 %v2405_v23  ;;  %7497 = vst [vmem:[#allocation47_spill] sm:$0xff] %v6258_v20  ;;  %7498 = vst [vmem:[#allocation50_spill] sm:$0xff] %v6260_v21  ;;  %v6264_v22 = vld [vmem:[#allocation12 + $0x68] sm:$0xff]  ;;  %v6266_v23 = vld [vmem:[#allocation12 + $0x78] sm:$0xff] }
 0x770   :  { %2509 = vmatprep.subr.mxu0 %v2400_v24  ;;  %2622 = vmatprep.subr.mxu1 %v2402_v25  ;;  %7499 = vst [vmem:[#allocation52_spill] sm:$0xff] %v6264_v22  ;;  %7500 = vst [vmem:[#allocation53_spill] sm:$0xff] %v6266_v23  ;;  %v6270_v24 = vld [vmem:[#allocation12 + $0x60] sm:$0xff]  ;;  %v6272_v25 = vld [vmem:[#allocation12 + $0x70] sm:$0xff] }
 0x771   :  { %2510 = vmatpush1.msra.mxu0 %v2399_v28  ;;  %2623 = vmatpush1.msra.mxu1 %v2401_v30  ;;  %7501 = vst [vmem:[#allocation51_spill] sm:$0xff] %v6270_v24  ;;  %7502 = vst [vmem:[#allocation22_spill] sm:$0xff] %v6272_v25  ;;  %v6276_v28 = vld [vmem:[#allocation12 + $0x48] sm:$0xff]  ;;  %v6278_v30 = vld [vmem:[#allocation12 + $0x58] sm:$0xff] }
 0x772   :  { %2511 = vmatprep.subr.mxu0 %v2396_v31  ;;  %2624 = vmatprep.subr.mxu1 %v2398_v33  ;;  %7503 = vst [vmem:[#allocation23_spill] sm:$0xff] %v6276_v28  ;;  %7504 = vst [vmem:[#allocation54_spill] sm:$0xff] %v6278_v30  ;;  %v6282_v31 = vld [vmem:[#allocation12 + $0x40] sm:$0xff]  ;;  %v6284_v33 = vld [vmem:[#allocation12 + $0x50] sm:$0xff] }
 0x773   :  { %2512 = vmatpush1.msra.mxu0 %v2395_v34  ;;  %2545 = vmatprep.mubr.f32.mxu0 %v7478_v27  ;;  %7505 = vst [vmem:[#allocation56_spill] sm:$0xff] %v6282_v31  ;;  %7506 = vst [vmem:[#allocation57_spill] sm:$0xff] %v6284_v33  ;;  %v6288_v34 = vld [vmem:[#allocation12 + $0x28] sm:$0xff] }
 0x774   :  { %2625 = vmatpush1.msra.mxu1 %v2397_v36  ;;  %2658 = vmatprep.mubr.f32.mxu1 %v7478_v27  ;;  %7507 = vst [vmem:[#allocation55_spill] sm:$0xff] %v6288_v34  ;;  %v6290_v36 = vld [vmem:[#allocation12 + $0x38] sm:$0xff] }
 0x775   :  { %2546 = vmatmul.mubr.f32.vlgmr.msra.gmra.mxu0 %v7488_v37  ;;  %2659 = vmatmul.mubr.f32.vlgmr.msra.gmra.mxu1 %v7488_v37  ;;  %7508 = vst [vmem:[#allocation24_spill] sm:$0xff] %v6290_v36  ;;  %v6294_v37 = vld [vmem:[#allocation12 + $0x20] sm:$0xff] }
 0x776   :  { %2551 = vmatprep.mubr.f32.mxu0 %v7478_v27  ;;  %2664 = vmatprep.mubr.f32.mxu1 %v7478_v27  ;;  %7509 = vst [vmem:[#allocation25_spill] sm:$0xff] %v6294_v37 }
 0x777   :  { %2878 = vmatprep.subr.mxu1 %v6122_v40 }
 0x778   :  { %2879 = vmatpush1.msra.mxu1 %v6128_v41 }
 0x779   :  { %2552 = vmatmul.mubr.f32.gmra.mxu0 %v7489_v38  ;;  %2665 = vmatmul.mubr.f32.gmra.mxu1 %v7489_v38  ;;  %v6296_v38 = vld [vmem:[#allocation12 + $0x30] sm:$0xff] }
 0x77a   :  { %2557 = vmatprep.mubr.f32.mxu0 %v7478_v27  ;;  %2670 = vmatprep.mubr.f32.mxu1 %v7478_v27  ;;  %7510 = vst [vmem:[#allocation26_spill] sm:$0xff] %v6296_v38 }
 0x77b   :  { %2880 = vmatprep.subr.mxu1 %v6134_v43 }
 0x77c   :  { %2881 = vmatpush1.msra.mxu1 %v6140_v46 }
 0x77d   :  { %2558 = vmatmul.mubr.f32.gmra.mxu0 %v7490_v39  ;;  %2671 = vmatmul.mubr.f32.gmra.mxu1 %v7490_v39  ;;  %v6300_v39 = vld [vmem:[#allocation12 + $0x8] sm:$0xff] }
 0x77e   :  { %2563 = vmatprep.mubr.f32.mxu0 %v7478_v27  ;;  %2676 = vmatprep.mubr.f32.mxu1 %v7478_v27  ;;  %7511 = vst [vmem:[#allocation27_spill] sm:$0xff] %v6300_v39 }
 0x77f   :  { %2882 = vmatprep.subr.mxu1 %v6146_v48 }
 0x780   :  { %2883 = vmatpush1.msra.mxu1 %v6152_v50 }
 0x781   :  { %2564 = vmatmul.mubr.f32.gmra.mxu0 %v7491_v59  ;;  %2677 = vmatmul.mubr.f32.gmra.mxu1 %v7491_v59  ;;  %v6302_v59 = vld [vmem:[#allocation12 + $0x18] sm:$0xff] }
 0x782   :  { %2569 = vmatprep.mubr.f32.mxu0 %v7478_v27  ;;  %2682 = vmatprep.mubr.f32.mxu1 %v7478_v27  ;;  %7512 = vst [vmem:[#allocation28_spill] sm:$0xff] %v6302_v59 }
 0x783   :  { %2884 = vmatprep.subr.mxu1 %v6158_v52 }
 0x784   :  { %2885 = vmatpush1.msra.mxu1 %v6164_v55 }
 0x785   :  { %2570 = vmatmul.mubr.f32.gmra.mxu0 %v5996_v14  ;;  %2683 = vmatmul.mubr.f32.gmra.mxu1 %v5996_v14  ;;  %v6120_v14 = vld [vmem:[#allocation12 + $0x1e8] sm:$0xff] }
 0x786   :  { %2575 = vmatprep.mubr.f32.mxu0 %v7478_v27  ;;  %2688 = vmatprep.mubr.f32.mxu1 %v7478_v27  ;;  %7492 = vst [vmem:[#allocation45_spill] sm:$0xff] %v6120_v14 }
 0x787   :  { %2807 = vmatprep.subr.mxu0 %v6120_v14  ;;  %2886 = vmatprep.subr.mxu1 %v6170_v57 }
 0x788   :  { %2887 = vmatpush1.msra.mxu1 %v6176_v61 }
 0x789   :  { %2576 = vmatmul.mubr.f32.gmra.mxu0 %v6072_v15  ;;  %2689 = vmatmul.mubr.f32.gmra.mxu1 %v6072_v15  ;;  %v6126_v15 = vld [vmem:[#allocation12 + $0x1e0] sm:$0xff] }
 0x78a   :  { %2581 = vmatprep.mubr.f32.mxu0 %v7478_v27  ;;  %2694 = vmatprep.mubr.f32.mxu1 %v7478_v27 }
 0x78b   :  { %2808 = vmatpush1.msra.mxu0 %v6126_v15  ;;  %2888 = vmatprep.subr.mxu1 %v6182_v42 }
 0x78c   :  { %2889 = vmatpush1.msra.mxu1 %v6188_v5 }
 0x78d   :  { %2582 = vmatmul.mubr.f32.gmra.mxu0 %v6086_v32  ;;  %2695 = vmatmul.mubr.f32.gmra.mxu1 %v6086_v32  ;;  %v6132_v32 = vld [vmem:[#allocation12 + $0x1c8] sm:$0xff] }
 0x78e   :  { %2587 = vmatprep.mubr.f32.mxu0 %v7478_v27  ;;  %2700 = vmatprep.mubr.f32.mxu1 %v7478_v27 }
 0x78f   :  { %2809 = vmatprep.subr.mxu0 %v6132_v32  ;;  %2890 = vmatprep.subr.mxu1 %v6194_v53 }
 0x790   :  { %2810 = vmatpush1.msra.mxu0 %v6138_v45  ;;  %2891 = vmatpush1.msra.mxu1 %v6200_v2 }
 0x791   :  { %2811 = vmatprep.subr.mxu0 %v6144_v47  ;;  %2892 = vmatprep.subr.mxu1 %v6206_v11 }
 0x792   :  { %2812 = vmatpush1.msra.mxu0 %v6150_v49  ;;  %2893 = vmatpush1.msra.mxu1 %v6212_v13 }
 0x793   :  { %2813 = vmatprep.subr.mxu0 %v6156_v51  ;;  %2894 = vmatprep.subr.mxu1 %v6218_v6 }
 0x794   :  { %2814 = vmatpush1.msra.mxu0 %v6162_v54  ;;  %2895 = vmatpush1.msra.mxu1 %v6224_v3 }
 0x795   :  { %2815 = vmatprep.subr.mxu0 %v6168_v56  ;;  %2896 = vmatprep.subr.mxu1 %v6230_v44 }
 0x796   :  { %2816 = vmatpush1.msra.mxu0 %v6174_v58  ;;  %2897 = vmatpush1.msra.mxu1 %v6236_v9 }
 0x797   :  { %2817 = vmatprep.subr.mxu0 %v6180_v62  ;;  %2898 = vmatprep.subr.mxu1 %v6242_v12 }
 0x798   :  { %2818 = vmatpush1.msra.mxu0 %v6186_v60  ;;  %2899 = vmatpush1.msra.mxu1 %v6248_v19 }
 0x799   :  { %2819 = vmatprep.subr.mxu0 %v6192_v16  ;;  %2900 = vmatprep.subr.mxu1 %v6254_v10 }
 0x79a   :  { %2820 = vmatpush1.msra.mxu0 %v6198_v35  ;;  %2901 = vmatpush1.msra.mxu1 %v6260_v21 }
 0x79b   :  { %2821 = vmatprep.subr.mxu0 %v6204_v17  ;;  %2902 = vmatprep.subr.mxu1 %v6266_v23  ;;  %v7517_v23 = vld [vmem:[#allocation69_spill] sm:$0xff] }
 0x79c   :  { %2822 = vmatpush1.msra.mxu0 %v6210_v26  ;;  %2903 = vmatpush1.msra.mxu1 %v6272_v25 }
 0x79d   :  { %2823 = vmatprep.subr.mxu0 %v6216_v63  ;;  %2904 = vmatprep.subr.mxu1 %v6278_v30 }
 0x79e   :  { %2824 = vmatpush1.msra.mxu0 %v6222_v1  ;;  %2905 = vmatpush1.msra.mxu1 %v6284_v33  ;;  %v6304_v33 = vld [vmem:[#allocation12] sm:$0xff] }
 0x79f   :  { %2825 = vmatprep.subr.mxu0 %v6228_v7  ;;  %2906 = vmatprep.subr.mxu1 %v6290_v36  ;;  %7513 = vst [vmem:[#allocation29_spill] sm:$0xff] %v6304_v33 }
 0x7a0   :  { %2826 = vmatpush1.msra.mxu0 %v6234_v0  ;;  %2907 = vmatpush1.msra.mxu1 %v6296_v38 }
 0x7a1   :  { %2827 = vmatprep.subr.mxu0 %v6240_v8  ;;  %2908 = vmatprep.subr.mxu1 %v6302_v59 }
 0x7a2   :  { %2828 = vmatpush1.msra.mxu0 %v6246_v18 }
 0x7a3   :  { %2829 = vmatprep.subr.mxu0 %v6252_v4 }
 0x7a4   :  { %2830 = vmatpush1.msra.mxu0 %v6258_v20 }
 0x7a5   :  { %2831 = vmatprep.subr.mxu0 %v6264_v22  ;;  %v7518_v22 = vld [vmem:[#allocation67_spill] sm:$0xff] }
 0x7a6   :  { %2832 = vmatpush1.msra.mxu0 %v6270_v24 }
 0x7a7   :  { %2833 = vmatprep.subr.mxu0 %v6276_v28  ;;  %v7516_v28 = vld [vmem:[#allocation68_spill] sm:$0xff] }
 0x7a8   :  { %2834 = vmatpush1.msra.mxu0 %v6282_v31 }
 0x7a9   :  { %2835 = vmatprep.subr.mxu0 %v6288_v34  ;;  %v6308_v34 = vld [vmem:[#allocation12 + $0x10] sm:$0xff] }
 0x7aa   :  { %2836 = vmatpush1.msra.mxu0 %v6294_v37  ;;  %7514 = vst [vmem:[#allocation30_spill] sm:$0xff] %v6308_v34  ;;  %2909 = vmatpush1.msra.mxu1 %v6308_v34  ;;  %v7515_v37 = vld [vmem:[#allocation66_spill] sm:$0xff] }
 0x7ab   :  { %2837 = vmatprep.subr.mxu0 %v6300_v39  ;;  %3052 = vmatprep.subr.mxu1 %v6122_v40 }
 0x7ac   :  { %2838 = vmatpush1.msra.mxu0 %v6304_v33 }
 0x7ad   :  { %2981 = vmatprep.subr.mxu0 %v6120_v14 }
 0x814   :  { %v2281_v38 = vpop.f32.mrf.mxu0  ;;  %v2352_v39 = vpop.f32.mrf.mxu1 }
 0x815   :  { %v2357_v36 = vadd.f32 %v2281_v38, %v7515_v37  ;;  %v2359_v34 = vadd.f32 %v2352_v39, %v7518_v22  ;;  %v7525_v39 = vld [vmem:[#allocation23_spill] sm:$0xff] }
 0x816   :  { %v2283_v31 = vpop.f32.mrf.mxu0  ;;  %v2354_v24 = vpop.f32.mrf.mxu1 }
 0x817   :  { %v4438_v30 = vmul.f32 -1.442695, %v2357_v36  ;;  %v2358_v25 = vadd.f32 %v2283_v31, %v7516_v28  ;;  %v2360_v33 = vadd.f32 %v2354_v24, %v7517_v23 }
 0x819   :  { %4695 = vpow2.f32 %v4438_v30  ;;  %v4439_v59 = vmul.f32 -1.442695, %v2358_v25  ;;  %v4440_v21 = vmul.f32 -1.442695, %v2360_v33  ;;  %v7523_v33 = vld [vmem:[#allocation51_spill] sm:$0xff] }
 0x81b   :  { %4697 = vpow2.f32 %v4439_v59 }
 0x81c   :  { %4699 = vtanh.f32 %v2359_v34  ;;  %v7524_v34 = vld [vmem:[#allocation22_spill] sm:$0xff] }
 0x81d   :  { %4701 = vpow2.f32 %v4440_v21  ;;  %v7522_v21 = vld [vmem:[#allocation53_spill] sm:$0xff] }
 0x826   :  { %v4696_v14 = vpop.eup %4695 }
 0x827   :  { %v2364_v20 = vadd.f32 1.0, %v4696_v14 }
 0x828   :  { %v4698_v40 = vpop.eup %4697 }
 0x829   :  { %4703 = vrcp.f32 %v2364_v20  ;;  %v2370_v37 = vadd.f32 1.0, %v4698_v40  ;;  %v4700_v36 = vpop.eup %4699  ;;  %v7520_v40 = vld [vmem:[#allocation50_spill] sm:$0xff]  ;;  %v7521_v20 = vld [vmem:[#allocation52_spill] sm:$0xff] }
 0x82a   :  { %v4702_v28 = vpop.eup %4701 }
 0x82b   :  { %4705 = vrcp.f32 %v2370_v37  ;;  %v2377_v38 = vadd.f32 1.0, %v4702_v28  ;;  %v7526_v37 = vld [vmem:[#allocation54_spill] sm:$0xff]  ;;  %v7528_v28 = vld [vmem:[#allocation57_spill] sm:$0xff] }
 0x82d   :  { %4707 = vrcp.f32 %v2377_v38  ;;  %v7532_v38 = vld [vmem:[#allocation26_spill] sm:$0xff] }
 0x836   :  { %v4704_v30 = vpop.eup %4703 }
 0x837   :  { %v2381_v31 = vmul.f32 %v4704_v30, %v4700_v36  ;;  %v7527_v36 = vld [vmem:[#allocation56_spill] sm:$0xff]  ;;  %v7529_v30 = vld [vmem:[#allocation55_spill] sm:$0xff] }
 0x838   :  { %v4706_v25 = vpop.eup %4705 }
 0x839   :  { %v2380_v59 = vmul.f32 %v4706_v25, %v6083_v29  ;;  %v7519_v29 = vld [vmem:[#allocation47_spill] sm:$0xff]  ;;  %v7531_v25 = vld [vmem:[#allocation25_spill] sm:$0xff] }
 0x83a   :  { %v4708_v22 = vpop.eup %4707 }
 0x83b   :  { %v2382_v23 = vadd.f32 %v2381_v31, %v2380_v59  ;;  %v7530_v31 = vld [vmem:[#allocation24_spill] sm:$0xff]  ;;  %v7533_v59 = vld [vmem:[#allocation27_spill] sm:$0xff] }
 0x83d   :  { %4709 = vtanh.f32 %v2382_v23  ;;  %v7534_v23 = vld [vmem:[#allocation28_spill] sm:$0xff] }
 0x84a   :  { %v4710_v24 = vpop.eup %4709 }
 0x84b   :  { %v2384_v14 = vmul.f32 %v4710_v24, %v4708_v22  ;;  %v7535_v22 = vld [vmem:[#allocation29_spill] sm:$0xff]  ;;  %v7536_v24 = vld [vmem:[#allocation30_spill] sm:$0xff] }
 0x84d   :  { %2588 = vmatmul.mubr.f32.gmra.mxu0 %v2384_v14  ;;  %2701 = vmatmul.mubr.f32.gmra.mxu1 %v2384_v14  ;;  %v7537_v14 = vld [vmem:[#allocation45_spill] sm:$0xff] }
 0x84e   :  { %2871 = vmatprep.mubr.f32.mxu0 %v7478_v27  ;;  %2942 = vmatprep.mubr.f32.mxu1 %v7478_v27 }
 0x851   :  { %2872 = vmatmul.mubr.f32.vlgmr.msra.gmra.mxu0 %v7478_v27  ;;  %2943 = vmatmul.mubr.f32.vlgmr.msra.gmra.mxu1 %v7478_v27 }
 0x852   :  { %2982 = vmatpush1.msra.mxu0 %v6126_v15  ;;  %3053 = vmatpush1.msra.mxu1 %v6128_v41 }
 0x853   :  { %2983 = vmatprep.subr.mxu0 %v6132_v32  ;;  %3054 = vmatprep.subr.mxu1 %v6134_v43 }
 0x854   :  { %2984 = vmatpush1.msra.mxu0 %v6138_v45  ;;  %3055 = vmatpush1.msra.mxu1 %v6140_v46 }
 0x855   :  { %2985 = vmatprep.subr.mxu0 %v6144_v47  ;;  %3056 = vmatprep.subr.mxu1 %v6146_v48 }
 0x856   :  { %2986 = vmatpush1.msra.mxu0 %v6150_v49  ;;  %3057 = vmatpush1.msra.mxu1 %v6152_v50 }
 0x857   :  { %2987 = vmatprep.subr.mxu0 %v6156_v51  ;;  %3058 = vmatprep.subr.mxu1 %v6158_v52 }
 0x858   :  { %2988 = vmatpush1.msra.mxu0 %v6162_v54  ;;  %3059 = vmatpush1.msra.mxu1 %v6164_v55 }
 0x859   :  { %2989 = vmatprep.subr.mxu0 %v6168_v56  ;;  %3060 = vmatprep.subr.mxu1 %v6170_v57 }
 0x85a   :  { %2990 = vmatpush1.msra.mxu0 %v6174_v58  ;;  %3061 = vmatpush1.msra.mxu1 %v6176_v61 }
 0x85b   :  { %2991 = vmatprep.subr.mxu0 %v6180_v62  ;;  %3062 = vmatprep.subr.mxu1 %v6182_v42 }
 0x85c   :  { %2992 = vmatpush1.msra.mxu0 %v6186_v60  ;;  %3063 = vmatpush1.msra.mxu1 %v6188_v5 }
 0x85d   :  { %2993 = vmatprep.subr.mxu0 %v6192_v16  ;;  %3064 = vmatprep.subr.mxu1 %v6194_v53 }
 0x85e   :  { %2994 = vmatpush1.msra.mxu0 %v6198_v35  ;;  %3065 = vmatpush1.msra.mxu1 %v6200_v2 }
 0x85f   :  { %2995 = vmatprep.subr.mxu0 %v6204_v17  ;;  %3066 = vmatprep.subr.mxu1 %v6206_v11 }
 0x860   :  { %2996 = vmatpush1.msra.mxu0 %v6210_v26  ;;  %3067 = vmatpush1.msra.mxu1 %v6212_v13 }
 0x861   :  { %2997 = vmatprep.subr.mxu0 %v6216_v63  ;;  %3068 = vmatprep.subr.mxu1 %v6218_v6 }
 0x862   :  { %2998 = vmatpush1.msra.mxu0 %v6222_v1  ;;  %3069 = vmatpush1.msra.mxu1 %v6224_v3 }
 0x863   :  { %2999 = vmatprep.subr.mxu0 %v6228_v7  ;;  %3070 = vmatprep.subr.mxu1 %v6230_v44 }
 0x864   :  { %3000 = vmatpush1.msra.mxu0 %v6234_v0  ;;  %3071 = vmatpush1.msra.mxu1 %v6236_v9 }
 0x865   :  { %3001 = vmatprep.subr.mxu0 %v6240_v8  ;;  %3072 = vmatprep.subr.mxu1 %v6242_v12 }
 0x866   :  { %3002 = vmatpush1.msra.mxu0 %v6246_v18  ;;  %3073 = vmatpush1.msra.mxu1 %v6248_v19 }
 0x867   :  { %3003 = vmatprep.subr.mxu0 %v6252_v4  ;;  %3074 = vmatprep.subr.mxu1 %v6254_v10 }
 0x868   :  { %3004 = vmatpush1.msra.mxu0 %v7519_v29  ;;  %3075 = vmatpush1.msra.mxu1 %v7520_v40 }
 0x869   :  { %3005 = vmatprep.subr.mxu0 %v7521_v20  ;;  %3076 = vmatprep.subr.mxu1 %v7522_v21 }
 0x86a   :  { %3006 = vmatpush1.msra.mxu0 %v7523_v33  ;;  %3077 = vmatpush1.msra.mxu1 %v7524_v34 }
 0x86b   :  { %3007 = vmatprep.subr.mxu0 %v7525_v39  ;;  %3078 = vmatprep.subr.mxu1 %v7526_v37 }
 0x86c   :  { %3008 = vmatpush1.msra.mxu0 %v7527_v36  ;;  %3079 = vmatpush1.msra.mxu1 %v7528_v28 }
 0x86d   :  { %3009 = vmatprep.subr.mxu0 %v7529_v30  ;;  %3080 = vmatprep.subr.mxu1 %v7530_v31  ;;  %v7538_v30 = vld [vmem:[#allocation43_spill] sm:$0xff]  ;;  %v2547_v31 = vpop.f32.mrf.mxu0 }
 0x86e   :  { %3010 = vmatpush1.msra.mxu0 %v7531_v25  ;;  %3081 = vmatpush1.msra.mxu1 %v7532_v38  ;;  %v2660_v25 = vpop.f32.mrf.mxu1 }
 0x86f   :  { %3011 = vmatprep.subr.mxu0 %v7533_v59  ;;  %3082 = vmatprep.subr.mxu1 %v7534_v23  ;;  %v2549_v28 = vpop.f32.mrf.mxu0 }
 0x870   :  { %3012 = vmatpush1.msra.mxu0 %v7535_v22  ;;  %3045 = vmatprep.mubr.f32.mxu0 %v7478_v27  ;;  %v2662_v38 = vpop.f32.mrf.mxu1 }
 0x871   :  { %3083 = vmatpush1.msra.mxu1 %v7536_v24  ;;  %3116 = vmatprep.mubr.f32.mxu1 %v7478_v27  ;;  %v6389_v36 = vpop.f32.mrf.mxu0 }
 0x872   :  { %3155 = vmatprep.subr.mxu0 %v7537_v14  ;;  %3226 = vmatprep.subr.mxu1 %v7538_v30  ;;  %7539 = vst [vmem:[#allocation31_spill] sm:$0xff] %v6389_v36  ;;  %v6391_v59 = vpop.f32.mrf.mxu1 }
 0x873   :  { %7540 = vst [vmem:[#allocation32_spill] sm:$0xff] %v6391_v59  ;;  %v6393_v23 = vpop.f32.mrf.mxu0 }
 0x874   :  { %7541 = vst [vmem:[#allocation33_spill] sm:$0xff] %v6393_v23  ;;  %v6395_v22 = vpop.f32.mrf.mxu1 }
 0x875   :  { %7542 = vst [vmem:[#allocation34_spill] sm:$0xff] %v6395_v22  ;;  %v6397_v37 = vpop.f32.mrf.mxu0 }
 0x876   :  { %7543 = vst [vmem:[#allocation35_spill] sm:$0xff] %v6397_v37  ;;  %v6399_v24 = vpop.f32.mrf.mxu1 }
 0x877   :  { %7544 = vst [vmem:[#allocation36_spill] sm:$0xff] %v6399_v24  ;;  %v6401_v27 = vpop.f32.mrf.mxu0 }
 0x878   :  { %7545 = vst [vmem:[#allocation37_spill] sm:$0xff] %v6401_v27  ;;  %v6403_v14 = vpop.f32.mrf.mxu1 }
 0x879   :  { %7546 = vst [vmem:[#allocation38_spill] sm:$0xff] %v6403_v14  ;;  %v6405_v30 = vpop.f32.mrf.mxu0 }
 0x87a   :  { %7547 = vst [vmem:[#allocation39_spill] sm:$0xff] %v6405_v30  ;;  %v6407_v39 = vpop.f32.mrf.mxu1 }
 0x87b   :  { %7548 = vst [vmem:[#allocation40_spill] sm:$0xff] %v6407_v39  ;;  %v6409_v34 = vpop.f32.mrf.mxu0 }
 0x87c   :  { %7549 = vst [vmem:[#allocation58_spill] sm:$0xff] %v6409_v34  ;;  %v6411_v36 = vpop.f32.mrf.mxu1 }
 0x87d   :  { %7550 = vst [vmem:[#allocation60_spill] sm:$0xff] %v6411_v36  ;;  %v6413_v59 = vpop.f32.mrf.mxu0 }
 0x87e   :  { %7551 = vst [vmem:[#allocation61_spill] sm:$0xff] %v6413_v59  ;;  %v6415_v23 = vpop.f32.mrf.mxu1 }
 0x87f   :  { %7552 = vst [vmem:[#allocation59_spill] sm:$0xff] %v6415_v23  ;;  %v6417_v22 = vpop.f32.mrf.mxu0  ;;  %v2459_v23 = vld [vmem:[%s7125_s6] sm:$0xf] }
 0x880   :  { %7553 = vst [vmem:[#allocation62_spill] sm:$0xff] %v6417_v22  ;;  %v6419_v37 = vpop.f32.mrf.mxu1  ;;  %v7562_v22 = vld [vmem:[#allocation42_spill] sm:$0xff] }
 0x881   :  { %7554 = vst [vmem:[#allocation64_spill] sm:$0xff] %v6419_v37  ;;  %v6421_v24 = vpop.f32.mrf.mxu0  ;;  %v7563_v37 = vsub.s32 0, %v7562_v22 }
 0x882   :  { %7555 = vst [vmem:[#allocation65_spill] sm:$0xff] %v6421_v24  ;;  %v6423_v27 = vpop.f32.mrf.mxu1 }
 0x883   :  { %7556 = vst [vmem:[#allocation63_spill] sm:$0xff] %v6423_v27  ;;  %v6425_v14 = vpop.f32.mrf.mxu0  ;;  %v6440_v36 = vrot.slane %v2459_v23, %v7563_v37 }
 0x884   :  { %7557 = vst [vmem:[#allocation70_spill] sm:$0xff] %v6425_v14  ;;  %v6427_v30 = vpop.f32.mrf.mxu1 }
 0x885   :  { %7558 = vst [vmem:[#allocation21_spill] sm:$0xff] %v6427_v30  ;;  %v6429_v39 = vpop.f32.mrf.mxu0  ;;  %7564 = vst [vmem:[#allocation68_spill] sm:$0xff] %v6440_v36  ;;  %v7567_v30 = vsub.s32 1, %v7562_v22  ;;  %v2548_v33 = vadd.f32 %v2547_v31, %v6440_v36 }
 0x886   :  { %7559 = vst [vmem:[#allocation41_spill] sm:$0xff] %v6429_v39  ;;  %v6431_v34 = vpop.f32.mrf.mxu1 }
 0x887   :  { %7560 = vst [vmem:[#allocation44_spill] sm:$0xff] %v6431_v34  ;;  %v6436_v59 = vpop.f32.mrf.mxu0  ;;  %v6448_v14 = vrot.slane %v2459_v23, %v7567_v30  ;;  %v7571_v30 = vsub.s32 3, %v7562_v22 }
 0x888   :  { %7561 = vst [vmem:[#allocation66_spill] sm:$0xff] %v6436_v59  ;;  %v6442_v24 = vpop.f32.mrf.mxu1 }
 0x889   :  { %7565 = vst [vmem:[#allocation69_spill] sm:$0xff] %v6442_v24  ;;  %v2550_v59 = vadd.f32 %v2549_v28, %v6448_v14  ;;  %v6460_v4 = vrot.slane %v2459_v23, %v7571_v30 }
 0x88b   :  { %7572 = vst [vmem:[#allocation73_spill] sm:$0xff] %v6460_v4  ;;  %v2663_v31 = vadd.f32 %v2662_v38, %v6460_v4 }
 0x90d   :  { %v6444_v27 = vpop.f32.mrf.mxu0  ;;  %v6450_v39 = vpop.f32.mrf.mxu1 }
 0x90e   :  { %7566 = vst [vmem:[#allocation67_spill] sm:$0xff] %v6444_v27  ;;  %7568 = vst [vmem:[#allocation42_spill] sm:$0xff] %v6450_v39 }
 0x90f   :  { %v6452_v34 = vpop.f32.mrf.mxu0  ;;  %v6456_v20 = vpop.f32.mrf.mxu1 }
 0x910   :  { %7569 = vst [vmem:[#allocation71_spill] sm:$0xff] %v6452_v34  ;;  %7570 = vst [vmem:[#allocation72_spill] sm:$0xff] %v6456_v20  ;;  %v7573_v34 = vsub.s32 2, %v7562_v22 }
 0x911   :  { %v2873_v21 = vpop.f32.mrf.mxu0  ;;  %v2944_v27 = vpop.f32.mrf.mxu1 }
 0x912   :  { %v2949_v37 = vadd.f32 %v2873_v21, %v2548_v33  ;;  %v6465_v28 = vrot.slane %v2459_v23, %v7573_v34 }
 0x913   :  { %v2875_v40 = vpop.f32.mrf.mxu0  ;;  %v2946_v39 = vpop.f32.mrf.mxu1 }
 0x914   :  { %v4441_v24 = vmul.f32 -1.442695, %v2949_v37  ;;  %v2950_v29 = vadd.f32 %v2875_v40, %v2550_v59  ;;  %v2952_v20 = vadd.f32 %v2946_v39, %v2663_v31  ;;  %v2661_v21 = vadd.f32 %v2660_v25, %v6465_v28  ;;  %v7576_v31 = vld [vmem:[#allocation49_spill] sm:$0xff] }
 0x916   :  { %4711 = vpow2.f32 %v4441_v24  ;;  %v4442_v10 = vmul.f32 -1.442695, %v2950_v29  ;;  %v4443_v33 = vmul.f32 -1.442695, %v2952_v20  ;;  %v2951_v59 = vadd.f32 %v2944_v27, %v2661_v21  ;;  %v7577_v21 = vld [vmem:[#allocation47_spill] sm:$0xff] }
 0x918   :  { %4713 = vpow2.f32 %v4442_v10 }
 0x919   :  { %4715 = vpow2.f32 %v4443_v33  ;;  %v7578_v33 = vld [vmem:[#allocation50_spill] sm:$0xff] }
 0x923   :  { %v4712_v40 = vpop.eup %4711 }
 0x924   :  { %v2956_v24 = vadd.f32 1.0, %v4712_v40  ;;  %v7579_v40 = vld [vmem:[#allocation52_spill] sm:$0xff] }
 0x925   :  { %v4714_v29 = vpop.eup %4713 }
 0x926   :  { %4717 = vrcp.f32 %v2956_v24  ;;  %v2962_v37 = vadd.f32 1.0, %v4714_v29  ;;  %v4716_v10 = vpop.eup %4715  ;;  %v7581_v24 = vld [vmem:[#allocation51_spill] sm:$0xff]  ;;  %v7582_v29 = vld [vmem:[#allocation22_spill] sm:$0xff] }
 0x927   :  { %4719 = vtanh.f32 %v2951_v59  ;;  %v2969_v22 = vadd.f32 1.0, %v4716_v10  ;;  %v7580_v59 = vld [vmem:[#allocation53_spill] sm:$0xff]  ;;  %v7584_v10 = vld [vmem:[#allocation54_spill] sm:$0xff] }
 0x928   :  { %4721 = vrcp.f32 %v2962_v37  ;;  %v7583_v37 = vld [vmem:[#allocation23_spill] sm:$0xff] }
 0x929   :  { %4723 = vrcp.f32 %v2969_v22  ;;  %v7587_v22 = vld [vmem:[#allocation55_spill] sm:$0xff] }
 0x933   :  { %v4718_v30 = vpop.eup %4717 }
 0x934   :  { %v4720_v38 = vpop.eup %4719 }
 0x935   :  { %v4722_v4 = vpop.eup %4721  ;;  %v2973_v23 = vmul.f32 %v4720_v38, %v4718_v30  ;;  %v7585_v30 = vld [vmem:[#allocation56_spill] sm:$0xff]  ;;  %v7586_v38 = vld [vmem:[#allocation57_spill] sm:$0xff] }
 0x936   :  { %v2972_v34 = vmul.f32 0.0, %v4722_v4  ;;  %v4724_v27 = vpop.eup %4723  ;;  %v7575_v4 = vld [vmem:[#allocation48_spill] sm:$0xff] }
 0x938   :  { %v6468_v39 = vadd.f32 %v2973_v23, %v2972_v34  ;;  %v7588_v34 = vld [vmem:[#allocation24_spill] sm:$0xff]  ;;  %v7589_v23 = vld [vmem:[#allocation25_spill] sm:$0xff] }
 0x93a   :  { %4725 = vtanh.f32 %v6468_v39 }
 0x947   :  { %v4726_v20 = vpop.eup %4725 }
 0x948   :  { %v6471_v25 = vmul.f32 %v4726_v20, %v4724_v27  ;;  %v7590_v27 = vld [vmem:[#allocation26_spill] sm:$0xff]  ;;  %v7591_v20 = vld [vmem:[#allocation27_spill] sm:$0xff] }
 0x94a   :  { %7574 = vst [vmem:[#allocation74_spill] sm:$0xff] %v6471_v25  ;;  %3046 = vmatmul.mubr.f32.vlgmr.msra.gmra.mxu0 %v6471_v25  ;;  %3117 = vmatmul.mubr.f32.vlgmr.msra.gmra.mxu1 %v6471_v25  ;;  %v7592_v25 = vld [vmem:[#allocation28_spill] sm:$0xff] }
 0x94b   :  { %3156 = vmatpush1.msra.mxu0 %v6126_v15  ;;  %3227 = vmatpush1.msra.mxu1 %v6128_v41 }
 0x94c   :  { %3157 = vmatprep.subr.mxu0 %v6132_v32  ;;  %3228 = vmatprep.subr.mxu1 %v6134_v43 }
 0x94d   :  { %3158 = vmatpush1.msra.mxu0 %v6138_v45  ;;  %3229 = vmatpush1.msra.mxu1 %v6140_v46 }
 0x94e   :  { %3159 = vmatprep.subr.mxu0 %v6144_v47  ;;  %3230 = vmatprep.subr.mxu1 %v6146_v48 }
 0x94f   :  { %3160 = vmatpush1.msra.mxu0 %v6150_v49  ;;  %3231 = vmatpush1.msra.mxu1 %v6152_v50 }
 0x950   :  { %3161 = vmatprep.subr.mxu0 %v6156_v51  ;;  %3232 = vmatprep.subr.mxu1 %v6158_v52 }
 0x951   :  { %3162 = vmatpush1.msra.mxu0 %v6162_v54  ;;  %3233 = vmatpush1.msra.mxu1 %v6164_v55 }
 0x952   :  { %3163 = vmatprep.subr.mxu0 %v6168_v56  ;;  %3234 = vmatprep.subr.mxu1 %v6170_v57 }
 0x953   :  { %3164 = vmatpush1.msra.mxu0 %v6174_v58  ;;  %3235 = vmatpush1.msra.mxu1 %v6176_v61 }
 0x954   :  { %3165 = vmatprep.subr.mxu0 %v6180_v62  ;;  %3236 = vmatprep.subr.mxu1 %v6182_v42 }
 0x955   :  { %3166 = vmatpush1.msra.mxu0 %v6186_v60  ;;  %3237 = vmatpush1.msra.mxu1 %v6188_v5 }
 0x956   :  { %3167 = vmatprep.subr.mxu0 %v6192_v16  ;;  %3238 = vmatprep.subr.mxu1 %v6194_v53 }
 0x957   :  { %3168 = vmatpush1.msra.mxu0 %v6198_v35  ;;  %3239 = vmatpush1.msra.mxu1 %v6200_v2 }
 0x958   :  { %3169 = vmatprep.subr.mxu0 %v6204_v17  ;;  %3240 = vmatprep.subr.mxu1 %v6206_v11 }
 0x959   :  { %3170 = vmatpush1.msra.mxu0 %v6210_v26  ;;  %3241 = vmatpush1.msra.mxu1 %v6212_v13 }
 0x95a   :  { %3171 = vmatprep.subr.mxu0 %v6216_v63  ;;  %3242 = vmatprep.subr.mxu1 %v6218_v6 }
 0x95b   :  { %3172 = vmatpush1.msra.mxu0 %v6222_v1  ;;  %3243 = vmatpush1.msra.mxu1 %v6224_v3 }
 0x95c   :  { %3173 = vmatprep.subr.mxu0 %v6228_v7  ;;  %3244 = vmatprep.subr.mxu1 %v6230_v44 }
 0x95d   :  { %3174 = vmatpush1.msra.mxu0 %v6234_v0  ;;  %3245 = vmatpush1.msra.mxu1 %v6236_v9 }
 0x95e   :  { %3175 = vmatprep.subr.mxu0 %v6240_v8  ;;  %3246 = vmatprep.subr.mxu1 %v6242_v12 }
 0x95f   :  { %3176 = vmatpush1.msra.mxu0 %v6246_v18  ;;  %3247 = vmatpush1.msra.mxu1 %v6248_v19 }
 0x960   :  { %3177 = vmatprep.subr.mxu0 %v7575_v4  ;;  %3248 = vmatprep.subr.mxu1 %v7576_v31  ;;  %v7602_v31 = vld [vmem:[#allocation32_spill] sm:$0xff] }
 0x961   :  { %3178 = vmatpush1.msra.mxu0 %v7577_v21  ;;  %3249 = vmatpush1.msra.mxu1 %v7578_v33  ;;  %v7600_v33 = vld [vmem:[#allocation73_spill] sm:$0xff] }
 0x962   :  { %3179 = vmatprep.subr.mxu0 %v7579_v40  ;;  %3250 = vmatprep.subr.mxu1 %v7580_v59 }
 0x963   :  { %3180 = vmatpush1.msra.mxu0 %v7581_v24  ;;  %3251 = vmatpush1.msra.mxu1 %v7582_v29  ;;  %v7593_v29 = vld [vmem:[#allocation29_spill] sm:$0xff] }
 0x964   :  { %3181 = vmatprep.subr.mxu0 %v7583_v37  ;;  %3252 = vmatprep.subr.mxu1 %v7584_v10  ;;  %v7594_v37 = vmov 0.0   ;;  %v7595_v10 = vld [vmem:[#allocation30_spill] sm:$0xff] }
 0x965   :  { %3182 = vmatpush1.msra.mxu0 %v7585_v30  ;;  %3253 = vmatpush1.msra.mxu1 %v7586_v38  ;;  %v7596_v38 = vld [vmem:[#allocation45_spill] sm:$0xff] }
 0x966   :  { %3183 = vmatprep.subr.mxu0 %v7587_v22  ;;  %3254 = vmatprep.subr.mxu1 %v7588_v34  ;;  %v7597_v22 = vld [vmem:[#allocation43_spill] sm:$0xff] }
 0x967   :  { %3184 = vmatpush1.msra.mxu0 %v7589_v23  ;;  %3255 = vmatpush1.msra.mxu1 %v7590_v27  ;;  %v7598_v23 = vld [vmem:[#allocation31_spill] sm:$0xff] }
 0x968   :  { %3185 = vmatprep.subr.mxu0 %v7591_v20  ;;  %3256 = vmatprep.subr.mxu1 %v7592_v25  ;;  %v2554_v34 = vadd.f32 %v7598_v23, %v6440_v36  ;;  %v7599_v20 = vld [vmem:[#allocation33_spill] sm:$0xff]  ;;  %v2667_v23 = vadd.f32 %v7602_v31, %v6465_v28 }
 0x969   :  { %3186 = vmatpush1.msra.mxu0 %v7593_v29  ;;  %3219 = vmatprep.mubr.f32.mxu0 %v7594_v37  ;;  %v2556_v30 = vadd.f32 %v7599_v20, %v6448_v14 }
 0x96a   :  { %3257 = vmatpush1.msra.mxu1 %v7595_v10  ;;  %3290 = vmatprep.mubr.f32.mxu1 %v7594_v37 }
 0x96b   :  { %3329 = vmatprep.subr.mxu0 %v7596_v38  ;;  %3400 = vmatprep.subr.mxu1 %v7597_v22  ;;  %v7601_v38 = vld [vmem:[#allocation34_spill] sm:$0xff] }
 0x96c   :  { %v2669_v21 = vadd.f32 %v7601_v38, %v7600_v33 }
 0xa0a   :  { %v3047_v27 = vpop.f32.mrf.mxu0  ;;  %v3118_v40 = vpop.f32.mrf.mxu1 }
 0xa0b   :  { %v3123_v25 = vadd.f32 %v3047_v27, %v2554_v34  ;;  %v3125_v36 = vadd.f32 %v3118_v40, %v2667_v23  ;;  %v7615_v40 = vld [vmem:[#allocation57_spill] sm:$0xff]  ;;  %v7617_v27 = vld [vmem:[#allocation24_spill] sm:$0xff] }
 0xa0c   :  { %v3049_v24 = vpop.f32.mrf.mxu0  ;;  %v3120_v37 = vpop.f32.mrf.mxu1  ;;  %v7618_v23 = vld [vmem:[#allocation25_spill] sm:$0xff] }
 0xa0d   :  { %v4444_v29 = vmul.f32 -1.442695, %v3123_v25  ;;  %v3124_v59 = vadd.f32 %v3049_v24, %v2556_v30  ;;  %v3126_v22 = vadd.f32 %v3120_v37, %v2669_v21 }
 0xa0f   :  { %4727 = vpow2.f32 %v4444_v29  ;;  %v4445_v10 = vmul.f32 -1.442695, %v3124_v59  ;;  %v4446_v4 = vmul.f32 -1.442695, %v3126_v22  ;;  %v7616_v22 = vld [vmem:[#allocation55_spill] sm:$0xff] }
 0xa11   :  { %4729 = vpow2.f32 %v4445_v10 }
 0xa12   :  { %4731 = vtanh.f32 %v3125_v36 }
 0xa13   :  { %4733 = vpow2.f32 %v4446_v4  ;;  %v7614_v4 = vld [vmem:[#allocation56_spill] sm:$0xff] }
 0xa1c   :  { %v4728_v19 = vpop.eup %4727 }
 0xa1d   :  { %v3130_v20 = vadd.f32 1.0, %v4728_v19 }
 0xa1e   :  { %v4730_v34 = vpop.eup %4729 }
 0xa1f   :  { %4735 = vrcp.f32 %v3130_v20  ;;  %v3136_v25 = vadd.f32 1.0, %v4730_v34  ;;  %v4732_v59 = vpop.eup %4731  ;;  %v7619_v20 = vld [vmem:[#allocation26_spill] sm:$0xff]  ;;  %v7620_v34 = vld [vmem:[#allocation27_spill] sm:$0xff] }
 0xa20   :  { %v4734_v24 = vpop.eup %4733 }
 0xa21   :  { %4737 = vrcp.f32 %v3136_v25  ;;  %v3143_v38 = vadd.f32 1.0, %v4734_v24  ;;  %v7621_v25 = vld [vmem:[#allocation28_spill] sm:$0xff]  ;;  %v7623_v24 = vmov 0.0  }
 0xa23   :  { %4739 = vrcp.f32 %v3143_v38  ;;  %v7627_v38 = vld [vmem:[#allocation68_spill] sm:$0xff] }
 0xa2c   :  { %v4736_v29 = vpop.eup %4735 }
 0xa2d   :  { %v3147_v10 = vmul.f32 %v4736_v29, %v4732_v59  ;;  %v7622_v59 = vld [vmem:[#allocation29_spill] sm:$0xff]  ;;  %v7624_v29 = vld [vmem:[#allocation30_spill] sm:$0xff] }
 0xa2e   :  { %v4738_v30 = vpop.eup %4737 }
 0xa2f   :  { %v3146_v21 = vmul.f32 %v4738_v30, %v6468_v39  ;;  %v7613_v39 = vld [vmem:[#allocation54_spill] sm:$0xff]  ;;  %v7626_v30 = vld [vmem:[#allocation43_spill] sm:$0xff] }
 0xa30   :  { %v4740_v19 = vpop.eup %4739 }
 0xa31   :  { %v6550_v37 = vadd.f32 %v3147_v10, %v3146_v21  ;;  %v7625_v10 = vld [vmem:[#allocation45_spill] sm:$0xff]  ;;  %v7628_v21 = vld [vmem:[#allocation35_spill] sm:$0xff] }
 0xa33   :  { %4741 = vtanh.f32 %v6550_v37 }
 0xa40   :  { %v4742_v36 = vpop.eup %4741 }
 0xa41   :  { %v3150_v31 = vmul.f32 %v4742_v36, %v4740_v19  ;;  %v2560_v19 = vadd.f32 %v7628_v21, %v7627_v38 }
 0xa43   :  { %3220 = vmatmul.mubr.f32.vlgmr.msra.gmra.mxu0 %v3150_v31  ;;  %3291 = vmatmul.mubr.f32.vlgmr.msra.gmra.mxu1 %v3150_v31  ;;  %v7629_v31 = vld [vmem:[#allocation37_spill] sm:$0xff] }
 0xa44   :  { %3330 = vmatpush1.msra.mxu0 %v6126_v15  ;;  %3401 = vmatpush1.msra.mxu1 %v6128_v41  ;;  %v7603_v15 = vld [vmem:[#allocation46_spill] sm:$0xff]  ;;  %v7604_v41 = vld [vmem:[#allocation48_spill] sm:$0xff] }
 0xa45   :  { %3331 = vmatprep.subr.mxu0 %v6132_v32  ;;  %3402 = vmatprep.subr.mxu1 %v6134_v43  ;;  %v7605_v32 = vld [vmem:[#allocation49_spill] sm:$0xff]  ;;  %v7606_v43 = vld [vmem:[#allocation47_spill] sm:$0xff] }
 0xa46   :  { %3332 = vmatpush1.msra.mxu0 %v6138_v45  ;;  %3403 = vmatpush1.msra.mxu1 %v6140_v46  ;;  %v7607_v45 = vld [vmem:[#allocation50_spill] sm:$0xff]  ;;  %v7608_v46 = vld [vmem:[#allocation52_spill] sm:$0xff] }
 0xa47   :  { %3333 = vmatprep.subr.mxu0 %v6144_v47  ;;  %3404 = vmatprep.subr.mxu1 %v6146_v48  ;;  %v7609_v47 = vld [vmem:[#allocation53_spill] sm:$0xff]  ;;  %v7610_v48 = vld [vmem:[#allocation51_spill] sm:$0xff] }
 0xa48   :  { %3334 = vmatpush1.msra.mxu0 %v6150_v49  ;;  %3405 = vmatpush1.msra.mxu1 %v6152_v50  ;;  %v7611_v49 = vld [vmem:[#allocation22_spill] sm:$0xff]  ;;  %v7612_v50 = vld [vmem:[#allocation23_spill] sm:$0xff] }
 0xa49   :  { %3335 = vmatprep.subr.mxu0 %v6156_v51  ;;  %3406 = vmatprep.subr.mxu1 %v6158_v52 }
 0xa4a   :  { %3336 = vmatpush1.msra.mxu0 %v6162_v54  ;;  %3407 = vmatpush1.msra.mxu1 %v6164_v55 }
 0xa4b   :  { %3337 = vmatprep.subr.mxu0 %v6168_v56  ;;  %3408 = vmatprep.subr.mxu1 %v6170_v57 }
 0xa4c   :  { %3338 = vmatpush1.msra.mxu0 %v6174_v58  ;;  %3409 = vmatpush1.msra.mxu1 %v6176_v61 }
 0xa4d   :  { %3339 = vmatprep.subr.mxu0 %v6180_v62  ;;  %3410 = vmatprep.subr.mxu1 %v6182_v42 }
 0xa4e   :  { %3340 = vmatpush1.msra.mxu0 %v6186_v60  ;;  %3411 = vmatpush1.msra.mxu1 %v6188_v5 }
 0xa4f   :  { %3341 = vmatprep.subr.mxu0 %v6192_v16  ;;  %3412 = vmatprep.subr.mxu1 %v6194_v53 }
 0xa50   :  { %3342 = vmatpush1.msra.mxu0 %v6198_v35  ;;  %3413 = vmatpush1.msra.mxu1 %v6200_v2 }
 0xa51   :  { %3343 = vmatprep.subr.mxu0 %v6204_v17  ;;  %3414 = vmatprep.subr.mxu1 %v6206_v11 }
 0xa52   :  { %3344 = vmatpush1.msra.mxu0 %v6210_v26  ;;  %3415 = vmatpush1.msra.mxu1 %v6212_v13 }
 0xa53   :  { %3345 = vmatprep.subr.mxu0 %v6216_v63  ;;  %3416 = vmatprep.subr.mxu1 %v6218_v6 }
 0xa54   :  { %3346 = vmatpush1.msra.mxu0 %v6222_v1  ;;  %3417 = vmatpush1.msra.mxu1 %v6224_v3 }
 0xa55   :  { %3347 = vmatprep.subr.mxu0 %v6228_v7  ;;  %3418 = vmatprep.subr.mxu1 %v6230_v44 }
 0xa56   :  { %3348 = vmatpush1.msra.mxu0 %v6234_v0  ;;  %3419 = vmatpush1.msra.mxu1 %v6236_v9 }
 0xa57   :  { %3349 = vmatprep.subr.mxu0 %v6240_v8  ;;  %3420 = vmatprep.subr.mxu1 %v6242_v12 }
 0xa58   :  { %3350 = vmatpush1.msra.mxu0 %v6246_v18  ;;  %3421 = vmatpush1.msra.mxu1 %v7603_v15 }
 0xa59   :  { %3351 = vmatprep.subr.mxu0 %v7604_v41  ;;  %3422 = vmatprep.subr.mxu1 %v7605_v32 }
 0xa5a   :  { %3352 = vmatpush1.msra.mxu0 %v7606_v43  ;;  %3423 = vmatpush1.msra.mxu1 %v7607_v45 }
 0xa5b   :  { %3353 = vmatprep.subr.mxu0 %v7608_v46  ;;  %3424 = vmatprep.subr.mxu1 %v7609_v47 }
 0xa5c   :  { %3354 = vmatpush1.msra.mxu0 %v7610_v48  ;;  %3425 = vmatpush1.msra.mxu1 %v7611_v49 }
 0xa5d   :  { %3355 = vmatprep.subr.mxu0 %v7612_v50  ;;  %3426 = vmatprep.subr.mxu1 %v7613_v39 }
 0xa5e   :  { %3356 = vmatpush1.msra.mxu0 %v7614_v4  ;;  %3427 = vmatpush1.msra.mxu1 %v7615_v40  ;;  %v7631_v40 = vld [vmem:[#allocation36_spill] sm:$0xff] }
 0xa5f   :  { %3357 = vmatprep.subr.mxu0 %v7616_v22  ;;  %3428 = vmatprep.subr.mxu1 %v7617_v27  ;;  %v2673_v21 = vadd.f32 %v7631_v40, %v6465_v28 }
 0xa60   :  { %3358 = vmatpush1.msra.mxu0 %v7618_v23  ;;  %3429 = vmatpush1.msra.mxu1 %v7619_v20 }
 0xa61   :  { %3359 = vmatprep.subr.mxu0 %v7620_v34  ;;  %3430 = vmatprep.subr.mxu1 %v7621_v25  ;;  %v2562_v34 = vadd.f32 %v7629_v31, %v6448_v14 }
 0xa62   :  { %3360 = vmatpush1.msra.mxu0 %v7622_v59  ;;  %3393 = vmatprep.mubr.f32.mxu0 %v7623_v24 }
 0xa63   :  { %3431 = vmatpush1.msra.mxu1 %v7624_v29  ;;  %3464 = vmatprep.mubr.f32.mxu1 %v7623_v24 }
 0xa64   :  { %3503 = vmatprep.subr.mxu0 %v7625_v10  ;;  %3574 = vmatprep.subr.mxu1 %v7626_v30  ;;  %v7630_v10 = vld [vmem:[#allocation38_spill] sm:$0xff] }
 0xa65   :  { %v2675_v22 = vadd.f32 %v7630_v10, %v7600_v33  ;;  %v6637_v10 = vld [vmem:[#allocation12 + $0x1c8] sm:$0xff] }
 0xb03   :  { %v3221_v36 = vpop.f32.mrf.mxu0  ;;  %v3292_v27 = vpop.f32.mrf.mxu1 }
 0xb04   :  { %v3297_v25 = vadd.f32 %v3221_v36, %v2560_v19  ;;  %v3299_v38 = vadd.f32 %v3292_v27, %v2673_v21  ;;  %v6646_v21 = vld [vmem:[#allocation12 + $0x1d0] sm:$0xff] }
 0xb05   :  { %v3223_v20 = vpop.f32.mrf.mxu0  ;;  %v3294_v24 = vpop.f32.mrf.mxu1 }
 0xb06   :  { %v4447_v59 = vmul.f32 -1.442695, %v3297_v25  ;;  %v3298_v23 = vadd.f32 %v3223_v20, %v2562_v34  ;;  %v3300_v30 = vadd.f32 %v3294_v24, %v2675_v22 }
 0xb08   :  { %4743 = vpow2.f32 %v4447_v59  ;;  %v4448_v29 = vmul.f32 -1.442695, %v3298_v23  ;;  %v4449_v4 = vmul.f32 -1.442695, %v3300_v30  ;;  %v6643_v30 = vld [vmem:[#allocation12 + $0x1c0] sm:$0xff] }
 0xb0a   :  { %4745 = vpow2.f32 %v4448_v29 }
 0xb0b   :  { %4747 = vtanh.f32 %v3299_v38  ;;  %v6634_v38 = vld [vmem:[#allocation12 + $0x1f0] sm:$0xff] }
 0xb0c   :  { %4749 = vpow2.f32 %v4449_v4  ;;  %v6631_v4 = vld [vmem:[#allocation12 + $0x1e0] sm:$0xff] }
 0xb15   :  { %v4744_v39 = vpop.eup %4743 }
 0xb16   :  { %v3304_v31 = vadd.f32 1.0, %v4744_v39 }
 0xb17   :  { %v4746_v19 = vpop.eup %4745 }
 0xb18   :  { %4751 = vrcp.f32 %v3304_v31  ;;  %v3310_v20 = vadd.f32 1.0, %v4746_v19  ;;  %v4748_v23 = vpop.eup %4747  ;;  %v6649_v31 = vld [vmem:[#allocation12 + $0x1a8] sm:$0xff]  ;;  %v6652_v19 = vld [vmem:[#allocation12 + $0x1b8] sm:$0xff] }
 0xb19   :  { %v4750_v34 = vpop.eup %4749 }
 0xb1a   :  { %4753 = vrcp.f32 %v3310_v20  ;;  %v3317_v36 = vadd.f32 1.0, %v4750_v34  ;;  %v6655_v20 = vld [vmem:[#allocation12 + $0x1a0] sm:$0xff] }
 0xb1c   :  { %4755 = vrcp.f32 %v3317_v36 }
 0xb25   :  { %v4752_v25 = vpop.eup %4751 }
 0xb26   :  { %v3321_v59 = vmul.f32 %v4752_v25, %v4748_v23  ;;  %v6658_v23 = vld [vmem:[#allocation12 + $0x1b0] sm:$0xff] }
 0xb27   :  { %v4754_v29 = vpop.eup %4753 }
 0xb28   :  { %v3320_v22 = vmul.f32 %v4754_v29, %v6550_v37  ;;  %v6640_v37 = vld [vmem:[#allocation12 + $0x1d8] sm:$0xff] }
 0xb29   :  { %v4756_v39 = vpop.eup %4755 }
 0xb2a   :  { %v6628_v24 = vadd.f32 %v3321_v59, %v3320_v22 }
 0xb2c   :  { %4757 = vtanh.f32 %v6628_v24 }
 0xb39   :  { %v4758_v40 = vpop.eup %4757 }
 0xb3a   :  { %v3324_v27 = vmul.f32 %v4758_v40, %v4756_v39 }
 0xb3c   :  { %3394 = vmatmul.mubr.f32.vlgmr.msra.gmra.mxu0 %v3324_v27  ;;  %3465 = vmatmul.mubr.f32.vlgmr.msra.gmra.mxu1 %v3324_v27  ;;  %v6746_v27 = vld [vmem:[#allocation12 + $0x198] sm:$0xff] }
 0xb3d   :  { %3504 = vmatpush1.msra.mxu0 %v6631_v4  ;;  %3575 = vmatpush1.msra.mxu1 %v6634_v38 }
 0xb3e   :  { %3505 = vmatprep.subr.mxu0 %v6637_v10  ;;  %3576 = vmatprep.subr.mxu1 %v6640_v37 }
 0xb3f   :  { %3506 = vmatpush1.msra.mxu0 %v6643_v30  ;;  %3577 = vmatpush1.msra.mxu1 %v6646_v21 }
 0xb40   :  { %3507 = vmatprep.subr.mxu0 %v6649_v31  ;;  %3578 = vmatprep.subr.mxu1 %v6652_v19 }
 0xb41   :  { %3508 = vmatpush1.msra.mxu0 %v6655_v20  ;;  %3579 = vmatpush1.msra.mxu1 %v6658_v23 }
 0xb42   :  { %3509 = vmatprep.subr.mxu0 %v6156_v51  ;;  %3580 = vmatprep.subr.mxu1 %v6158_v52  ;;  %v7632_v51 = vld [vmem:[#allocation54_spill] sm:$0xff]  ;;  %v7633_v52 = vld [vmem:[#allocation56_spill] sm:$0xff] }
 0xb43   :  { %3510 = vmatpush1.msra.mxu0 %v6162_v54  ;;  %3581 = vmatpush1.msra.mxu1 %v6164_v55  ;;  %v7634_v54 = vld [vmem:[#allocation57_spill] sm:$0xff]  ;;  %v7635_v55 = vld [vmem:[#allocation55_spill] sm:$0xff] }
 0xb44   :  { %3511 = vmatprep.subr.mxu0 %v6168_v56  ;;  %3582 = vmatprep.subr.mxu1 %v6170_v57  ;;  %v7636_v56 = vld [vmem:[#allocation24_spill] sm:$0xff]  ;;  %v7637_v57 = vld [vmem:[#allocation25_spill] sm:$0xff] }
 0xb45   :  { %3512 = vmatpush1.msra.mxu0 %v6174_v58  ;;  %3583 = vmatpush1.msra.mxu1 %v6176_v61  ;;  %v7638_v58 = vld [vmem:[#allocation26_spill] sm:$0xff]  ;;  %v7639_v61 = vld [vmem:[#allocation27_spill] sm:$0xff] }
 0xb46   :  { %3513 = vmatprep.subr.mxu0 %v6180_v62  ;;  %3584 = vmatprep.subr.mxu1 %v6182_v42  ;;  %v7640_v62 = vld [vmem:[#allocation28_spill] sm:$0xff]  ;;  %v7641_v42 = vld [vmem:[#allocation29_spill] sm:$0xff] }
 0xb47   :  { %3514 = vmatpush1.msra.mxu0 %v6186_v60  ;;  %3585 = vmatpush1.msra.mxu1 %v6188_v5  ;;  %v7642_v60 = vmov 0.0   ;;  %v7643_v5 = vld [vmem:[#allocation30_spill] sm:$0xff] }
 0xb48   :  { %3515 = vmatprep.subr.mxu0 %v6192_v16  ;;  %3586 = vmatprep.subr.mxu1 %v6194_v53  ;;  %v6715_v16 = vld [vmem:[#allocation12 + $0x1e8] sm:$0xff]  ;;  %v6718_v53 = vld [vmem:[#allocation12 + $0x1f8] sm:$0xff] }
 0xb49   :  { %3516 = vmatpush1.msra.mxu0 %v6198_v35  ;;  %3587 = vmatpush1.msra.mxu1 %v6200_v2  ;;  %7644 = vst [vmem:[#allocation31_spill] sm:$0xff] %v6715_v16  ;;  %7645 = vst [vmem:[#allocation33_spill] sm:$0xff] %v6718_v53  ;;  %v7646_v35 = vld [vmem:[#allocation68_spill] sm:$0xff]  ;;  %v7647_v2 = vld [vmem:[#allocation39_spill] sm:$0xff] }
 0xb4a   :  { %3517 = vmatprep.subr.mxu0 %v6204_v17  ;;  %3588 = vmatprep.subr.mxu1 %v6206_v11  ;;  %v2566_v17 = vadd.f32 %v7647_v2, %v7646_v35  ;;  %v6782_v2 = vld [vmem:[#allocation12 + $0x138] sm:$0xff] }
 0xb4b   :  { %3518 = vmatpush1.msra.mxu0 %v6210_v26  ;;  %3589 = vmatpush1.msra.mxu1 %v6212_v13  ;;  %v7648_v26 = vld [vmem:[#allocation58_spill] sm:$0xff] }
 0xb4c   :  { %3519 = vmatprep.subr.mxu0 %v6216_v63  ;;  %3590 = vmatprep.subr.mxu1 %v6218_v6  ;;  %v2568_v13 = vadd.f32 %v7648_v26, %v6448_v14  ;;  %v6791_v26 = vld [vmem:[#allocation12 + $0x108] sm:$0xff] }
 0xb4d   :  { %3520 = vmatpush1.msra.mxu0 %v6222_v1  ;;  %3591 = vmatpush1.msra.mxu1 %v6224_v3 }
 0xb4e   :  { %3521 = vmatprep.subr.mxu0 %v6228_v7  ;;  %3592 = vmatprep.subr.mxu1 %v6230_v44 }
 0xb4f   :  { %3522 = vmatpush1.msra.mxu0 %v6234_v0  ;;  %3593 = vmatpush1.msra.mxu1 %v6236_v9  ;;  %v7649_v9 = vld [vmem:[#allocation60_spill] sm:$0xff] }
 0xb50   :  { %3523 = vmatprep.subr.mxu0 %v6240_v8  ;;  %3594 = vmatprep.subr.mxu1 %v6242_v12  ;;  %v2681_v8 = vadd.f32 %v7649_v9, %v7600_v33  ;;  %v6818_v9 = vld [vmem:[#allocation12 + $0xd8] sm:$0xff] }
 0xb51   :  { %3524 = vmatpush1.msra.mxu0 %v6246_v18  ;;  %3595 = vmatpush1.msra.mxu1 %v7603_v15  ;;  %v7650_v18 = vld [vmem:[#allocation40_spill] sm:$0xff] }
 0xb52   :  { %3525 = vmatprep.subr.mxu0 %v7604_v41  ;;  %3596 = vmatprep.subr.mxu1 %v7605_v32  ;;  %v2679_v15 = vadd.f32 %v7650_v18, %v6465_v28  ;;  %v6827_v18 = vld [vmem:[#allocation12 + $0xa8] sm:$0xff] }
 0xb53   :  { %3526 = vmatpush1.msra.mxu0 %v7606_v43  ;;  %3597 = vmatpush1.msra.mxu1 %v7607_v45 }
 0xb54   :  { %3527 = vmatprep.subr.mxu0 %v7608_v46  ;;  %3598 = vmatprep.subr.mxu1 %v7609_v47 }
 0xb55   :  { %3528 = vmatpush1.msra.mxu0 %v7610_v48  ;;  %3599 = vmatpush1.msra.mxu1 %v7611_v49 }
 0xb56   :  { %3529 = vmatprep.subr.mxu0 %v7612_v50  ;;  %3600 = vmatprep.subr.mxu1 %v7632_v51  ;;  %v6749_v51 = vld [vmem:[#allocation12 + $0x180] sm:$0xff] }
 0xb57   :  { %3530 = vmatpush1.msra.mxu0 %v7633_v52  ;;  %3601 = vmatpush1.msra.mxu1 %v7634_v54  ;;  %v6752_v52 = vld [vmem:[#allocation12 + $0x190] sm:$0xff]  ;;  %v6755_v54 = vld [vmem:[#allocation12 + $0x168] sm:$0xff] }
 0xb58   :  { %3531 = vmatprep.subr.mxu0 %v7635_v55  ;;  %3602 = vmatprep.subr.mxu1 %v7636_v56  ;;  %v6758_v55 = vld [vmem:[#allocation12 + $0x178] sm:$0xff]  ;;  %v6761_v56 = vld [vmem:[#allocation12 + $0x160] sm:$0xff] }
 0xb59   :  { %3532 = vmatpush1.msra.mxu0 %v7637_v57  ;;  %3603 = vmatpush1.msra.mxu1 %v7638_v58  ;;  %v6764_v57 = vld [vmem:[#allocation12 + $0x170] sm:$0xff]  ;;  %v6767_v58 = vld [vmem:[#allocation12 + $0x148] sm:$0xff] }
 0xb5a   :  { %3533 = vmatprep.subr.mxu0 %v7639_v61  ;;  %3604 = vmatprep.subr.mxu1 %v7640_v62  ;;  %v6770_v61 = vld [vmem:[#allocation12 + $0x158] sm:$0xff]  ;;  %v6773_v62 = vld [vmem:[#allocation12 + $0x140] sm:$0xff] }
 0xb5b   :  { %3534 = vmatpush1.msra.mxu0 %v7641_v42  ;;  %3567 = vmatprep.mubr.f32.mxu0 %v7642_v60  ;;  %v6776_v42 = vld [vmem:[#allocation12 + $0x150] sm:$0xff] }
 0xb5c   :  { %3605 = vmatpush1.msra.mxu1 %v7643_v5  ;;  %3638 = vmatprep.mubr.f32.mxu1 %v7642_v60  ;;  %v6779_v5 = vld [vmem:[#allocation12 + $0x128] sm:$0xff] }
 0xb5d   :  { %3677 = vmatprep.subr.mxu0 %v6715_v16  ;;  %3748 = vmatprep.subr.mxu1 %v6718_v53 }
 0xbfc   :  { %v3395_v11 = vpop.f32.mrf.mxu0  ;;  %v3466_v7 = vpop.f32.mrf.mxu1 }
 0xbfd   :  { %v3471_v63 = vadd.f32 %v3395_v11, %v2566_v17  ;;  %v3473_v41 = vadd.f32 %v3466_v7, %v2679_v15  ;;  %v6785_v17 = vld [vmem:[#allocation12 + $0x120] sm:$0xff]  ;;  %v6788_v11 = vld [vmem:[#allocation12 + $0x130] sm:$0xff]  ;;  %v6830_v15 = vld [vmem:[#allocation12 + $0xb8] sm:$0xff] }
 0xbfe   :  { %v3397_v6 = vpop.f32.mrf.mxu0  ;;  %v3468_v0 = vpop.f32.mrf.mxu1  ;;  %v6809_v7 = vld [vmem:[#allocation12 + $0xe0] sm:$0xff] }
 0xbff   :  { %v4450_v1 = vmul.f32 -1.442695, %v3471_v63  ;;  %v3472_v3 = vadd.f32 %v3397_v6, %v2568_v13  ;;  %v3474_v12 = vadd.f32 %v3468_v0, %v2681_v8  ;;  %v6794_v13 = vld [vmem:[#allocation12 + $0x118] sm:$0xff]  ;;  %v6797_v63 = vld [vmem:[#allocation12 + $0x100] sm:$0xff]  ;;  %v6800_v6 = vld [vmem:[#allocation12 + $0x110] sm:$0xff] }
 0xc00   :  { %v6815_v0 = vld [vmem:[#allocation12 + $0xc8] sm:$0xff]  ;;  %v6821_v8 = vld [vmem:[#allocation12 + $0xc0] sm:$0xff] }
 0xc01   :  { %4759 = vpow2.f32 %v4450_v1  ;;  %v4451_v44 = vmul.f32 -1.442695, %v3472_v3  ;;  %v4452_v32 = vmul.f32 -1.442695, %v3474_v12  ;;  %v6803_v1 = vld [vmem:[#allocation12 + $0xe8] sm:$0xff]  ;;  %v6806_v3 = vld [vmem:[#allocation12 + $0xf8] sm:$0xff] }
 0xc02   :  { %v6824_v12 = vld [vmem:[#allocation12 + $0xd0] sm:$0xff] }
 0xc03   :  { %4761 = vpow2.f32 %v4451_v44  ;;  %v6812_v44 = vld [vmem:[#allocation12 + $0xf0] sm:$0xff] }
 0xc04   :  { %4763 = vtanh.f32 %v3473_v41  ;;  %v6833_v41 = vld [vmem:[#allocation12 + $0xa0] sm:$0xff] }
 0xc05   :  { %4765 = vpow2.f32 %v4452_v32  ;;  %7651 = vst [vmem:[#allocation73_spill] sm:$0xff] %v6833_v41  ;;  %v6836_v32 = vld [vmem:[#allocation12 + $0xb0] sm:$0xff] }
 0xc06   :  { %7652 = vst [vmem:[#allocation34_spill] sm:$0xff] %v6836_v32 }
 0xc0e   :  { %v4760_v43 = vpop.eup %4759 }
 0xc0f   :  { %v3478_v45 = vadd.f32 1.0, %v4760_v43  ;;  %v6839_v43 = vld [vmem:[#allocation12 + $0x88] sm:$0xff] }
 0xc10   :  { %v4762_v46 = vpop.eup %4761  ;;  %7653 = vst [vmem:[#allocation32_spill] sm:$0xff] %v6839_v43 }
 0xc11   :  { %4767 = vrcp.f32 %v3478_v45  ;;  %v3484_v47 = vadd.f32 1.0, %v4762_v46  ;;  %v4764_v48 = vpop.eup %4763  ;;  %v6842_v45 = vld [vmem:[#allocation12 + $0x98] sm:$0xff]  ;;  %v6845_v46 = vld [vmem:[#allocation12 + $0x80] sm:$0xff] }
 0xc12   :  { %v4766_v49 = vpop.eup %4765  ;;  %7654 = vst [vmem:[#allocation46_spill] sm:$0xff] %v6842_v45  ;;  %7655 = vst [vmem:[#allocation48_spill] sm:$0xff] %v6845_v46 }
 0xc13   :  { %4769 = vrcp.f32 %v3484_v47  ;;  %v3491_v59 = vadd.f32 1.0, %v4766_v49  ;;  %v6848_v47 = vld [vmem:[#allocation12 + $0x90] sm:$0xff]  ;;  %v6854_v49 = vld [vmem:[#allocation12 + $0x78] sm:$0xff] }
 0xc14   :  { %7656 = vst [vmem:[#allocation49_spill] sm:$0xff] %v6848_v47  ;;  %7658 = vst [vmem:[#allocation50_spill] sm:$0xff] %v6854_v49 }
 0xc15   :  { %4771 = vrcp.f32 %v3491_v59  ;;  %v6866_v59 = vld [vmem:[#allocation12 + $0x58] sm:$0xff] }
 0xc16   :  { %7662 = vst [vmem:[#allocation22_spill] sm:$0xff] %v6866_v59 }
 0xc1e   :  { %v4768_v50 = vpop.eup %4767 }
 0xc1f   :  { %v3495_v34 = vmul.f32 %v4768_v50, %v4764_v48  ;;  %v6851_v48 = vld [vmem:[#allocation12 + $0x68] sm:$0xff]  ;;  %v6857_v50 = vld [vmem:[#allocation12 + $0x60] sm:$0xff] }
 0xc20   :  { %v4770_v25 = vpop.eup %4769  ;;  %7657 = vst [vmem:[#allocation47_spill] sm:$0xff] %v6851_v48  ;;  %7659 = vst [vmem:[#allocation52_spill] sm:$0xff] %v6857_v50 }
 0xc21   :  { %v3494_v29 = vmul.f32 %v4770_v25, %v6628_v24  ;;  %v6743_v24 = vld [vmem:[#allocation12 + $0x188] sm:$0xff] }
 0xc22   :  { %v4772_v22 = vpop.eup %4771  ;;  %v6863_v25 = vld [vmem:[#allocation12 + $0x48] sm:$0xff] }
 0xc23   :  { %v6730_v36 = vadd.f32 %v3495_v34, %v3494_v29  ;;  %v6860_v34 = vld [vmem:[#allocation12 + $0x70] sm:$0xff]  ;;  %7661 = vst [vmem:[#allocation51_spill] sm:$0xff] %v6863_v25  ;;  %v6869_v29 = vld [vmem:[#allocation12 + $0x40] sm:$0xff] }
 0xc24   :  { %7660 = vst [vmem:[#allocation53_spill] sm:$0xff] %v6860_v34  ;;  %7663 = vst [vmem:[#allocation23_spill] sm:$0xff] %v6869_v29 }
 0xc25   :  { %4773 = vtanh.f32 %v6730_v36 }
 0xc32   :  { %v4774_v39 = vpop.eup %4773 }
 0xc33   :  { %v3498_v40 = vmul.f32 %v4774_v39, %v4772_v22  ;;  %v6872_v22 = vld [vmem:[#allocation12 + $0x50] sm:$0xff]  ;;  %v6875_v39 = vld [vmem:[#allocation12 + $0x28] sm:$0xff] }
 0xc34   :  { %7664 = vst [vmem:[#allocation45_spill] sm:$0xff] %v6872_v22  ;;  %7665 = vst [vmem:[#allocation43_spill] sm:$0xff] %v6875_v39 }
 0xc35   :  { %3568 = vmatmul.mubr.f32.vlgmr.msra.gmra.mxu0 %v3498_v40  ;;  %3639 = vmatmul.mubr.f32.vlgmr.msra.gmra.mxu1 %v3498_v40  ;;  %v6878_v40 = vld [vmem:[#allocation12 + $0x38] sm:$0xff] }
 0xc36   :  { %3678 = vmatpush1.msra.mxu0 %v6631_v4  ;;  %3749 = vmatpush1.msra.mxu1 %v6634_v38  ;;  %7666 = vst [vmem:[#allocation35_spill] sm:$0xff] %v6878_v40 }
 0xc37   :  { %3679 = vmatprep.subr.mxu0 %v6637_v10  ;;  %3750 = vmatprep.subr.mxu1 %v6640_v37 }
 0xc38   :  { %3680 = vmatpush1.msra.mxu0 %v6643_v30  ;;  %3751 = vmatpush1.msra.mxu1 %v6646_v21 }
 0xc39   :  { %3681 = vmatprep.subr.mxu0 %v6649_v31  ;;  %3752 = vmatprep.subr.mxu1 %v6652_v19 }
 0xc3a   :  { %3682 = vmatpush1.msra.mxu0 %v6655_v20  ;;  %3753 = vmatpush1.msra.mxu1 %v6658_v23 }
 0xc3b   :  { %3683 = vmatprep.subr.mxu0 %v6743_v24  ;;  %3754 = vmatprep.subr.mxu1 %v6746_v27 }
 0xc3c   :  { %3684 = vmatpush1.msra.mxu0 %v6749_v51  ;;  %3755 = vmatpush1.msra.mxu1 %v6752_v52 }
 0xc3d   :  { %3685 = vmatprep.subr.mxu0 %v6755_v54  ;;  %3756 = vmatprep.subr.mxu1 %v6758_v55 }
 0xc3e   :  { %3686 = vmatpush1.msra.mxu0 %v6761_v56  ;;  %3757 = vmatpush1.msra.mxu1 %v6764_v57 }
 0xc3f   :  { %3687 = vmatprep.subr.mxu0 %v6767_v58  ;;  %3758 = vmatprep.subr.mxu1 %v6770_v61 }
 0xc40   :  { %3688 = vmatpush1.msra.mxu0 %v6773_v62  ;;  %3759 = vmatpush1.msra.mxu1 %v6776_v42 }
 0xc41   :  { %3689 = vmatprep.subr.mxu0 %v6779_v5  ;;  %3760 = vmatprep.subr.mxu1 %v6782_v2 }
 0xc42   :  { %3690 = vmatpush1.msra.mxu0 %v6785_v17  ;;  %3761 = vmatpush1.msra.mxu1 %v6788_v11 }
 0xc43   :  { %3691 = vmatprep.subr.mxu0 %v6791_v26  ;;  %3762 = vmatprep.subr.mxu1 %v6794_v13 }
 0xc44   :  { %3692 = vmatpush1.msra.mxu0 %v6797_v63  ;;  %3763 = vmatpush1.msra.mxu1 %v6800_v6 }
 0xc45   :  { %3693 = vmatprep.subr.mxu0 %v6803_v1  ;;  %3764 = vmatprep.subr.mxu1 %v6806_v3 }
 0xc46   :  { %3694 = vmatpush1.msra.mxu0 %v6809_v7  ;;  %3765 = vmatpush1.msra.mxu1 %v6812_v44 }
 0xc47   :  { %3695 = vmatprep.subr.mxu0 %v6815_v0  ;;  %3766 = vmatprep.subr.mxu1 %v6818_v9 }
 0xc48   :  { %3696 = vmatpush1.msra.mxu0 %v6821_v8  ;;  %3767 = vmatpush1.msra.mxu1 %v6824_v12 }
 0xc49   :  { %3697 = vmatprep.subr.mxu0 %v6827_v18  ;;  %3768 = vmatprep.subr.mxu1 %v6830_v15 }
 0xc4a   :  { %3698 = vmatpush1.msra.mxu0 %v6833_v41  ;;  %3769 = vmatpush1.msra.mxu1 %v6836_v32 }
 0xc4b   :  { %3699 = vmatprep.subr.mxu0 %v6839_v43  ;;  %3770 = vmatprep.subr.mxu1 %v6842_v45  ;;  %v7676_v45 = vld [vmem:[#allocation59_spill] sm:$0xff] }
 0xc4c   :  { %3700 = vmatpush1.msra.mxu0 %v6845_v46  ;;  %3771 = vmatpush1.msra.mxu1 %v6848_v47 }
 0xc4d   :  { %3701 = vmatprep.subr.mxu0 %v6851_v48  ;;  %3772 = vmatprep.subr.mxu1 %v6854_v49 }
 0xc4e   :  { %3702 = vmatpush1.msra.mxu0 %v6857_v50  ;;  %3773 = vmatpush1.msra.mxu1 %v6860_v34 }
 0xc4f   :  { %3703 = vmatprep.subr.mxu0 %v6863_v25  ;;  %3774 = vmatprep.subr.mxu1 %v6866_v59  ;;  %v6881_v25 = vld [vmem:[#allocation12 + $0x20] sm:$0xff]  ;;  %v6884_v59 = vld [vmem:[#allocation12 + $0x30] sm:$0xff] }
 0xc50   :  { %3704 = vmatpush1.msra.mxu0 %v6869_v29  ;;  %3775 = vmatpush1.msra.mxu1 %v6872_v22  ;;  %7667 = vst [vmem:[#allocation37_spill] sm:$0xff] %v6881_v25  ;;  %7668 = vst [vmem:[#allocation38_spill] sm:$0xff] %v6884_v59  ;;  %v6887_v29 = vld [vmem:[#allocation12 + $0x8] sm:$0xff]  ;;  %v6890_v22 = vld [vmem:[#allocation12 + $0x18] sm:$0xff] }
 0xc51   :  { %3705 = vmatprep.subr.mxu0 %v6875_v39  ;;  %3776 = vmatprep.subr.mxu1 %v6878_v40  ;;  %7669 = vst [vmem:[#allocation36_spill] sm:$0xff] %v6887_v29  ;;  %7670 = vst [vmem:[#allocation54_spill] sm:$0xff] %v6890_v22  ;;  %v6893_v39 = vld [vmem:[#allocation12] sm:$0xff]  ;;  %v6897_v40 = vld [vmem:[#allocation12 + $0x10] sm:$0xff] }
 0xc52   :  { %3706 = vmatpush1.msra.mxu0 %v6881_v25  ;;  %3777 = vmatpush1.msra.mxu1 %v6884_v59  ;;  %7671 = vst [vmem:[#allocation56_spill] sm:$0xff] %v6893_v39  ;;  %7672 = vst [vmem:[#allocation57_spill] sm:$0xff] %v6897_v40  ;;  %v7674_v25 = vld [vmem:[#allocation62_spill] sm:$0xff] }
 0xc53   :  { %3707 = vmatprep.subr.mxu0 %v6887_v29  ;;  %3778 = vmatprep.subr.mxu1 %v6890_v22  ;;  %v7673_v29 = vld [vmem:[#allocation61_spill] sm:$0xff]  ;;  %v2574_v34 = vadd.f32 %v7674_v25, %v6448_v14 }
 0xc54   :  { %3708 = vmatpush1.msra.mxu0 %v6893_v39  ;;  %3741 = vmatprep.mubr.f32.mxu0 %v7642_v60  ;;  %v2572_v59 = vadd.f32 %v7673_v29, %v7646_v35  ;;  %v2685_v29 = vadd.f32 %v7676_v45, %v6465_v28  ;;  %v7679_v45 = vld [vmem:[#allocation46_spill] sm:$0xff] }
 0xc55   :  { %3779 = vmatpush1.msra.mxu1 %v6897_v40  ;;  %3812 = vmatprep.mubr.f32.mxu1 %v7642_v60 }
 0xc56   :  { %3851 = vmatprep.subr.mxu0 %v6715_v16  ;;  %3922 = vmatprep.subr.mxu1 %v6718_v53  ;;  %v7675_v16 = vld [vmem:[#allocation64_spill] sm:$0xff] }
 0xc57   :  { %v2687_v46 = vadd.f32 %v7675_v16, %v7600_v33 }
 0xcf5   :  { %v3569_v22 = vpop.f32.mrf.mxu0  ;;  %v3640_v47 = vpop.f32.mrf.mxu1 }
 0xcf6   :  { %v3645_v39 = vadd.f32 %v3569_v22, %v2572_v59  ;;  %v3647_v35 = vadd.f32 %v3640_v47, %v2685_v29  ;;  %v7680_v47 = vld [vmem:[#allocation48_spill] sm:$0xff]  ;;  %v7682_v29 = vld [vmem:[#allocation47_spill] sm:$0xff] }
 0xcf7   :  { %v3571_v50 = vpop.f32.mrf.mxu0  ;;  %v3642_v60 = vpop.f32.mrf.mxu1 }
 0xcf8   :  { %v4453_v49 = vmul.f32 -1.442695, %v3645_v39  ;;  %v3646_v48 = vadd.f32 %v3571_v50, %v2574_v34  ;;  %v3648_v53 = vadd.f32 %v3642_v60, %v2687_v46 }
 0xcfa   :  { %4775 = vpow2.f32 %v4453_v49  ;;  %v4454_v40 = vmul.f32 -1.442695, %v3646_v48  ;;  %v4455_v43 = vmul.f32 -1.442695, %v3648_v53 }
 0xcfc   :  { %4777 = vpow2.f32 %v4454_v40  ;;  %v7681_v40 = vld [vmem:[#allocation49_spill] sm:$0xff] }
 0xcfd   :  { %4779 = vtanh.f32 %v3647_v35 }
 0xcfe   :  { %4781 = vpow2.f32 %v4455_v43  ;;  %v7678_v43 = vld [vmem:[#allocation32_spill] sm:$0xff] }
 0xd07   :  { %v4776_v32 = vpop.eup %4775 }
 0xd08   :  { %v3652_v25 = vadd.f32 1.0, %v4776_v32 }
 0xd09   :  { %v4778_v59 = vpop.eup %4777 }
 0xd0a   :  { %4783 = vrcp.f32 %v3652_v25  ;;  %v3658_v49 = vadd.f32 1.0, %v4778_v59  ;;  %v4780_v48 = vpop.eup %4779  ;;  %v7683_v25 = vld [vmem:[#allocation50_spill] sm:$0xff]  ;;  %v7684_v59 = vld [vmem:[#allocation52_spill] sm:$0xff] }
 0xd0b   :  { %v4782_v50 = vpop.eup %4781 }
 0xd0c   :  { %4785 = vrcp.f32 %v3658_v49  ;;  %v3665_v16 = vadd.f32 1.0, %v4782_v50  ;;  %v7685_v49 = vld [vmem:[#allocation53_spill] sm:$0xff]  ;;  %v7687_v50 = vld [vmem:[#allocation22_spill] sm:$0xff] }
 0xd0e   :  { %4787 = vrcp.f32 %v3665_v16  ;;  %v7691_v16 = vld [vmem:[#allocation35_spill] sm:$0xff] }
 0xd17   :  { %v4784_v34 = vpop.eup %4783 }
 0xd18   :  { %v3669_v22 = vmul.f32 %v4784_v34, %v4780_v48  ;;  %v7686_v48 = vld [vmem:[#allocation51_spill] sm:$0xff] }
 0xd19   :  { %v4786_v39 = vpop.eup %4785  ;;  %v7688_v34 = vld [vmem:[#allocation23_spill] sm:$0xff] }
 0xd1a   :  { %v3668_v60 = vmul.f32 %v4786_v39, %v6730_v36  ;;  %v7677_v36 = vld [vmem:[#allocation34_spill] sm:$0xff]  ;;  %v7690_v39 = vld [vmem:[#allocation43_spill] sm:$0xff] }
 0xd1b   :  { %v4788_v53 = vpop.eup %4787 }
 0xd1c   :  { %v6912_v46 = vadd.f32 %v3669_v22, %v3668_v60  ;;  %v7689_v22 = vld [vmem:[#allocation45_spill] sm:$0xff] }
 0xd1d   :  { %v7692_v60 = vld [vmem:[#allocation37_spill] sm:$0xff] }
 0xd1e   :  { %4789 = vtanh.f32 %v6912_v46 }
 0xd2b   :  { %v4790_v35 = vpop.eup %4789 }
 0xd2c   :  { %v3672_v32 = vmul.f32 %v4790_v35, %v4788_v53  ;;  %v7693_v53 = vld [vmem:[#allocation38_spill] sm:$0xff]  ;;  %v7694_v35 = vld [vmem:[#allocation36_spill] sm:$0xff] }
 0xd2e   :  { %3742 = vmatmul.mubr.f32.vlgmr.msra.gmra.mxu0 %v3672_v32  ;;  %3813 = vmatmul.mubr.f32.vlgmr.msra.gmra.mxu1 %v3672_v32  ;;  %v7695_v32 = vld [vmem:[#allocation54_spill] sm:$0xff] }
 0xd2f   :  { %3852 = vmatpush1.msra.mxu0 %v6631_v4  ;;  %3923 = vmatpush1.msra.mxu1 %v6634_v38 }
 0xd30   :  { %3853 = vmatprep.subr.mxu0 %v6637_v10  ;;  %3924 = vmatprep.subr.mxu1 %v6640_v37 }
 0xd31   :  { %3854 = vmatpush1.msra.mxu0 %v6643_v30  ;;  %3925 = vmatpush1.msra.mxu1 %v6646_v21 }
 0xd32   :  { %3855 = vmatprep.subr.mxu0 %v6649_v31  ;;  %3926 = vmatprep.subr.mxu1 %v6652_v19 }
 0xd33   :  { %3856 = vmatpush1.msra.mxu0 %v6655_v20  ;;  %3927 = vmatpush1.msra.mxu1 %v6658_v23 }
 0xd34   :  { %3857 = vmatprep.subr.mxu0 %v6743_v24  ;;  %3928 = vmatprep.subr.mxu1 %v6746_v27 }
 0xd35   :  { %3858 = vmatpush1.msra.mxu0 %v6749_v51  ;;  %3929 = vmatpush1.msra.mxu1 %v6752_v52 }
 0xd36   :  { %3859 = vmatprep.subr.mxu0 %v6755_v54  ;;  %3930 = vmatprep.subr.mxu1 %v6758_v55 }
 0xd37   :  { %3860 = vmatpush1.msra.mxu0 %v6761_v56  ;;  %3931 = vmatpush1.msra.mxu1 %v6764_v57 }
 0xd38   :  { %3861 = vmatprep.subr.mxu0 %v6767_v58  ;;  %3932 = vmatprep.subr.mxu1 %v6770_v61 }
 0xd39   :  { %3862 = vmatpush1.msra.mxu0 %v6773_v62  ;;  %3933 = vmatpush1.msra.mxu1 %v6776_v42 }
 0xd3a   :  { %3863 = vmatprep.subr.mxu0 %v6779_v5  ;;  %3934 = vmatprep.subr.mxu1 %v6782_v2 }
 0xd3b   :  { %3864 = vmatpush1.msra.mxu0 %v6785_v17  ;;  %3935 = vmatpush1.msra.mxu1 %v6788_v11 }
 0xd3c   :  { %3865 = vmatprep.subr.mxu0 %v6791_v26  ;;  %3936 = vmatprep.subr.mxu1 %v6794_v13 }
 0xd3d   :  { %3866 = vmatpush1.msra.mxu0 %v6797_v63  ;;  %3937 = vmatpush1.msra.mxu1 %v6800_v6 }
 0xd3e   :  { %3867 = vmatprep.subr.mxu0 %v6803_v1  ;;  %3938 = vmatprep.subr.mxu1 %v6806_v3 }
 0xd3f   :  { %3868 = vmatpush1.msra.mxu0 %v6809_v7  ;;  %3939 = vmatpush1.msra.mxu1 %v6812_v44 }
 0xd40   :  { %3869 = vmatprep.subr.mxu0 %v6815_v0  ;;  %3940 = vmatprep.subr.mxu1 %v6818_v9 }
 0xd41   :  { %3870 = vmatpush1.msra.mxu0 %v6821_v8  ;;  %3941 = vmatpush1.msra.mxu1 %v6824_v12 }
 0xd42   :  { %3871 = vmatprep.subr.mxu0 %v6827_v18  ;;  %3942 = vmatprep.subr.mxu1 %v6830_v15 }
 0xd43   :  { %3872 = vmatpush1.msra.mxu0 %v6833_v41  ;;  %3943 = vmatpush1.msra.mxu1 %v7677_v36 }
 0xd44   :  { %3873 = vmatprep.subr.mxu0 %v7678_v43  ;;  %3944 = vmatprep.subr.mxu1 %v7679_v45  ;;  %v7705_v43 = vld [vmem:[#allocation63_spill] sm:$0xff] }
 0xd45   :  { %3874 = vmatpush1.msra.mxu0 %v7680_v47  ;;  %3945 = vmatpush1.msra.mxu1 %v7681_v40 }
 0xd46   :  { %3875 = vmatprep.subr.mxu0 %v7682_v29  ;;  %3946 = vmatprep.subr.mxu1 %v7683_v25 }
 0xd47   :  { %3876 = vmatpush1.msra.mxu0 %v7684_v59  ;;  %3947 = vmatpush1.msra.mxu1 %v7685_v49  ;;  %v7696_v59 = vld [vmem:[#allocation56_spill] sm:$0xff] }
 0xd48   :  { %3877 = vmatprep.subr.mxu0 %v7686_v48  ;;  %3948 = vmatprep.subr.mxu1 %v7687_v50  ;;  %v7697_v48 = vmov 0.0   ;;  %v7698_v50 = vld [vmem:[#allocation57_spill] sm:$0xff] }
 0xd49   :  { %3878 = vmatpush1.msra.mxu0 %v7688_v34  ;;  %3949 = vmatpush1.msra.mxu1 %v7689_v22  ;;  %v7699_v34 = vld [vmem:[#allocation33_spill] sm:$0xff] }
 0xd4a   :  { %3879 = vmatprep.subr.mxu0 %v7690_v39  ;;  %3950 = vmatprep.subr.mxu1 %v7691_v16  ;;  %v7700_v39 = vld [vmem:[#allocation31_spill] sm:$0xff]  ;;  %v7701_v16 = vld [vmem:[#allocation68_spill] sm:$0xff] }
 0xd4b   :  { %3880 = vmatpush1.msra.mxu0 %v7692_v60  ;;  %3951 = vmatpush1.msra.mxu1 %v7693_v53  ;;  %v7702_v60 = vld [vmem:[#allocation65_spill] sm:$0xff] }
 0xd4c   :  { %3881 = vmatprep.subr.mxu0 %v7694_v35  ;;  %3952 = vmatprep.subr.mxu1 %v7695_v32  ;;  %v2578_v22 = vadd.f32 %v7702_v60, %v7701_v16  ;;  %v7703_v35 = vld [vmem:[#allocation70_spill] sm:$0xff]  ;;  %v2691_v60 = vadd.f32 %v7705_v43, %v6465_v28 }
 0xd4d   :  { %3882 = vmatpush1.msra.mxu0 %v7696_v59  ;;  %3915 = vmatprep.mubr.f32.mxu0 %v7697_v48  ;;  %v2580_v49 = vadd.f32 %v7703_v35, %v6448_v14 }
 0xd4e   :  { %3953 = vmatpush1.msra.mxu1 %v7698_v50  ;;  %3986 = vmatprep.mubr.f32.mxu1 %v7697_v48 }
 0xd4f   :  { %4096 = vmatprep.subr.mxu1 %v7699_v34  ;;  %4025 = vmatprep.subr.mxu0 %v7700_v39  ;;  %v7704_v34 = vld [vmem:[#allocation21_spill] sm:$0xff] }
 0xd50   :  { %v2693_v40 = vadd.f32 %v7704_v34, %v7600_v33 }
 0xdee   :  { %v3743_v53 = vpop.f32.mrf.mxu0  ;;  %v3814_v47 = vpop.f32.mrf.mxu1 }
 0xdef   :  { %v3819_v32 = vadd.f32 %v3743_v53, %v2578_v22  ;;  %v3821_v16 = vadd.f32 %v3814_v47, %v2691_v60 }
 0xdf0   :  { %v3745_v29 = vpop.f32.mrf.mxu0  ;;  %v3816_v48 = vpop.f32.mrf.mxu1 }
 0xdf1   :  { %v4456_v59 = vmul.f32 -1.442695, %v3819_v32  ;;  %v3820_v25 = vadd.f32 %v3745_v29, %v2580_v49  ;;  %v3822_v39 = vadd.f32 %v3816_v48, %v2693_v40 }
 0xdf3   :  { %4791 = vpow2.f32 %v4456_v59  ;;  %v4457_v50 = vmul.f32 -1.442695, %v3820_v25  ;;  %v4458_v45 = vmul.f32 -1.442695, %v3822_v39 }
 0xdf5   :  { %4793 = vpow2.f32 %v4457_v50 }
 0xdf6   :  { %4795 = vtanh.f32 %v3821_v16 }
 0xdf7   :  { %4797 = vpow2.f32 %v4458_v45 }
 0xe00   :  { %v4792_v41 = vpop.eup %4791 }
 0xe01   :  { %v3826_v35 = vadd.f32 1.0, %v4792_v41 }
 0xe02   :  { %v4794_v22 = vpop.eup %4793 }
 0xe03   :  { %4799 = vrcp.f32 %v3826_v35  ;;  %v3832_v29 = vadd.f32 1.0, %v4794_v22  ;;  %v4796_v25 = vpop.eup %4795 }
 0xe04   :  { %v4798_v59 = vpop.eup %4797 }
 0xe05   :  { %4801 = vrcp.f32 %v3832_v29  ;;  %v3839_v32 = vadd.f32 1.0, %v4798_v59 }
 0xe07   :  { %4803 = vrcp.f32 %v3839_v32 }
 0xe10   :  { %v4800_v49 = vpop.eup %4799 }
 0xe11   :  { %v3843_v50 = vmul.f32 %v4800_v49, %v4796_v25 }
 0xe12   :  { %v4802_v53 = vpop.eup %4801 }
 0xe13   :  { %v3842_v40 = vmul.f32 %v4802_v53, %v6912_v46 }
 0xe14   :  { %v4804_v41 = vpop.eup %4803 }
 0xe15   :  { %v6990_v48 = vadd.f32 %v3843_v50, %v3842_v40 }
 0xe17   :  { %4805 = vtanh.f32 %v6990_v48 }
 0xe24   :  { %v4806_v43 = vpop.eup %4805 }
 0xe25   :  { %v3846_v47 = vmul.f32 %v4806_v43, %v4804_v41  ;;  %v4210_v41 = vld [vmem:[#allocation13 + $0x78] sm:$0xff]  ;;  %v4209_v43 = vld [vmem:[#allocation13 + $0x70] sm:$0xff] }
 0xe27   :  { %3916 = vmatmul.mubr.f32.vlgmr.msra.gmra.mxu0 %v3846_v47  ;;  %3987 = vmatmul.mubr.f32.vlgmr.msra.gmra.mxu1 %v3846_v47  ;;  %v4208_v47 = vld [vmem:[#allocation13 + $0x68] sm:$0xff] }
 0xe28   :  { %4097 = vmatpush1.msra.mxu1 %v6634_v38  ;;  %4026 = vmatpush1.msra.mxu0 %v6631_v4  ;;  %v7706_v4 = vld [vmem:[#allocation73_spill] sm:$0xff]  ;;  %v7707_v38 = vld [vmem:[#allocation46_spill] sm:$0xff] }
 0xe29   :  { %4098 = vmatprep.subr.mxu1 %v6640_v37  ;;  %4027 = vmatprep.subr.mxu0 %v6637_v10  ;;  %v7708_v10 = vld [vmem:[#allocation32_spill] sm:$0xff]  ;;  %v7709_v37 = vld [vmem:[#allocation49_spill] sm:$0xff] }
 0xe2a   :  { %4099 = vmatpush1.msra.mxu1 %v6646_v21  ;;  %4028 = vmatpush1.msra.mxu0 %v6643_v30  ;;  %v7710_v30 = vld [vmem:[#allocation48_spill] sm:$0xff]  ;;  %v7711_v21 = vld [vmem:[#allocation50_spill] sm:$0xff] }
 0xe2b   :  { %4100 = vmatprep.subr.mxu1 %v6652_v19  ;;  %4029 = vmatprep.subr.mxu0 %v6649_v31  ;;  %v7712_v31 = vld [vmem:[#allocation47_spill] sm:$0xff]  ;;  %v7713_v19 = vld [vmem:[#allocation53_spill] sm:$0xff] }
 0xe2c   :  { %4101 = vmatpush1.msra.mxu1 %v6658_v23  ;;  %4030 = vmatpush1.msra.mxu0 %v6655_v20  ;;  %v7714_v20 = vld [vmem:[#allocation52_spill] sm:$0xff]  ;;  %v7715_v23 = vld [vmem:[#allocation22_spill] sm:$0xff] }
 0xe2d   :  { %4102 = vmatprep.subr.mxu1 %v6746_v27  ;;  %4031 = vmatprep.subr.mxu0 %v6743_v24  ;;  %v7716_v24 = vld [vmem:[#allocation51_spill] sm:$0xff]  ;;  %v7717_v27 = vld [vmem:[#allocation45_spill] sm:$0xff] }
 0xe2e   :  { %4103 = vmatpush1.msra.mxu1 %v6752_v52  ;;  %4032 = vmatpush1.msra.mxu0 %v6749_v51  ;;  %v7718_v51 = vld [vmem:[#allocation23_spill] sm:$0xff] }
 0xe2f   :  { %4104 = vmatprep.subr.mxu1 %v6758_v55  ;;  %4033 = vmatprep.subr.mxu0 %v6755_v54  ;;  %v7719_v52 = vld [vmem:[#allocation35_spill] sm:$0xff]  ;;  %v7721_v55 = vld [vmem:[#allocation38_spill] sm:$0xff] }
 0xe30   :  { %4105 = vmatpush1.msra.mxu1 %v6764_v57  ;;  %4034 = vmatpush1.msra.mxu0 %v6761_v56  ;;  %v7720_v54 = vld [vmem:[#allocation43_spill] sm:$0xff]  ;;  %v7722_v56 = vld [vmem:[#allocation37_spill] sm:$0xff]  ;;  %v7723_v57 = vld [vmem:[#allocation54_spill] sm:$0xff] }
 0xe31   :  { %4106 = vmatprep.subr.mxu1 %v6770_v61  ;;  %4035 = vmatprep.subr.mxu0 %v6767_v58  ;;  %v7724_v58 = vld [vmem:[#allocation36_spill] sm:$0xff]  ;;  %v7725_v61 = vld [vmem:[#allocation57_spill] sm:$0xff] }
 0xe32   :  { %4107 = vmatpush1.msra.mxu1 %v6776_v42  ;;  %4036 = vmatpush1.msra.mxu0 %v6773_v62  ;;  %v7726_v62 = vld [vmem:[#allocation56_spill] sm:$0xff]  ;;  %v7727_v42 = vmov 0.0  }
 0xe33   :  { %4108 = vmatprep.subr.mxu1 %v6782_v2  ;;  %4037 = vmatprep.subr.mxu0 %v6779_v5  ;;  %v7728_v5 = vld [vmem:[#allocation68_spill] sm:$0xff]  ;;  %v7729_v2 = vld [vmem:[#allocation41_spill] sm:$0xff] }
 0xe34   :  { %4109 = vmatpush1.msra.mxu1 %v6788_v11  ;;  %4038 = vmatpush1.msra.mxu0 %v6785_v17  ;;  %v2584_v17 = vadd.f32 %v7729_v2, %v7728_v5  ;;  %v4218_v2 = vld [vmem:[#allocation13 + $0xb8] sm:$0xff] }
 0xe35   :  { %4110 = vmatprep.subr.mxu1 %v6794_v13  ;;  %4039 = vmatprep.subr.mxu0 %v6791_v26  ;;  %v7730_v26 = vld [vmem:[#allocation66_spill] sm:$0xff] }
 0xe36   :  { %4111 = vmatpush1.msra.mxu1 %v6800_v6  ;;  %4040 = vmatpush1.msra.mxu0 %v6797_v63  ;;  %v2586_v13 = vadd.f32 %v7730_v26, %v6448_v14  ;;  %v4215_v26 = vld [vmem:[#allocation13 + $0xa0] sm:$0xff] }
 0xe37   :  { %4112 = vmatprep.subr.mxu1 %v6806_v3  ;;  %4041 = vmatprep.subr.mxu0 %v6803_v1 }
 0xe38   :  { %4113 = vmatpush1.msra.mxu1 %v6812_v44  ;;  %4042 = vmatpush1.msra.mxu0 %v6809_v7 }
 0xe39   :  { %4114 = vmatprep.subr.mxu1 %v6818_v9  ;;  %4043 = vmatprep.subr.mxu0 %v6815_v0  ;;  %v7731_v9 = vld [vmem:[#allocation69_spill] sm:$0xff] }
 0xe3a   :  { %4115 = vmatpush1.msra.mxu1 %v6824_v12  ;;  %4044 = vmatpush1.msra.mxu0 %v6821_v8  ;;  %v2699_v8 = vadd.f32 %v7731_v9, %v7600_v33 }
 0xe3b   :  { %4116 = vmatprep.subr.mxu1 %v6830_v15  ;;  %4045 = vmatprep.subr.mxu0 %v6827_v18  ;;  %v7732_v18 = vld [vmem:[#allocation44_spill] sm:$0xff] }
 0xe3c   :  { %4117 = vmatpush1.msra.mxu1 %v7677_v36  ;;  %4046 = vmatpush1.msra.mxu0 %v7706_v4  ;;  %v2697_v15 = vadd.f32 %v7732_v18, %v6465_v28  ;;  %v4206_v4 = vld [vmem:[#allocation13 + $0x58] sm:$0xff] }
 0xe3d   :  { %4118 = vmatprep.subr.mxu1 %v7707_v38  ;;  %4047 = vmatprep.subr.mxu0 %v7708_v10  ;;  %v4205_v38 = vld [vmem:[#allocation13 + $0x50] sm:$0xff]  ;;  %v4204_v10 = vld [vmem:[#allocation13 + $0x48] sm:$0xff] }
 0xe3e   :  { %4119 = vmatpush1.msra.mxu1 %v7709_v37  ;;  %4048 = vmatpush1.msra.mxu0 %v7710_v30  ;;  %v4203_v37 = vld [vmem:[#allocation13 + $0x40] sm:$0xff]  ;;  %v4202_v30 = vld [vmem:[#allocation13 + $0x38] sm:$0xff] }
 0xe3f   :  { %4120 = vmatprep.subr.mxu1 %v7711_v21  ;;  %4049 = vmatprep.subr.mxu0 %v7712_v31  ;;  %v4201_v21 = vld [vmem:[#allocation13 + $0x30] sm:$0xff]  ;;  %v4200_v31 = vld [vmem:[#allocation13 + $0x28] sm:$0xff] }
 0xe40   :  { %4121 = vmatpush1.msra.mxu1 %v7713_v19  ;;  %4050 = vmatpush1.msra.mxu0 %v7714_v20  ;;  %v4199_v19 = vld [vmem:[#allocation13 + $0x20] sm:$0xff]  ;;  %v4198_v20 = vld [vmem:[#allocation13 + $0x18] sm:$0xff] }
 0xe41   :  { %4122 = vmatprep.subr.mxu1 %v7715_v23  ;;  %4051 = vmatprep.subr.mxu0 %v7716_v24  ;;  %v4197_v23 = vld [vmem:[#allocation13 + $0x10] sm:$0xff]  ;;  %v4196_v24 = vld [vmem:[#allocation13 + $0x8] sm:$0xff] }
 0xe42   :  { %4123 = vmatpush1.msra.mxu1 %v7717_v27  ;;  %4052 = vmatpush1.msra.mxu0 %v7718_v51  ;;  %v4195_v27 = vld [vmem:[#allocation13] sm:$0xff]  ;;  %v7733_v51 = vld [vmem:[#allocation74_spill] sm:$0xff] }
 0xe43   :  { %4124 = vmatprep.subr.mxu1 %v7719_v52  ;;  %4053 = vmatprep.subr.mxu0 %v7720_v54  ;;  %v4226_v52 = vld [vmem:[#allocation13 + $0xf8] sm:$0xff]  ;;  %v4225_v54 = vld [vmem:[#allocation13 + $0xf0] sm:$0xff] }
 0xe44   :  { %4125 = vmatpush1.msra.mxu1 %v7721_v55  ;;  %4054 = vmatpush1.msra.mxu0 %v7722_v56  ;;  %v4224_v55 = vld [vmem:[#allocation13 + $0xe8] sm:$0xff]  ;;  %v4223_v56 = vld [vmem:[#allocation13 + $0xe0] sm:$0xff] }
 0xe45   :  { %4126 = vmatprep.subr.mxu1 %v7723_v57  ;;  %4055 = vmatprep.subr.mxu0 %v7724_v58  ;;  %v4222_v57 = vld [vmem:[#allocation13 + $0xd8] sm:$0xff]  ;;  %v4221_v58 = vld [vmem:[#allocation13 + $0xd0] sm:$0xff] }
 0xe46   :  { %4127 = vmatpush1.msra.mxu1 %v7725_v61  ;;  %4056 = vmatpush1.msra.mxu0 %v7726_v62  ;;  %v4220_v61 = vld [vmem:[#allocation13 + $0xc8] sm:$0xff]  ;;  %v4219_v62 = vld [vmem:[#allocation13 + $0xc0] sm:$0xff] }
 0xe47   :  { %4089 = vmatprep.mubr.f32.mxu0 %v7727_v42  ;;  %4160 = vmatprep.mubr.f32.mxu1 %v7727_v42 }
 0xe48   :  { %4535 = vmatprep.subr.mxu1 %v7727_v42  ;;  %4500 = vmatprep.subr.mxu0 %v7727_v42 }
 0xee7   :  { %v3917_v11 = vpop.f32.mrf.mxu0  ;;  %v3988_v7 = vpop.f32.mrf.mxu1 }
 0xee8   :  { %v3993_v63 = vadd.f32 %v3917_v11, %v2584_v17  ;;  %v3995_v46 = vadd.f32 %v3988_v7, %v2697_v15  ;;  %v4217_v17 = vld [vmem:[#allocation13 + $0xb0] sm:$0xff]  ;;  %v4216_v11 = vld [vmem:[#allocation13 + $0xa8] sm:$0xff] }
 0xee9   :  { %v3919_v6 = vpop.f32.mrf.mxu0  ;;  %v3990_v0 = vpop.f32.mrf.mxu1 }
 0xeea   :  { %v4459_v1 = vmul.f32 -1.442695, %v3993_v63  ;;  %v3994_v3 = vadd.f32 %v3919_v6, %v2586_v13  ;;  %v3996_v12 = vadd.f32 %v3990_v0, %v2699_v8  ;;  %v4214_v13 = vld [vmem:[#allocation13 + $0x98] sm:$0xff]  ;;  %v4213_v63 = vld [vmem:[#allocation13 + $0x90] sm:$0xff]  ;;  %v4212_v6 = vld [vmem:[#allocation13 + $0x88] sm:$0xff] }
 0xeeb   :  { %v7735_v0 = vld [vmem:[#allocation71_spill] sm:$0xff] }
 0xeec   :  { %4807 = vpow2.f32 %v4459_v1  ;;  %v4460_v44 = vmul.f32 -1.442695, %v3994_v3  ;;  %v4461_v36 = vmul.f32 -1.442695, %v3996_v12  ;;  %v4211_v1 = vld [vmem:[#allocation13 + $0x80] sm:$0xff]  ;;  %v7734_v3 = vld [vmem:[#allocation67_spill] sm:$0xff]  ;;  %v2592_v9 = vadd.f32 %v7735_v0, %v6448_v14 }
 0xeed   :  { %v2590_v7 = vadd.f32 %v7734_v3, %v7728_v5 }
 0xeee   :  { %4809 = vpow2.f32 %v4460_v44 }
 0xeef   :  { %4811 = vtanh.f32 %v3995_v46 }
 0xef0   :  { %4813 = vpow2.f32 %v4461_v36 }
 0xef9   :  { %v4808_v45 = vpop.eup %4807 }
 0xefa   :  { %v4000_v16 = vadd.f32 1.0, %v4808_v45 }
 0xefb   :  { %v4810_v34 = vpop.eup %4809 }
 0xefc   :  { %4815 = vrcp.f32 %v4000_v16  ;;  %v4006_v39 = vadd.f32 1.0, %v4810_v34  ;;  %v4812_v60 = vpop.eup %4811  ;;  %v7736_v16 = vld [vmem:[#allocation72_spill] sm:$0xff] }
 0xefd   :  { %v4814_v35 = vpop.eup %4813 }
 0xefe   :  { %4817 = vrcp.f32 %v4006_v39  ;;  %v4013_v59 = vadd.f32 1.0, %v4814_v35  ;;  %v7737_v39 = vld [vmem:[#allocation42_spill] sm:$0xff] }
 0xeff   :  { %v2703_v5 = vadd.f32 %v7737_v39, %v6465_v28 }
 0xf00   :  { %4819 = vrcp.f32 %v4013_v59 }
 0xf09   :  { %v4816_v22 = vpop.eup %4815 }
 0xf0a   :  { %v4017_v29 = vmul.f32 %v4816_v22, %v4812_v60 }
 0xf0b   :  { %v4818_v25 = vpop.eup %4817 }
 0xf0c   :  { %v4016_v49 = vmul.f32 %v4818_v25, %v6990_v48  ;;  %v4207_v48 = vld [vmem:[#allocation13 + $0x60] sm:$0xff] }
 0xf0d   :  { %v4820_v53 = vpop.eup %4819 }
 0xf0e   :  { %v7068_v50 = vadd.f32 %v4017_v29, %v4016_v49 }
 0xf10   :  { %4821 = vtanh.f32 %v7068_v50 }
 0xf1d   :  { %v4822_v32 = vpop.eup %4821 }
 0xf1e   :  { %v4020_v40 = vmul.f32 %v4822_v32, %v4820_v53 }
 0xf20   :  { %4090 = vmatmul.mubr.f32.vlgmr.msra.gmra.mxu0 %v4020_v40  ;;  %4161 = vmatmul.mubr.f32.vlgmr.msra.gmra.mxu1 %v4020_v40 }
 0xf21   :  { %4536 = vmatpush3.msra.mxu1 %v4210_v41  ;;  %4567 = vmatprep.mubr.msk.f32.mxu1 %vm5064_vm1, %v7727_v42 }
 0xf22   :  { %4537 = vmatprep.subr.mxu1 %v7727_v42  ;;  %4532 = vmatprep.mubr.msk.f32.mxu0 %vm5064_vm1, %v7727_v42 }
 0xf23   :  { %4538 = vmatpush3.msra.mxu1 %v4209_v43  ;;  %4501 = vmatpush3.msra.mxu0 %v4226_v52 }
 0xf24   :  { %4539 = vmatprep.subr.mxu1 %v7727_v42  ;;  %4502 = vmatprep.subr.mxu0 %v7727_v42 }
 0xf25   :  { %4540 = vmatpush3.msra.mxu1 %v4208_v47  ;;  %4503 = vmatpush3.msra.mxu0 %v4225_v54 }
 0xf26   :  { %4541 = vmatprep.subr.mxu1 %v7727_v42  ;;  %4504 = vmatprep.subr.mxu0 %v7727_v42 }
 0xf27   :  { %4542 = vmatpush3.msra.mxu1 %v4207_v48  ;;  %4505 = vmatpush3.msra.mxu0 %v4224_v55 }
 0xf28   :  { %4543 = vmatprep.subr.mxu1 %v7727_v42  ;;  %4506 = vmatprep.subr.mxu0 %v7727_v42 }
 0xf29   :  { %4544 = vmatpush3.msra.mxu1 %v4206_v4  ;;  %4507 = vmatpush3.msra.mxu0 %v4223_v56 }
 0xf2a   :  { %4545 = vmatprep.subr.mxu1 %v7727_v42  ;;  %4508 = vmatprep.subr.mxu0 %v7727_v42 }
 0xf2b   :  { %4546 = vmatpush3.msra.mxu1 %v4205_v38  ;;  %4509 = vmatpush3.msra.mxu0 %v4222_v57 }
 0xf2c   :  { %4547 = vmatprep.subr.mxu1 %v7727_v42  ;;  %4510 = vmatprep.subr.mxu0 %v7727_v42 }
 0xf2d   :  { %4548 = vmatpush3.msra.mxu1 %v4204_v10  ;;  %4511 = vmatpush3.msra.mxu0 %v4221_v58 }
 0xf2e   :  { %4549 = vmatprep.subr.mxu1 %v7727_v42  ;;  %4512 = vmatprep.subr.mxu0 %v7727_v42 }
 0xf2f   :  { %4550 = vmatpush3.msra.mxu1 %v4203_v37  ;;  %4513 = vmatpush3.msra.mxu0 %v4220_v61  ;;  %v4465_v37 = vld [vmem:[%s7127_s8] ss:$0 sm:$0xff] }
 0xf30   :  { %4551 = vmatprep.subr.mxu1 %v7727_v42  ;;  %4514 = vmatprep.subr.mxu0 %v7727_v42 }
 0xf31   :  { %4552 = vmatpush3.msra.mxu1 %v4202_v30  ;;  %4515 = vmatpush3.msra.mxu0 %v4219_v62 }
 0xf32   :  { %4553 = vmatprep.subr.mxu1 %v7727_v42  ;;  %4516 = vmatprep.subr.mxu0 %v7727_v42 }
 0xf33   :  { %4554 = vmatpush3.msra.mxu1 %v4201_v21  ;;  %4517 = vmatpush3.msra.mxu0 %v4218_v2 }
 0xf34   :  { %4555 = vmatprep.subr.mxu1 %v7727_v42  ;;  %4518 = vmatprep.subr.mxu0 %v7727_v42 }
 0xf35   :  { %4556 = vmatpush3.msra.mxu1 %v4200_v31  ;;  %4519 = vmatpush3.msra.mxu0 %v4217_v17 }
 0xf36   :  { %4557 = vmatprep.subr.mxu1 %v7727_v42  ;;  %4520 = vmatprep.subr.mxu0 %v7727_v42 }
 0xf37   :  { %4558 = vmatpush3.msra.mxu1 %v4199_v19  ;;  %4521 = vmatpush3.msra.mxu0 %v4216_v11 }
 0xf38   :  { %4559 = vmatprep.subr.mxu1 %v7727_v42  ;;  %4522 = vmatprep.subr.mxu0 %v7727_v42 }
 0xf39   :  { %4560 = vmatpush3.msra.mxu1 %v4198_v20  ;;  %4523 = vmatpush3.msra.mxu0 %v4215_v26 }
 0xf3a   :  { %4561 = vmatprep.subr.mxu1 %v7727_v42  ;;  %4524 = vmatprep.subr.mxu0 %v7727_v42 }
 0xf3b   :  { %4562 = vmatpush3.msra.mxu1 %v4197_v23  ;;  %4525 = vmatpush3.msra.mxu0 %v4214_v13 }
 0xf3c   :  { %4563 = vmatprep.subr.mxu1 %v7727_v42  ;;  %4526 = vmatprep.subr.mxu0 %v7727_v42 }
 0xf3d   :  { %4564 = vmatpush3.msra.mxu1 %v4196_v24  ;;  %4527 = vmatpush3.msra.mxu0 %v4213_v63 }
 0xf3e   :  { %4565 = vmatprep.subr.mxu1 %v7727_v42  ;;  %4528 = vmatprep.subr.mxu0 %v7727_v42 }
 0xf3f   :  { %4566 = vmatpush3.msra.mxu1 %v4195_v27  ;;  %4529 = vmatpush3.msra.mxu0 %v4212_v6 }
 0xf40   :  { %4568 = vmatmul.mubr.f32.vlgmr.msra.gmra.mxu1 %v7733_v51  ;;  %4530 = vmatprep.subr.mxu0 %v7727_v42  ;;  %v2705_v42 = vadd.f32 %v7736_v16, %v7600_v33 }
 0xf41   :  { %4531 = vmatpush3.msra.mxu0 %v4211_v1 }
 0xfe0   :  { %v4091_v44 = vpop.f32.mrf.mxu0  ;;  %v4162_v46 = vpop.f32.mrf.mxu1 }
 0xfe1   :  { %v4167_v8 = vadd.f32 %v4091_v44, %v2590_v7  ;;  %v4169_v60 = vadd.f32 %v4162_v46, %v2703_v5 }
 0xfe2   :  { %v4093_v12 = vpop.f32.mrf.mxu0  ;;  %v4164_v45 = vpop.f32.mrf.mxu1 }
 0xfe3   :  { %v4462_v18 = vmul.f32 -1.442695, %v4167_v8  ;;  %v4168_v15 = vadd.f32 %v4093_v12, %v2592_v9  ;;  %v4170_v34 = vadd.f32 %v4164_v45, %v2705_v42 }
 0xfe5   :  { %4823 = vpow2.f32 %v4462_v18  ;;  %v4463_v36 = vmul.f32 -1.442695, %v4168_v15  ;;  %v4464_v35 = vmul.f32 -1.442695, %v4170_v34 }
 0xfe7   :  { %4825 = vpow2.f32 %v4463_v36 }
 0xfe8   :  { %4827 = vtanh.f32 %v4169_v60 }
 0xfe9   :  { %4829 = vpow2.f32 %v4464_v35 }
 0xff2   :  { %v4824_v22 = vpop.eup %4823 }
 0xff3   :  { %v4174_v14 = vadd.f32 1.0, %v4824_v22 }
 0xff4   :  { %v4826_v29 = vpop.eup %4825 }
 0xff5   :  { %4831 = vrcp.f32 %v4174_v14  ;;  %v4180_v25 = vadd.f32 1.0, %v4826_v29  ;;  %v4828_v59 = vpop.eup %4827 }
 0xff6   :  { %v4830_v53 = vpop.eup %4829 }
 0xff7   :  { %4833 = vrcp.f32 %v4180_v25  ;;  %v4187_v43 = vadd.f32 1.0, %v4830_v53 }
 0xff9   :  { %4835 = vrcp.f32 %v4187_v43 }
0x1000   :  { %v4363_v49 = vpop.f32.mrf.mxu1 }
0x1002   :  { %v4832_v32 = vpop.eup %4831  ;;  %v4569_v40 = vpop.f32.mrf.mxu1 }
0x1003   :  { %v4191_v33 = vmul.f32 %v4832_v32, %v4828_v59 }
0x1004   :  { %v4834_v41 = vpop.eup %4833 }
0x1005   :  { %v4190_v28 = vmul.f32 %v4834_v41, %v7068_v50 }
0x1006   :  { %v4836_v48 = vpop.eup %4835 }
0x1007   :  { %v4192_v47 = vadd.f32 %v4191_v33, %v4190_v28 }
0x1009   :  { %4837 = vtanh.f32 %v4192_v47 }
0x1016   :  { %v4838_v4 = vpop.eup %4837 }
0x1017   :  { %v4194_v38 = vmul.f32 %v4838_v4, %v4836_v48 }
0x1019   :  { %4533 = vmatmul.mubr.f32.vlgmr.msra.gmra.mxu0 %v4194_v38 }
0x10d9   :  { %v4293_v10 = vpop.f32.mrf.mxu0 }
0x10da   :  { %v4364_v30 = vadd.f32 %v4363_v49, %v4293_v10 }
0x10db   :  { %v4534_v21 = vpop.f32.mrf.mxu0 }
0x10dc   :  { %v4374_v31 = vadd.f32 %v4465_v37, %v4364_v30 }
0x10de   :  { %4375 = vst [vmem:[#allocation15] sm:$0xff] %v4374_v31 }
0x10df   :  { %5034 = shalt.err (!%p5031_p6)
}
0x10e0   :  { %4385 = dma.vmem_to_hbm [thread:$0]  %s4383_s21, 128, %s7128_s9, [#allocation6]  }
0x10e1   :  { %5051 = dma.done.wait [#allocation6], 128  }
0x10e2   :  { %5052 = vsyncadd [#allocation6], 4294967168 }
0x10e3   :  { %4389 = vsyncpa [#allocation5], 1 }
0x10e4   :  { %4390 = vsyncpa [#allocation8], 1 }
0x10e5   :  { %4391 = vsyncpa [#allocation11], 1 }
0x10e6   :  { %4392 = vsyncpa [#allocation14], 1 }
0x10e7   :  { %4393 = vsyncpa [#allocation6], 1 }

</bundles_post_ra>
